<compile_context>
chip_gen: v5e
topology: v5e:2x2
jax: 0.10.0
libtpu: 0.0.40
codegen_flags: <defaults>
</compile_context>

<pallas_src>
import functools
import math

import jax
import jax.numpy as jnp
from jax import lax
from jax.experimental import pallas as pl
from jax.experimental.pallas import tpu as pltpu

SQRT2 = math.sqrt(2.0)
INV_SQRT2 = 1.0 / SQRT2
EPS = 1e-12  # F.normalize default eps
HI = jax.lax.Precision.HIGHEST


def gcn_v_kernel(xcat_ref,                      # (T*B, 2D): [x_t | x_{T-1-t}]
                 wih_ref, bih_ref,              # (2D, 8D) block-diag, (1, 8D)
                 whh_ref,                       # (2D, 8D) block-diag
                 wop_ref, bop_ref,              # (2D, D), (1, D)
                 w1_ref, b1_ref, a1_ref,        # (D, nhid), (1, nhid), (1, nhid)
                 w2_ref, b2_ref, a2_ref,        # (nhid, D), (1, D), (1, D)
                 wreg_ref, breg_ref,            # (1, D), (1, 1)
                 pred_ref,                      # (B, 1) output
                 h_scratch,                     # (T*B, 2D): [h_fwd(t) | h_bwd(t)]
                 *, T, B, D):
    f32 = jnp.float32

    def mm(a, b):
        return jnp.dot(a, b, preferred_element_type=f32, precision=HI)

    xcat = xcat_ref[...]                                        # (T*B, 2D)

    # Hoisted input projection (both directions, all timesteps) in one MXU
    # call; kept as a traced value -> no VMEM round trip before the recurrence.
    xg = mm(xcat, wih_ref[...]) + bih_ref[...]                  # (T*B, 8D)

    whh = whh_ref[...]                                          # (2D, 8D)
    S = 6 * D                                                   # sigmoid span

    h = jnp.zeros((B, 2 * D), f32)                              # [h_fwd | h_bwd]
    c = jnp.zeros((B, 2 * D), f32)

    # Fully-unrolled fused fwd/bwd recurrence: one matmul + 3 EUP slabs / step.
    for t in range(T):
        gates = xg[t * B:(t + 1) * B, :] + mm(h, whh)           # (B, 8D)
        sg = jax.nn.sigmoid(gates[:, 0:S])                      # [i_f i_b f_f f_b o_f o_b]
        gg = jnp.tanh(gates[:, S:8 * D])                        # [g_f g_b]
        i_ = sg[:, 0:2 * D]
        f_ = sg[:, 2 * D:4 * D]
        o_ = sg[:, 4 * D:6 * D]
        c = f_ * c + i_ * gg
        h = o_ * jnp.tanh(c)
        # fwd half is the output at time t, bwd half at time T-1-t
        h_scratch[pl.ds(t * B, B), pl.ds(0, D)] = h[:, 0:D]
        h_scratch[pl.ds((T - 1 - t) * B, B), pl.ds(D, D)] = h[:, D:2 * D]

    # out_proj(concat(h_fwd, h_bwd)) for all timesteps: ONE matmul, + residual,
    # per-row L2 normalize (rsqrt on the EUP).
    o = mm(h_scratch[...], wop_ref[...]) + bop_ref[...]         # (T*B, D)
    o = (o + xcat[:, 0:D]) * INV_SQRT2
    ssq = jnp.sum(o * o, axis=-1, keepdims=True)
    o = o * lax.rsqrt(jnp.maximum(ssq, EPS * EPS))

    # Mean over time: log-depth pairwise tree over static (B, D) row blocks.
    parts = [o[t * B:(t + 1) * B, :] for t in range(T)]
    while len(parts) > 1:
        nxt = [parts[i] + parts[i + 1] for i in range(0, len(parts) - 1, 2)]
        if len(parts) % 2:
            nxt.append(parts[-1])
        parts = nxt
    out = parts[0] * (1.0 / T)
    ssq2 = jnp.sum(out * out, axis=-1, keepdims=True)
    out = out * lax.rsqrt(jnp.maximum(ssq2, EPS * EPS))
    residual = out

    # mlp: Linear -> PReLU -> (Dropout p=0 == identity) -> Linear -> PReLU
    h1 = mm(out, w1_ref[...]) + b1_ref[...]
    h1 = jnp.where(h1 >= 0, h1, a1_ref[...] * h1)
    h2 = mm(h1, w2_ref[...]) + b2_ref[...]
    h2 = jnp.where(h2 >= 0, h2, a2_ref[...] * h2)
    out2 = (residual + h2) * INV_SQRT2

    # regressor (D -> 1) on the VPU: broadcast multiply + lane reduction.
    pred_ref[...] = (jnp.sum(out2 * wreg_ref[...], axis=-1, keepdims=True)
                     + breg_ref[...])
    # TODO(synk): output_feat / return_loss (huberloss) branches of GCN_V.forward
    #             are not implemented (default forward path returns `pred` only).


def init_params(key, feature_dim, nhid):
    """PyTorch-layout parameters matching GCN_V.__init__ shapes / gate order."""
    D = feature_dim
    ks = iter(jax.random.split(key, 24))

    def u(shape, bound):
        return jax.random.uniform(next(ks), shape, jnp.float32, -bound, bound)

    kl = 1.0 / math.sqrt(D)
    p = {}
    # nn.LSTM(D, D, bidirectional=True): torch gate order (i, f, g, o)
    for suffix in ("", "_reverse"):
        p["w_ih" + suffix] = u((4 * D, D), kl)
        p["w_hh" + suffix] = u((4 * D, D), kl)
        p["b_ih" + suffix] = u((4 * D,), kl)
        p["b_hh" + suffix] = u((4 * D,), kl)
    # out_proj: Linear(2D, D)
    kop = 1.0 / math.sqrt(2 * D)
    p["w_op"] = u((D, 2 * D), kop)
    p["b_op"] = u((D,), kop)
    # mlp: Linear(D, nhid) + PReLU(nhid) + Linear(nhid, D) + PReLU(D)
    k1 = 1.0 / math.sqrt(D)
    p["w1"] = u((nhid, D), k1)
    p["b1"] = u((nhid,), k1)
    p["a1"] = jnp.full((nhid,), 0.25, jnp.float32)
    k2 = 1.0 / math.sqrt(nhid)
    p["w2"] = u((D, nhid), k2)
    p["b2"] = u((D,), k2)
    p["a2"] = jnp.full((D,), 0.25, jnp.float32)
    # regressor: Linear(D, 1)
    p["w_reg"] = u((1, D), k1)
    p["b_reg"] = u((1,), k1)
    return p


def pack_params(p, D):
    """Rearrange PyTorch-layout params into the fused kernel layout.

    Fused gate column order along the 8D axis (D-wide blocks):
        [i_fwd, i_bwd, f_fwd, f_bwd, o_fwd, o_bwd, g_fwd, g_bwd]
    so one sigmoid covers columns [0, 6D) and one tanh covers [6D, 8D).
    The fused (2D, 8D) weights are block-diagonal: rows [0, D) = fwd direction
    (fed by x_t / h_fwd), rows [D, 2D) = bwd direction (fed by x_{T-1-t} / h_bwd).
    """
    torch_gate = {"i": 0, "f": 1, "g": 2, "o": 3}        # torch row-block order
    col_of = {("i", 0): 0, ("i", 1): 1, ("f", 0): 2, ("f", 1): 3,
              ("o", 0): 4, ("o", 1): 5, ("g", 0): 6, ("g", 1): 7}

    wih = jnp.zeros((2 * D, 8 * D), jnp.float32)
    whh = jnp.zeros((2 * D, 8 * D), jnp.float32)
    bih = jnp.zeros((1, 8 * D), jnp.float32)
    for d, suffix in enumerate(("", "_reverse")):
        w_ih, w_hh = p["w_ih" + suffix], p["w_hh" + suffix]
        b = p["b_ih" + suffix] + p["b_hh" + suffix]
        rows = slice(d * D, (d + 1) * D)
        for g, tg in torch_gate.items():
            cols = slice(col_of[(g, d)] * D, (col_of[(g, d)] + 1) * D)
            wih = wih.at[rows, cols].set(w_ih[tg * D:(tg + 1) * D, :].T)
            whh = whh.at[rows, cols].set(w_hh[tg * D:(tg + 1) * D, :].T)
            bih = bih.at[0, cols].set(b[tg * D:(tg + 1) * D])

    return dict(
        wih=wih, bih=bih, whh=whh,
        wop=p["w_op"].T, bop=p["b_op"][None, :],
        w1=p["w1"].T, b1=p["b1"][None, :], a1=p["a1"][None, :],
        w2=p["w2"].T, b2=p["b2"][None, :], a2=p["a2"][None, :],
        wreg=p["w_reg"], breg=p["b_reg"][None, :],
    )


def gcn_v_forward(batch_feat, packed):
    """batch_feat: (B, T, D) float32 (PyTorch batch_first). Returns pred (B,)."""
    B, T, D = batch_feat.shape
    x_tm = jnp.transpose(batch_feat, (1, 0, 2)).astype(jnp.float32)   # (T, B, D)
    # Row block t carries x[t] in lanes [:D] and x[T-1-t] in lanes [D:], so the
    # fused (block-diagonal) input projection is already time-aligned for both
    # LSTM directions. (Cheap XLA transpose/concat outside the kernel.)
    xcat = jnp.concatenate([x_tm, x_tm[::-1]], axis=-1).reshape(T * B, 2 * D)

    args = (xcat, packed["wih"], packed["bih"], packed["whh"],
            packed["wop"], packed["bop"],
            packed["w1"], packed["b1"], packed["a1"],
            packed["w2"], packed["b2"], packed["a2"],
            packed["wreg"], packed["breg"])

    vmem = pl.BlockSpec(memory_space=pltpu.MemorySpace.VMEM)
    kernel = functools.partial(gcn_v_kernel, T=T, B=B, D=D)
    pred = pl.pallas_call(
        kernel,
        out_shape=jax.ShapeDtypeStruct((B, 1), jnp.float32),
        in_specs=[vmem] * len(args),
        out_specs=vmem,
        scratch_shapes=[pltpu.VMEM((T * B, 2 * D), jnp.float32)],  # [h_fwd|h_bwd]
    )(*args)
    return pred[:, 0]


def gcn_v_reference(batch_feat, p):
    """Pure-JAX reference with PyTorch-faithful semantics (correctness check)."""
    B, T, D = batch_feat.shape
    x = jnp.transpose(batch_feat, (1, 0, 2)).astype(jnp.float32)   # (T, B, D)

    def run(w_ih, w_hh, b_ih, b_hh, reverse):
        def step(carry, x_t):
            h, c = carry
            gates = x_t @ w_ih.T + b_ih + h @ w_hh.T + b_hh
            i = jax.nn.sigmoid(gates[:, 0:D])
            f = jax.nn.sigmoid(gates[:, D:2 * D])
            g = jnp.tanh(gates[:, 2 * D:3 * D])
            o = jax.nn.sigmoid(gates[:, 3 * D:4 * D])
            c = f * c + i * g
            h = o * jnp.tanh(c)
            return (h, c), h
        init = (jnp.zeros((B, D), jnp.float32), jnp.zeros((B, D), jnp.float32))
        _, hs = lax.scan(step, init, x, reverse=reverse)
        return hs   # (T, B, D), aligned with input time order

    with jax.default_matmul_precision("highest"):
        hf = run(p["w_ih"], p["w_hh"], p["b_ih"], p["b_hh"], reverse=False)
        hb = run(p["w_ih_reverse"], p["w_hh_reverse"],
                 p["b_ih_reverse"], p["b_hh_reverse"], reverse=True)
        out = jnp.concatenate([hf, hb], axis=-1)                    # (T, B, 2D)
        out = out @ p["w_op"].T + p["b_op"]
        out = (out + x) / SQRT2
        out = out / jnp.maximum(jnp.linalg.norm(out, axis=-1, keepdims=True), EPS)
        out = out.mean(axis=0)                                      # (B, D)
        out = out / jnp.maximum(jnp.linalg.norm(out, axis=-1, keepdims=True), EPS)
        residual = out
        h1 = out @ p["w1"].T + p["b1"]
        h1 = jnp.where(h1 >= 0, h1, p["a1"] * h1)
        h2 = h1 @ p["w2"].T + p["b2"]
        h2 = jnp.where(h2 >= 0, h2, p["a2"] * h2)
        out2 = (residual + h2) / SQRT2
        pred = out2 @ p["w_reg"].T + p["b_reg"]
    return pred[:, 0]


if __name__ == "__main__":
    # batch=8 (fills the 8 sublanes / 8 MXU LHS rows per step), seq=8,
    # feature_dim=32, nhid=64.
    B, T, D, NHID = 8, 8, 32, 64
    key = jax.random.PRNGKey(0)
    kx, kp = jax.random.split(key)
    batch_feat = jax.random.normal(kx, (B, T, D), jnp.float32)
    params = init_params(kp, D, NHID)
    packed = pack_params(params, D)

    pred = gcn_v_forward(batch_feat, packed)
    jax.block_until_ready(pred)

    ref = gcn_v_reference(batch_feat, params)
    assert pred.shape == (B,), pred.shape
    assert bool(jnp.all(jnp.isfinite(pred)))
    assert jnp.allclose(pred, ref, atol=1e-3, rtol=1e-3), (pred, ref)
    print("KERNEL_OK")
</pallas_src>

<mosaic_0001>
module attributes {stable_mosaic.version = 11 : i64} {
  func.func @gcn_v_kernel(%arg0: memref<64x64xf32, #tpu.memory_space<vmem>>, %arg1: memref<64x256xf32, #tpu.memory_space<vmem>>, %arg2: memref<1x256xf32, #tpu.memory_space<vmem>>, %arg3: memref<64x256xf32, #tpu.memory_space<vmem>>, %arg4: memref<64x32xf32, #tpu.memory_space<vmem>>, %arg5: memref<1x32xf32, #tpu.memory_space<vmem>>, %arg6: memref<32x64xf32, #tpu.memory_space<vmem>>, %arg7: memref<1x64xf32, #tpu.memory_space<vmem>>, %arg8: memref<1x64xf32, #tpu.memory_space<vmem>>, %arg9: memref<64x32xf32, #tpu.memory_space<vmem>>, %arg10: memref<1x32xf32, #tpu.memory_space<vmem>>, %arg11: memref<1x32xf32, #tpu.memory_space<vmem>>, %arg12: memref<1x32xf32, #tpu.memory_space<vmem>>, %arg13: memref<1x1xf32, #tpu.memory_space<vmem>>, %arg14: memref<8x1xf32, #tpu.memory_space<vmem>>, %arg15: memref<64x64xf32, #tpu.memory_space<vmem>>) attributes {dimension_semantics = [], scalar_prefetch = 0 : i64, scratch_operands = 1 : i64, tpu.core_type = #tpu.core_type<tc>} {
    %c0 = arith.constant 0 : index
    %c0_0 = arith.constant 0 : index
    %0 = vector.load %arg0[%c0, %c0_0] : memref<64x64xf32, #tpu.memory_space<vmem>>, vector<64x64xf32>
    %c0_1 = arith.constant 0 : index
    %c0_2 = arith.constant 0 : index
    %1 = vector.load %arg1[%c0_1, %c0_2] : memref<64x256xf32, #tpu.memory_space<vmem>>, vector<64x256xf32>
    %cst = arith.constant dense<0.000000e+00> : vector<64x256xf32>
    %2 = tpu.matmul %0, %1, %cst {dimension_numbers = #tpu.dot_dimension_numbers<[1], [0], [0], [1], [0, 0, 1, 1], [], []>, precision = #tpu.contract_precision<fp32>} : vector<64x64xf32>, vector<64x256xf32>, vector<64x256xf32> -> vector<64x256xf32>
    %c0_3 = arith.constant 0 : index
    %c0_4 = arith.constant 0 : index
    %3 = vector.load %arg2[%c0_3, %c0_4] : memref<1x256xf32, #tpu.memory_space<vmem>>, vector<1x256xf32>
    %4 = vector.broadcast %3 : vector<1x256xf32> to vector<64x256xf32>
    %5 = arith.addf %2, %4 : vector<64x256xf32>
    %c0_5 = arith.constant 0 : index
    %c0_6 = arith.constant 0 : index
    %6 = vector.load %arg3[%c0_5, %c0_6] : memref<64x256xf32, #tpu.memory_space<vmem>>, vector<64x256xf32>
    %cst_7 = arith.constant 0.000000e+00 : f32
    %7 = vector.broadcast %cst_7 : f32 to vector<8x64xf32>
    %cst_8 = arith.constant 0.000000e+00 : f32
    %8 = vector.broadcast %cst_8 : f32 to vector<8x64xf32>
    %9 = vector.extract_strided_slice %5 {offsets = [0, 0], sizes = [8, 256], strides = [1, 1]} : vector<64x256xf32> to vector<8x256xf32>
    %cst_9 = arith.constant dense<0.000000e+00> : vector<8x256xf32>
    %10 = tpu.matmul %7, %6, %cst_9 {dimension_numbers = #tpu.dot_dimension_numbers<[1], [0], [0], [1], [0, 0, 1, 1], [], []>, precision = #tpu.contract_precision<fp32>} : vector<8x64xf32>, vector<64x256xf32>, vector<8x256xf32> -> vector<8x256xf32>
    %11 = arith.addf %9, %10 : vector<8x256xf32>
    %12 = vector.extract_strided_slice %11 {offsets = [0, 0], sizes = [8, 192], strides = [1, 1]} : vector<8x256xf32> to vector<8x192xf32>
    %13 = arith.negf %12 : vector<8x192xf32>
    %14 = math.exp %13 : vector<8x192xf32>
    %cst_10 = arith.constant 1.000000e+00 : f32
    %15 = vector.broadcast %cst_10 : f32 to vector<8x192xf32>
    %16 = arith.addf %15, %14 : vector<8x192xf32>
    %17 = arith.divf %15, %16 : vector<8x192xf32>
    %18 = vector.extract_strided_slice %11 {offsets = [0, 192], sizes = [8, 64], strides = [1, 1]} : vector<8x256xf32> to vector<8x64xf32>
    %19 = math.tanh %18 : vector<8x64xf32>
    %20 = vector.extract_strided_slice %17 {offsets = [0, 0], sizes = [8, 64], strides = [1, 1]} : vector<8x192xf32> to vector<8x64xf32>
    %21 = vector.extract_strided_slice %17 {offsets = [0, 64], sizes = [8, 64], strides = [1, 1]} : vector<8x192xf32> to vector<8x64xf32>
    %22 = vector.extract_strided_slice %17 {offsets = [0, 128], sizes = [8, 64], strides = [1, 1]} : vector<8x192xf32> to vector<8x64xf32>
    %23 = arith.mulf %21, %8 : vector<8x64xf32>
    %24 = arith.mulf %20, %19 : vector<8x64xf32>
    %25 = arith.addf %23, %24 : vector<8x64xf32>
    %26 = math.tanh %25 : vector<8x64xf32>
    %27 = arith.mulf %22, %26 : vector<8x64xf32>
    %28 = vector.extract_strided_slice %27 {offsets = [0, 0], sizes = [8, 32], strides = [1, 1]} : vector<8x64xf32> to vector<8x32xf32>
    %c0_11 = arith.constant 0 : index
    %c0_12 = arith.constant 0 : index
    %29 = vector.load %arg15[%c0_11, %c0_12] : memref<64x64xf32, #tpu.memory_space<vmem>>, vector<8x32xf32>
    tpu.vector_store %arg15[%c0_11, %c0_12], %28 {strides = array<i32>} : memref<64x64xf32, #tpu.memory_space<vmem>>, vector<8x32xf32>,
    %30 = vector.extract_strided_slice %27 {offsets = [0, 32], sizes = [8, 32], strides = [1, 1]} : vector<8x64xf32> to vector<8x32xf32>
    %c56 = arith.constant 56 : index
    %c32 = arith.constant 32 : index
    %31 = vector.load %arg15[%c56, %c32] : memref<64x64xf32, #tpu.memory_space<vmem>>, vector<8x32xf32>
    tpu.vector_store %arg15[%c56, %c32], %30 {strides = array<i32>} : memref<64x64xf32, #tpu.memory_space<vmem>>, vector<8x32xf32>,
    %32 = vector.extract_strided_slice %5 {offsets = [8, 0], sizes = [8, 256], strides = [1, 1]} : vector<64x256xf32> to vector<8x256xf32>
    %cst_13 = arith.constant dense<0.000000e+00> : vector<8x256xf32>
    %33 = tpu.matmul %27, %6, %cst_13 {dimension_numbers = #tpu.dot_dimension_numbers<[1], [0], [0], [1], [0, 0, 1, 1], [], []>, precision = #tpu.contract_precision<fp32>} : vector<8x64xf32>, vector<64x256xf32>, vector<8x256xf32> -> vector<8x256xf32>
    %34 = arith.addf %32, %33 : vector<8x256xf32>
    %35 = vector.extract_strided_slice %34 {offsets = [0, 0], sizes = [8, 192], strides = [1, 1]} : vector<8x256xf32> to vector<8x192xf32>
    %36 = arith.negf %35 : vector<8x192xf32>
    %37 = math.exp %36 : vector<8x192xf32>
    %cst_14 = arith.constant 1.000000e+00 : f32
    %38 = vector.broadcast %cst_14 : f32 to vector<8x192xf32>
    %39 = arith.addf %38, %37 : vector<8x192xf32>
    %40 = arith.divf %38, %39 : vector<8x192xf32>
    %41 = vector.extract_strided_slice %34 {offsets = [0, 192], sizes = [8, 64], strides = [1, 1]} : vector<8x256xf32> to vector<8x64xf32>
    %42 = math.tanh %41 : vector<8x64xf32>
    %43 = vector.extract_strided_slice %40 {offsets = [0, 0], sizes = [8, 64], strides = [1, 1]} : vector<8x192xf32> to vector<8x64xf32>
    %44 = vector.extract_strided_slice %40 {offsets = [0, 64], sizes = [8, 64], strides = [1, 1]} : vector<8x192xf32> to vector<8x64xf32>
    %45 = vector.extract_strided_slice %40 {offsets = [0, 128], sizes = [8, 64], strides = [1, 1]} : vector<8x192xf32> to vector<8x64xf32>
    %46 = arith.mulf %44, %25 : vector<8x64xf32>
    %47 = arith.mulf %43, %42 : vector<8x64xf32>
    %48 = arith.addf %46, %47 : vector<8x64xf32>
    %49 = math.tanh %48 : vector<8x64xf32>
    %50 = arith.mulf %45, %49 : vector<8x64xf32>
    %51 = vector.extract_strided_slice %50 {offsets = [0, 0], sizes = [8, 32], strides = [1, 1]} : vector<8x64xf32> to vector<8x32xf32>
    %c8 = arith.constant 8 : index
    %c0_15 = arith.constant 0 : index
    %52 = vector.load %arg15[%c8, %c0_15] : memref<64x64xf32, #tpu.memory_space<vmem>>, vector<8x32xf32>
    tpu.vector_store %arg15[%c8, %c0_15], %51 {strides = array<i32>} : memref<64x64xf32, #tpu.memory_space<vmem>>, vector<8x32xf32>,
    %53 = vector.extract_strided_slice %50 {offsets = [0, 32], sizes = [8, 32], strides = [1, 1]} : vector<8x64xf32> to vector<8x32xf32>
    %c48 = arith.constant 48 : index
    %c32_16 = arith.constant 32 : index
    %54 = vector.load %arg15[%c48, %c32_16] : memref<64x64xf32, #tpu.memory_space<vmem>>, vector<8x32xf32>
    tpu.vector_store %arg15[%c48, %c32_16], %53 {strides = array<i32>} : memref<64x64xf32, #tpu.memory_space<vmem>>, vector<8x32xf32>,
    %55 = vector.extract_strided_slice %5 {offsets = [16, 0], sizes = [8, 256], strides = [1, 1]} : vector<64x256xf32> to vector<8x256xf32>
    %cst_17 = arith.constant dense<0.000000e+00> : vector<8x256xf32>
    %56 = tpu.matmul %50, %6, %cst_17 {dimension_numbers = #tpu.dot_dimension_numbers<[1], [0], [0], [1], [0, 0, 1, 1], [], []>, precision = #tpu.contract_precision<fp32>} : vector<8x64xf32>, vector<64x256xf32>, vector<8x256xf32> -> vector<8x256xf32>
    %57 = arith.addf %55, %56 : vector<8x256xf32>
    %58 = vector.extract_strided_slice %57 {offsets = [0, 0], sizes = [8, 192], strides = [1, 1]} : vector<8x256xf32> to vector<8x192xf32>
    %59 = arith.negf %58 : vector<8x192xf32>
    %60 = math.exp %59 : vector<8x192xf32>
    %cst_18 = arith.constant 1.000000e+00 : f32
    %61 = vector.broadcast %cst_18 : f32 to vector<8x192xf32>
    %62 = arith.addf %61, %60 : vector<8x192xf32>
    %63 = arith.divf %61, %62 : vector<8x192xf32>
    %64 = vector.extract_strided_slice %57 {offsets = [0, 192], sizes = [8, 64], strides = [1, 1]} : vector<8x256xf32> to vector<8x64xf32>
    %65 = math.tanh %64 : vector<8x64xf32>
    %66 = vector.extract_strided_slice %63 {offsets = [0, 0], sizes = [8, 64], strides = [1, 1]} : vector<8x192xf32> to vector<8x64xf32>
    %67 = vector.extract_strided_slice %63 {offsets = [0, 64], sizes = [8, 64], strides = [1, 1]} : vector<8x192xf32> to vector<8x64xf32>
    %68 = vector.extract_strided_slice %63 {offsets = [0, 128], sizes = [8, 64], strides = [1, 1]} : vector<8x192xf32> to vector<8x64xf32>
    %69 = arith.mulf %67, %48 : vector<8x64xf32>
    %70 = arith.mulf %66, %65 : vector<8x64xf32>
    %71 = arith.addf %69, %70 : vector<8x64xf32>
    %72 = math.tanh %71 : vector<8x64xf32>
    %73 = arith.mulf %68, %72 : vector<8x64xf32>
    %74 = vector.extract_strided_slice %73 {offsets = [0, 0], sizes = [8, 32], strides = [1, 1]} : vector<8x64xf32> to vector<8x32xf32>
    %c16 = arith.constant 16 : index
    %c0_19 = arith.constant 0 : index
    %75 = vector.load %arg15[%c16, %c0_19] : memref<64x64xf32, #tpu.memory_space<vmem>>, vector<8x32xf32>
    tpu.vector_store %arg15[%c16, %c0_19], %74 {strides = array<i32>} : memref<64x64xf32, #tpu.memory_space<vmem>>, vector<8x32xf32>,
    %76 = vector.extract_strided_slice %73 {offsets = [0, 32], sizes = [8, 32], strides = [1, 1]} : vector<8x64xf32> to vector<8x32xf32>
    %c40 = arith.constant 40 : index
    %c32_20 = arith.constant 32 : index
    %77 = vector.load %arg15[%c40, %c32_20] : memref<64x64xf32, #tpu.memory_space<vmem>>, vector<8x32xf32>
    tpu.vector_store %arg15[%c40, %c32_20], %76 {strides = array<i32>} : memref<64x64xf32, #tpu.memory_space<vmem>>, vector<8x32xf32>,
    %78 = vector.extract_strided_slice %5 {offsets = [24, 0], sizes = [8, 256], strides = [1, 1]} : vector<64x256xf32> to vector<8x256xf32>
    %cst_21 = arith.constant dense<0.000000e+00> : vector<8x256xf32>
    %79 = tpu.matmul %73, %6, %cst_21 {dimension_numbers = #tpu.dot_dimension_numbers<[1], [0], [0], [1], [0, 0, 1, 1], [], []>, precision = #tpu.contract_precision<fp32>} : vector<8x64xf32>, vector<64x256xf32>, vector<8x256xf32> -> vector<8x256xf32>
    %80 = arith.addf %78, %79 : vector<8x256xf32>
    %81 = vector.extract_strided_slice %80 {offsets = [0, 0], sizes = [8, 192], strides = [1, 1]} : vector<8x256xf32> to vector<8x192xf32>
    %82 = arith.negf %81 : vector<8x192xf32>
    %83 = math.exp %82 : vector<8x192xf32>
    %cst_22 = arith.constant 1.000000e+00 : f32
    %84 = vector.broadcast %cst_22 : f32 to vector<8x192xf32>
    %85 = arith.addf %84, %83 : vector<8x192xf32>
    %86 = arith.divf %84, %85 : vector<8x192xf32>
    %87 = vector.extract_strided_slice %80 {offsets = [0, 192], sizes = [8, 64], strides = [1, 1]} : vector<8x256xf32> to vector<8x64xf32>
    %88 = math.tanh %87 : vector<8x64xf32>
    %89 = vector.extract_strided_slice %86 {offsets = [0, 0], sizes = [8, 64], strides = [1, 1]} : vector<8x192xf32> to vector<8x64xf32>
    %90 = vector.extract_strided_slice %86 {offsets = [0, 64], sizes = [8, 64], strides = [1, 1]} : vector<8x192xf32> to vector<8x64xf32>
    %91 = vector.extract_strided_slice %86 {offsets = [0, 128], sizes = [8, 64], strides = [1, 1]} : vector<8x192xf32> to vector<8x64xf32>
    %92 = arith.mulf %90, %71 : vector<8x64xf32>
    %93 = arith.mulf %89, %88 : vector<8x64xf32>
    %94 = arith.addf %92, %93 : vector<8x64xf32>
    %95 = math.tanh %94 : vector<8x64xf32>
    %96 = arith.mulf %91, %95 : vector<8x64xf32>
    %97 = vector.extract_strided_slice %96 {offsets = [0, 0], sizes = [8, 32], strides = [1, 1]} : vector<8x64xf32> to vector<8x32xf32>
    %c24 = arith.constant 24 : index
    %c0_23 = arith.constant 0 : index
    %98 = vector.load %arg15[%c24, %c0_23] : memref<64x64xf32, #tpu.memory_space<vmem>>, vector<8x32xf32>
    tpu.vector_store %arg15[%c24, %c0_23], %97 {strides = array<i32>} : memref<64x64xf32, #tpu.memory_space<vmem>>, vector<8x32xf32>,
    %99 = vector.extract_strided_slice %96 {offsets = [0, 32], sizes = [8, 32], strides = [1, 1]} : vector<8x64xf32> to vector<8x32xf32>
    %c32_24 = arith.constant 32 : index
    %c32_25 = arith.constant 32 : index
    %100 = vector.load %arg15[%c32_24, %c32_25] : memref<64x64xf32, #tpu.memory_space<vmem>>, vector<8x32xf32>
    tpu.vector_store %arg15[%c32_24, %c32_25], %99 {strides = array<i32>} : memref<64x64xf32, #tpu.memory_space<vmem>>, vector<8x32xf32>,
    %101 = vector.extract_strided_slice %5 {offsets = [32, 0], sizes = [8, 256], strides = [1, 1]} : vector<64x256xf32> to vector<8x256xf32>
    %cst_26 = arith.constant dense<0.000000e+00> : vector<8x256xf32>
    %102 = tpu.matmul %96, %6, %cst_26 {dimension_numbers = #tpu.dot_dimension_numbers<[1], [0], [0], [1], [0, 0, 1, 1], [], []>, precision = #tpu.contract_precision<fp32>} : vector<8x64xf32>, vector<64x256xf32>, vector<8x256xf32> -> vector<8x256xf32>
    %103 = arith.addf %101, %102 : vector<8x256xf32>
    %104 = vector.extract_strided_slice %103 {offsets = [0, 0], sizes = [8, 192], strides = [1, 1]} : vector<8x256xf32> to vector<8x192xf32>
    %105 = arith.negf %104 : vector<8x192xf32>
    %106 = math.exp %105 : vector<8x192xf32>
    %cst_27 = arith.constant 1.000000e+00 : f32
    %107 = vector.broadcast %cst_27 : f32 to vector<8x192xf32>
    %108 = arith.addf %107, %106 : vector<8x192xf32>
    %109 = arith.divf %107, %108 : vector<8x192xf32>
    %110 = vector.extract_strided_slice %103 {offsets = [0, 192], sizes = [8, 64], strides = [1, 1]} : vector<8x256xf32> to vector<8x64xf32>
    %111 = math.tanh %110 : vector<8x64xf32>
    %112 = vector.extract_strided_slice %109 {offsets = [0, 0], sizes = [8, 64], strides = [1, 1]} : vector<8x192xf32> to vector<8x64xf32>
    %113 = vector.extract_strided_slice %109 {offsets = [0, 64], sizes = [8, 64], strides = [1, 1]} : vector<8x192xf32> to vector<8x64xf32>
    %114 = vector.extract_strided_slice %109 {offsets = [0, 128], sizes = [8, 64], strides = [1, 1]} : vector<8x192xf32> to vector<8x64xf32>
    %115 = arith.mulf %113, %94 : vector<8x64xf32>
    %116 = arith.mulf %112, %111 : vector<8x64xf32>
    %117 = arith.addf %115, %116 : vector<8x64xf32>
    %118 = math.tanh %117 : vector<8x64xf32>
    %119 = arith.mulf %114, %118 : vector<8x64xf32>
    %120 = vector.extract_strided_slice %119 {offsets = [0, 0], sizes = [8, 32], strides = [1, 1]} : vector<8x64xf32> to vector<8x32xf32>
    %c32_28 = arith.constant 32 : index
    %c0_29 = arith.constant 0 : index
    %121 = vector.load %arg15[%c32_28, %c0_29] : memref<64x64xf32, #tpu.memory_space<vmem>>, vector<8x32xf32>
    tpu.vector_store %arg15[%c32_28, %c0_29], %120 {strides = array<i32>} : memref<64x64xf32, #tpu.memory_space<vmem>>, vector<8x32xf32>,
    %122 = vector.extract_strided_slice %119 {offsets = [0, 32], sizes = [8, 32], strides = [1, 1]} : vector<8x64xf32> to vector<8x32xf32>
    %c24_30 = arith.constant 24 : index
    %c32_31 = arith.constant 32 : index
    %123 = vector.load %arg15[%c24_30, %c32_31] : memref<64x64xf32, #tpu.memory_space<vmem>>, vector<8x32xf32>
    tpu.vector_store %arg15[%c24_30, %c32_31], %122 {strides = array<i32>} : memref<64x64xf32, #tpu.memory_space<vmem>>, vector<8x32xf32>,
    %124 = vector.extract_strided_slice %5 {offsets = [40, 0], sizes = [8, 256], strides = [1, 1]} : vector<64x256xf32> to vector<8x256xf32>
    %cst_32 = arith.constant dense<0.000000e+00> : vector<8x256xf32>
    %125 = tpu.matmul %119, %6, %cst_32 {dimension_numbers = #tpu.dot_dimension_numbers<[1], [0], [0], [1], [0, 0, 1, 1], [], []>, precision = #tpu.contract_precision<fp32>} : vector<8x64xf32>, vector<64x256xf32>, vector<8x256xf32> -> vector<8x256xf32>
    %126 = arith.addf %124, %125 : vector<8x256xf32>
    %127 = vector.extract_strided_slice %126 {offsets = [0, 0], sizes = [8, 192], strides = [1, 1]} : vector<8x256xf32> to vector<8x192xf32>
    %128 = arith.negf %127 : vector<8x192xf32>
    %129 = math.exp %128 : vector<8x192xf32>
    %cst_33 = arith.constant 1.000000e+00 : f32
    %130 = vector.broadcast %cst_33 : f32 to vector<8x192xf32>
    %131 = arith.addf %130, %129 : vector<8x192xf32>
    %132 = arith.divf %130, %131 : vector<8x192xf32>
    %133 = vector.extract_strided_slice %126 {offsets = [0, 192], sizes = [8, 64], strides = [1, 1]} : vector<8x256xf32> to vector<8x64xf32>
    %134 = math.tanh %133 : vector<8x64xf32>
    %135 = vector.extract_strided_slice %132 {offsets = [0, 0], sizes = [8, 64], strides = [1, 1]} : vector<8x192xf32> to vector<8x64xf32>
    %136 = vector.extract_strided_slice %132 {offsets = [0, 64], sizes = [8, 64], strides = [1, 1]} : vector<8x192xf32> to vector<8x64xf32>
    %137 = vector.extract_strided_slice %132 {offsets = [0, 128], sizes = [8, 64], strides = [1, 1]} : vector<8x192xf32> to vector<8x64xf32>
    %138 = arith.mulf %136, %117 : vector<8x64xf32>
    %139 = arith.mulf %135, %134 : vector<8x64xf32>
    %140 = arith.addf %138, %139 : vector<8x64xf32>
    %141 = math.tanh %140 : vector<8x64xf32>
    %142 = arith.mulf %137, %141 : vector<8x64xf32>
    %143 = vector.extract_strided_slice %142 {offsets = [0, 0], sizes = [8, 32], strides = [1, 1]} : vector<8x64xf32> to vector<8x32xf32>
    %c40_34 = arith.constant 40 : index
    %c0_35 = arith.constant 0 : index
    %144 = vector.load %arg15[%c40_34, %c0_35] : memref<64x64xf32, #tpu.memory_space<vmem>>, vector<8x32xf32>
    tpu.vector_store %arg15[%c40_34, %c0_35], %143 {strides = array<i32>} : memref<64x64xf32, #tpu.memory_space<vmem>>, vector<8x32xf32>,
    %145 = vector.extract_strided_slice %142 {offsets = [0, 32], sizes = [8, 32], strides = [1, 1]} : vector<8x64xf32> to vector<8x32xf32>
    %c16_36 = arith.constant 16 : index
    %c32_37 = arith.constant 32 : index
    %146 = vector.load %arg15[%c16_36, %c32_37] : memref<64x64xf32, #tpu.memory_space<vmem>>, vector<8x32xf32>
    tpu.vector_store %arg15[%c16_36, %c32_37], %145 {strides = array<i32>} : memref<64x64xf32, #tpu.memory_space<vmem>>, vector<8x32xf32>,
    %147 = vector.extract_strided_slice %5 {offsets = [48, 0], sizes = [8, 256], strides = [1, 1]} : vector<64x256xf32> to vector<8x256xf32>
    %cst_38 = arith.constant dense<0.000000e+00> : vector<8x256xf32>
    %148 = tpu.matmul %142, %6, %cst_38 {dimension_numbers = #tpu.dot_dimension_numbers<[1], [0], [0], [1], [0, 0, 1, 1], [], []>, precision = #tpu.contract_precision<fp32>} : vector<8x64xf32>, vector<64x256xf32>, vector<8x256xf32> -> vector<8x256xf32>
    %149 = arith.addf %147, %148 : vector<8x256xf32>
    %150 = vector.extract_strided_slice %149 {offsets = [0, 0], sizes = [8, 192], strides = [1, 1]} : vector<8x256xf32> to vector<8x192xf32>
    %151 = arith.negf %150 : vector<8x192xf32>
    %152 = math.exp %151 : vector<8x192xf32>
    %cst_39 = arith.constant 1.000000e+00 : f32
    %153 = vector.broadcast %cst_39 : f32 to vector<8x192xf32>
    %154 = arith.addf %153, %152 : vector<8x192xf32>
    %155 = arith.divf %153, %154 : vector<8x192xf32>
    %156 = vector.extract_strided_slice %149 {offsets = [0, 192], sizes = [8, 64], strides = [1, 1]} : vector<8x256xf32> to vector<8x64xf32>
    %157 = math.tanh %156 : vector<8x64xf32>
    %158 = vector.extract_strided_slice %155 {offsets = [0, 0], sizes = [8, 64], strides = [1, 1]} : vector<8x192xf32> to vector<8x64xf32>
    %159 = vector.extract_strided_slice %155 {offsets = [0, 64], sizes = [8, 64], strides = [1, 1]} : vector<8x192xf32> to vector<8x64xf32>
    %160 = vector.extract_strided_slice %155 {offsets = [0, 128], sizes = [8, 64], strides = [1, 1]} : vector<8x192xf32> to vector<8x64xf32>
    %161 = arith.mulf %159, %140 : vector<8x64xf32>
    %162 = arith.mulf %158, %157 : vector<8x64xf32>
    %163 = arith.addf %161, %162 : vector<8x64xf32>
    %164 = math.tanh %163 : vector<8x64xf32>
    %165 = arith.mulf %160, %164 : vector<8x64xf32>
    %166 = vector.extract_strided_slice %165 {offsets = [0, 0], sizes = [8, 32], strides = [1, 1]} : vector<8x64xf32> to vector<8x32xf32>
    %c48_40 = arith.constant 48 : index
    %c0_41 = arith.constant 0 : index
    %167 = vector.load %arg15[%c48_40, %c0_41] : memref<64x64xf32, #tpu.memory_space<vmem>>, vector<8x32xf32>
    tpu.vector_store %arg15[%c48_40, %c0_41], %166 {strides = array<i32>} : memref<64x64xf32, #tpu.memory_space<vmem>>, vector<8x32xf32>,
    %168 = vector.extract_strided_slice %165 {offsets = [0, 32], sizes = [8, 32], strides = [1, 1]} : vector<8x64xf32> to vector<8x32xf32>
    %c8_42 = arith.constant 8 : index
    %c32_43 = arith.constant 32 : index
    %169 = vector.load %arg15[%c8_42, %c32_43] : memref<64x64xf32, #tpu.memory_space<vmem>>, vector<8x32xf32>
    tpu.vector_store %arg15[%c8_42, %c32_43], %168 {strides = array<i32>} : memref<64x64xf32, #tpu.memory_space<vmem>>, vector<8x32xf32>,
    %170 = vector.extract_strided_slice %5 {offsets = [56, 0], sizes = [8, 256], strides = [1, 1]} : vector<64x256xf32> to vector<8x256xf32>
    %cst_44 = arith.constant dense<0.000000e+00> : vector<8x256xf32>
    %171 = tpu.matmul %165, %6, %cst_44 {dimension_numbers = #tpu.dot_dimension_numbers<[1], [0], [0], [1], [0, 0, 1, 1], [], []>, precision = #tpu.contract_precision<fp32>} : vector<8x64xf32>, vector<64x256xf32>, vector<8x256xf32> -> vector<8x256xf32>
    %172 = arith.addf %170, %171 : vector<8x256xf32>
    %173 = vector.extract_strided_slice %172 {offsets = [0, 0], sizes = [8, 192], strides = [1, 1]} : vector<8x256xf32> to vector<8x192xf32>
    %174 = arith.negf %173 : vector<8x192xf32>
    %175 = math.exp %174 : vector<8x192xf32>
    %cst_45 = arith.constant 1.000000e+00 : f32
    %176 = vector.broadcast %cst_45 : f32 to vector<8x192xf32>
    %177 = arith.addf %176, %175 : vector<8x192xf32>
    %178 = arith.divf %176, %177 : vector<8x192xf32>
    %179 = vector.extract_strided_slice %172 {offsets = [0, 192], sizes = [8, 64], strides = [1, 1]} : vector<8x256xf32> to vector<8x64xf32>
    %180 = math.tanh %179 : vector<8x64xf32>
    %181 = vector.extract_strided_slice %178 {offsets = [0, 0], sizes = [8, 64], strides = [1, 1]} : vector<8x192xf32> to vector<8x64xf32>
    %182 = vector.extract_strided_slice %178 {offsets = [0, 64], sizes = [8, 64], strides = [1, 1]} : vector<8x192xf32> to vector<8x64xf32>
    %183 = vector.extract_strided_slice %178 {offsets = [0, 128], sizes = [8, 64], strides = [1, 1]} : vector<8x192xf32> to vector<8x64xf32>
    %184 = arith.mulf %182, %163 : vector<8x64xf32>
    %185 = arith.mulf %181, %180 : vector<8x64xf32>
    %186 = arith.addf %184, %185 : vector<8x64xf32>
    %187 = math.tanh %186 : vector<8x64xf32>
    %188 = arith.mulf %183, %187 : vector<8x64xf32>
    %189 = vector.extract_strided_slice %188 {offsets = [0, 0], sizes = [8, 32], strides = [1, 1]} : vector<8x64xf32> to vector<8x32xf32>
    %c56_46 = arith.constant 56 : index
    %c0_47 = arith.constant 0 : index
    %190 = vector.load %arg15[%c56_46, %c0_47] : memref<64x64xf32, #tpu.memory_space<vmem>>, vector<8x32xf32>
    tpu.vector_store %arg15[%c56_46, %c0_47], %189 {strides = array<i32>} : memref<64x64xf32, #tpu.memory_space<vmem>>, vector<8x32xf32>,
    %191 = vector.extract_strided_slice %188 {offsets = [0, 32], sizes = [8, 32], strides = [1, 1]} : vector<8x64xf32> to vector<8x32xf32>
    %c0_48 = arith.constant 0 : index
    %c32_49 = arith.constant 32 : index
    %192 = vector.load %arg15[%c0_48, %c32_49] : memref<64x64xf32, #tpu.memory_space<vmem>>, vector<8x32xf32>
    tpu.vector_store %arg15[%c0_48, %c32_49], %191 {strides = array<i32>} : memref<64x64xf32, #tpu.memory_space<vmem>>, vector<8x32xf32>,
    %c0_50 = arith.constant 0 : index
    %c0_51 = arith.constant 0 : index
    %193 = vector.load %arg15[%c0_50, %c0_51] : memref<64x64xf32, #tpu.memory_space<vmem>>, vector<64x64xf32>
    %c0_52 = arith.constant 0 : index
    %c0_53 = arith.constant 0 : index
    %194 = vector.load %arg4[%c0_52, %c0_53] : memref<64x32xf32, #tpu.memory_space<vmem>>, vector<64x32xf32>
    %cst_54 = arith.constant dense<0.000000e+00> : vector<64x32xf32>
    %195 = tpu.matmul %193, %194, %cst_54 {dimension_numbers = #tpu.dot_dimension_numbers<[1], [0], [0], [1], [0, 0, 1, 1], [], []>, precision = #tpu.contract_precision<fp32>} : vector<64x64xf32>, vector<64x32xf32>, vector<64x32xf32> -> vector<64x32xf32>
    %c0_55 = arith.constant 0 : index
    %c0_56 = arith.constant 0 : index
    %196 = vector.load %arg5[%c0_55, %c0_56] : memref<1x32xf32, #tpu.memory_space<vmem>>, vector<1x32xf32>
    %197 = vector.broadcast %196 : vector<1x32xf32> to vector<64x32xf32>
    %198 = arith.addf %195, %197 : vector<64x32xf32>
    %199 = vector.extract_strided_slice %0 {offsets = [0, 0], sizes = [64, 32], strides = [1, 1]} : vector<64x64xf32> to vector<64x32xf32>
    %200 = arith.addf %198, %199 : vector<64x32xf32>
    %cst_57 = arith.constant 0.707106769 : f32
    %201 = vector.broadcast %cst_57 : f32 to vector<64x32xf32>
    %202 = arith.mulf %200, %201 : vector<64x32xf32>
    %203 = arith.mulf %202, %202 : vector<64x32xf32>
    %cst_58 = arith.constant dense<0.000000e+00> : vector<64xf32>
    %204 = vector.multi_reduction <add>, %203, %cst_58 [1] : vector<64x32xf32> to vector<64xf32>
    %205 = vector.shape_cast %204 : vector<64xf32> to vector<64x1xf32>
    %cst_59 = arith.constant 1.000000e-24 : f32
    %206 = vector.broadcast %cst_59 : f32 to vector<64x1xf32>
    %207 = arith.maximumf %205, %206 : vector<64x1xf32>
    %208 = math.rsqrt %207 : vector<64x1xf32>
    %209 = vector.broadcast %208 : vector<64x1xf32> to vector<64x32xf32>
    %210 = arith.mulf %202, %209 : vector<64x32xf32>
    %211 = vector.extract_strided_slice %210 {offsets = [0, 0], sizes = [8, 32], strides = [1, 1]} : vector<64x32xf32> to vector<8x32xf32>
    %212 = vector.extract_strided_slice %210 {offsets = [8, 0], sizes = [8, 32], strides = [1, 1]} : vector<64x32xf32> to vector<8x32xf32>
    %213 = vector.extract_strided_slice %210 {offsets = [16, 0], sizes = [8, 32], strides = [1, 1]} : vector<64x32xf32> to vector<8x32xf32>
    %214 = vector.extract_strided_slice %210 {offsets = [24, 0], sizes = [8, 32], strides = [1, 1]} : vector<64x32xf32> to vector<8x32xf32>
    %215 = vector.extract_strided_slice %210 {offsets = [32, 0], sizes = [8, 32], strides = [1, 1]} : vector<64x32xf32> to vector<8x32xf32>
    %216 = vector.extract_strided_slice %210 {offsets = [40, 0], sizes = [8, 32], strides = [1, 1]} : vector<64x32xf32> to vector<8x32xf32>
    %217 = vector.extract_strided_slice %210 {offsets = [48, 0], sizes = [8, 32], strides = [1, 1]} : vector<64x32xf32> to vector<8x32xf32>
    %218 = vector.extract_strided_slice %210 {offsets = [56, 0], sizes = [8, 32], strides = [1, 1]} : vector<64x32xf32> to vector<8x32xf32>
    %219 = arith.addf %211, %212 : vector<8x32xf32>
    %220 = arith.addf %213, %214 : vector<8x32xf32>
    %221 = arith.addf %215, %216 : vector<8x32xf32>
    %222 = arith.addf %217, %218 : vector<8x32xf32>
    %223 = arith.addf %219, %220 : vector<8x32xf32>
    %224 = arith.addf %221, %222 : vector<8x32xf32>
    %225 = arith.addf %223, %224 : vector<8x32xf32>
    %cst_60 = arith.constant 1.250000e-01 : f32
    %226 = vector.broadcast %cst_60 : f32 to vector<8x32xf32>
    %227 = arith.mulf %225, %226 : vector<8x32xf32>
    %228 = arith.mulf %227, %227 : vector<8x32xf32>
    %cst_61 = arith.constant dense<0.000000e+00> : vector<8xf32>
    %229 = vector.multi_reduction <add>, %228, %cst_61 [1] : vector<8x32xf32> to vector<8xf32>
    %230 = vector.shape_cast %229 : vector<8xf32> to vector<8x1xf32>
    %cst_62 = arith.constant 1.000000e-24 : f32
    %231 = vector.broadcast %cst_62 : f32 to vector<8x1xf32>
    %232 = arith.maximumf %230, %231 : vector<8x1xf32>
    %233 = math.rsqrt %232 : vector<8x1xf32>
    %234 = vector.broadcast %233 : vector<8x1xf32> to vector<8x32xf32>
    %235 = arith.mulf %227, %234 : vector<8x32xf32>
    %c0_63 = arith.constant 0 : index
    %c0_64 = arith.constant 0 : index
    %236 = vector.load %arg6[%c0_63, %c0_64] : memref<32x64xf32, #tpu.memory_space<vmem>>, vector<32x64xf32>
    %cst_65 = arith.constant dense<0.000000e+00> : vector<8x64xf32>
    %237 = tpu.matmul %235, %236, %cst_65 {dimension_numbers = #tpu.dot_dimension_numbers<[1], [0], [0], [1], [0, 0, 1, 1], [], []>, precision = #tpu.contract_precision<fp32>} : vector<8x32xf32>, vector<32x64xf32>, vector<8x64xf32> -> vector<8x64xf32>
    %c0_66 = arith.constant 0 : index
    %c0_67 = arith.constant 0 : index
    %238 = vector.load %arg7[%c0_66, %c0_67] : memref<1x64xf32, #tpu.memory_space<vmem>>, vector<1x64xf32>
    %239 = vector.broadcast %238 : vector<1x64xf32> to vector<8x64xf32>
    %240 = arith.addf %237, %239 : vector<8x64xf32>
    %cst_68 = arith.constant 0.000000e+00 : f32
    %241 = vector.broadcast %cst_68 : f32 to vector<8x64xf32>
    %242 = arith.cmpf oge, %240, %241 : vector<8x64xf32>
    %c0_69 = arith.constant 0 : index
    %c0_70 = arith.constant 0 : index
    %243 = vector.load %arg8[%c0_69, %c0_70] : memref<1x64xf32, #tpu.memory_space<vmem>>, vector<1x64xf32>
    %244 = vector.broadcast %243 : vector<1x64xf32> to vector<8x64xf32>
    %245 = arith.mulf %244, %240 : vector<8x64xf32>
    %246 = arith.select %242, %240, %245 : vector<8x64xi1>, vector<8x64xf32>
    %c0_71 = arith.constant 0 : index
    %c0_72 = arith.constant 0 : index
    %247 = vector.load %arg9[%c0_71, %c0_72] : memref<64x32xf32, #tpu.memory_space<vmem>>, vector<64x32xf32>
    %cst_73 = arith.constant dense<0.000000e+00> : vector<8x32xf32>
    %248 = tpu.matmul %246, %247, %cst_73 {dimension_numbers = #tpu.dot_dimension_numbers<[1], [0], [0], [1], [0, 0, 1, 1], [], []>, precision = #tpu.contract_precision<fp32>} : vector<8x64xf32>, vector<64x32xf32>, vector<8x32xf32> -> vector<8x32xf32>
    %c0_74 = arith.constant 0 : index
    %c0_75 = arith.constant 0 : index
    %249 = vector.load %arg10[%c0_74, %c0_75] : memref<1x32xf32, #tpu.memory_space<vmem>>, vector<1x32xf32>
    %250 = vector.broadcast %249 : vector<1x32xf32> to vector<8x32xf32>
    %251 = arith.addf %248, %250 : vector<8x32xf32>
    %cst_76 = arith.constant 0.000000e+00 : f32
    %252 = vector.broadcast %cst_76 : f32 to vector<8x32xf32>
    %253 = arith.cmpf oge, %251, %252 : vector<8x32xf32>
    %c0_77 = arith.constant 0 : index
    %c0_78 = arith.constant 0 : index
    %254 = vector.load %arg11[%c0_77, %c0_78] : memref<1x32xf32, #tpu.memory_space<vmem>>, vector<1x32xf32>
    %255 = vector.broadcast %254 : vector<1x32xf32> to vector<8x32xf32>
    %256 = arith.mulf %255, %251 : vector<8x32xf32>
    %257 = arith.select %253, %251, %256 : vector<8x32xi1>, vector<8x32xf32>
    %258 = arith.addf %235, %257 : vector<8x32xf32>
    %cst_79 = arith.constant 0.707106769 : f32
    %259 = vector.broadcast %cst_79 : f32 to vector<8x32xf32>
    %260 = arith.mulf %258, %259 : vector<8x32xf32>
    %c0_80 = arith.constant 0 : index
    %c0_81 = arith.constant 0 : index
    %261 = vector.load %arg12[%c0_80, %c0_81] : memref<1x32xf32, #tpu.memory_space<vmem>>, vector<1x32xf32>
    %262 = vector.broadcast %261 : vector<1x32xf32> to vector<8x32xf32>
    %263 = arith.mulf %260, %262 : vector<8x32xf32>
    %cst_82 = arith.constant dense<0.000000e+00> : vector<8xf32>
    %264 = vector.multi_reduction <add>, %263, %cst_82 [1] : vector<8x32xf32> to vector<8xf32>
    %265 = vector.shape_cast %264 : vector<8xf32> to vector<8x1xf32>
    %c0_83 = arith.constant 0 : index
    %c0_84 = arith.constant 0 : index
    %266 = vector.load %arg13[%c0_83, %c0_84] : memref<1x1xf32, #tpu.memory_space<vmem>>, vector<1x1xf32>
    %267 = vector.broadcast %266 : vector<1x1xf32> to vector<8x1xf32>
    %268 = arith.addf %265, %267 : vector<8x1xf32>
    %c0_85 = arith.constant 0 : index
    %c0_86 = arith.constant 0 : index
    %269 = vector.load %arg14[%c0_85, %c0_86] : memref<8x1xf32, #tpu.memory_space<vmem>>, vector<8x1xf32>
    tpu.vector_store %arg14[%c0_85, %c0_86], %268 {strides = array<i32>} : memref<8x1xf32, #tpu.memory_space<vmem>>, vector<8x1xf32>,
    return
  }
}

</mosaic_0001>

<bundles_post_ra>
// kernel: tpu_custom_call.1
= control target key start
LH: loop header
LB: loop body
LE: loop exit
PB: predicated region body
PF: predicated region fallthrough
CT: control target
= control target key end

     0   :  { %s9059_s0 = inlined_call_operand.hbm [shape: f32[64,64], index: 0, kind: input, shape index: {}]   ;;  %s9060_s1 = inlined_call_operand.vmem [shape: f32[64,256], index: 1, kind: input, shape index: {}]   ;;  %s9061_s2 = inlined_call_operand.vmem [shape: f32[1,256], index: 2, kind: input, shape index: {}]   ;;  %s9062_s3 = inlined_call_operand.hbm [shape: f32[64,256], index: 3, kind: input, shape index: {}]   ;;  %s9063_s4 = inlined_call_operand.vmem [shape: f32[64,32], index: 4, kind: input, shape index: {}]   ;;  %s9064_s5 = inlined_call_operand.vmem [shape: f32[1,32], index: 5, kind: input, shape index: {}]   ;;  %s9065_s6 = inlined_call_operand.vmem [shape: f32[32,64], index: 6, kind: input, shape index: {}]   ;;  %s9066_s7 = inlined_call_operand.vmem [shape: f32[1,64], index: 7, kind: input, shape index: {}]   ;;  %s9067_s8 = inlined_call_operand.vmem [shape: f32[1,64], index: 8, kind: input, shape index: {}]   ;;  %s9068_s9 = inlined_call_operand.vmem [shape: f32[64,32], index: 9, kind: input, shape index: {}]   ;;  %s9069_s10 = inlined_call_operand.vmem [shape: f32[1,32], index: 10, kind: input, shape index: {}]   ;;  %s9070_s11 = inlined_call_operand.vmem [shape: f32[1,32], index: 11, kind: input, shape index: {}]   ;;  %s9071_s12 = inlined_call_operand.vmem [shape: f32[1,32], index: 12, kind: input, shape index: {}]   ;;  %s9072_s13 = inlined_call_operand.<no memory space> [shape: f32[1,1], index: 13, kind: input, shape index: {}]   ;;  %s9073_s14 = inlined_call_operand.vmem [shape: f32[8,1], index: 14, kind: output, shape index: {}]  }
   0x1   :  { %v19_v0 = vstv %s9072_s13 }
   0x2   :  { %20 = vst [vmem:[#allocation3] sm:$0x1] %v19_v0 }
   0x3   :  { %21 = vsyncpa [#allocation5], 0  ;;  %s27_s17 = sshll.u32 %s9059_s0, 4  ;;  %s28_s17 = int_to_ptr.hbm [resolvable:$true] %s27_s17 }
   0x4   :  { %22 = vsyncpa [#allocation7], 0  ;;  %s6730_s18 = smov [#allocation4]   ;;  %s44_s22 = sshll.u32 %s9062_s3, 4  ;;  %s45_s22 = int_to_ptr.hbm [resolvable:$true] %s44_s22 }
   0x5   :  { %s29_s19 = sshll.u32 %s6730_s18, 4  ;;  %s6731_s23 = smov 128   ;;  %s30_s19 = int_to_ptr.vmem [resolvable:$true] %s29_s19 }
   0x6   :  { %s6732_s24 = smov 8   ;;  %s6733_s13 = smov [#allocation6]  }
   0x7   :  { %35 = dma.hbm_to_vmem [thread:$0]  %s28_s17, 1024, %s30_s19, [#allocation5], %s6731_s23, %s6731_s23, %s6732_s24  }
   0x8   :  { %s46_s25 = sshll.u32 %s6733_s13, 4  ;;  %s6734_s26 = smov 256   ;;  %s47_s25 = int_to_ptr.vmem [resolvable:$true] %s46_s25 }
   0x9   :  { %s6735_s27 = smov 16  }
   0xa   :  { %52 = dma.hbm_to_vmem [thread:$0]  %s45_s22, 2048, %s47_s25, [#allocation7], %s6734_s26, %s6734_s26, %s6735_s27  }
   0xb   :  { %6726 = dma.done.wait [#allocation5], 1024  }
   0xc   :  { %6727 = vsyncadd [#allocation5], 4294966272 }
   0xd   :  { %6728 = dma.done.wait [#allocation7], 2048  }
   0xe   :  { %6729 = vsyncadd [#allocation7], 4294965248  ;;  %v103_v1 = vld [vmem:[%s9060_s1 + $0x70] sm:$0xff]  ;;  %v101_v2 = vld [vmem:[%s9060_s1 + $0x60] sm:$0xff]  ;;  %vm111_vm0 = vcmask 523264   ;;  %vm1595_vm9 = vcmask 261120  }
   0xf   :  { %v99_v3 = vld [vmem:[%s9060_s1 + $0x50] sm:$0xff]  ;;  %v6831_v4 = vand.u32 4294901760, %v103_v1  ;;  %v6833_v5 = vand.u32 4294901760, %v101_v2  ;;  %v97_v7 = vld [vmem:[%s9060_s1 + $0x40] sm:$0xff]  ;;  %v104_v32 = vld [vmem:[%s9060_s1 + $0x78] sm:$0xff]  ;;  %vm1597_vm10 = vcmask 523520  }
  0x10   :  { %v6835_v6 = vand.u32 4294901760, %v99_v3  ;;  %v95_v8 = vld [vmem:[%s9060_s1 + $0x30] sm:$0xff]  ;;  %v93_v9 = vld [vmem:[%s9060_s1 + $0x20] sm:$0xff]  ;;  %v6846_v10 = vand.u32 4294901760, %v97_v7  ;;  %v102_v43 = vld [vmem:[%s9060_s1 + $0x68] sm:$0xff]  ;;  %v6933_v46 = vand.u32 4294901760, %v104_v32 }
  0x11   :  { %v6848_v11 = vand.u32 4294901760, %v95_v8  ;;  %v6850_v12 = vand.u32 4294901760, %v93_v9  ;;  %v91_v13 = vld [vmem:[%s9060_s1 + $0x10] sm:$0xff]  ;;  %v89_v14 = vld [vmem:[%s9060_s1] sm:$0xff]  ;;  %145 = vmatpush.msra.mxu0 %v6831_v4  ;;  %v6860_v16 = vsub.f32 %v103_v1, %v6831_v4  ;;  %396 = vmatpush.msra.mxu3 %v6831_v4  ;;  %v6864_v17 = vsub.f32 %v101_v2, %v6833_v5  ;;  %v100_v48 = vld [vmem:[%s9060_s1 + $0x58] sm:$0xff] }
  0x12   :  { %v81_v15 = vld [vmem:[#allocation4] sm:$0xff]  ;;  %v6867_v18 = vsub.f32 %v99_v3, %v6835_v6  ;;  %v6869_v19 = vand.u32 4294901760, %v91_v13  ;;  %v6872_v20 = vsub.f32 %v97_v7, %v6846_v10  ;;  %v6877_v22 = vand.u32 4294901760, %v89_v14  ;;  %v82_v37 = vld [vmem:[#allocation4 + $0x8] sm:$0xff]  ;;  %v83_v47 = vld [vmem:[#allocation4 + $0x10] sm:$0xff] }
  0x13   :  { %v6875_v21 = vsub.f32 %v95_v8, %v6848_v11  ;;  %v6880_v23 = vsub.f32 %v93_v9, %v6850_v12  ;;  %147 = vmatpush.msra.mxu0 %v6833_v5  ;;  %324 = vmatpush.msra.mxu2 %v6860_v16  ;;  %v235_v24 = vand.u32 4294901760, %v6860_v16  ;;  %v241_v25 = vand.u32 4294901760, %v6864_v17  ;;  %v84_v1 = vld [vmem:[#allocation4 + $0x18] sm:$0xff]  ;;  %v98_v2 = vld [vmem:[%s9060_s1 + $0x48] sm:$0xff] }
  0x14   :  { %v247_v26 = vand.u32 4294901760, %v6867_v18  ;;  %v113_v27 = vsel %vm111_vm0, %v81_v15, 0  ;;  %398 = vmatpush.msra.mxu3 %v6833_v5  ;;  %v253_v28 = vand.u32 4294901760, %v6872_v20  ;;  %v6894_v31 = vsub.f32 %v91_v13, %v6869_v19 }
  0x15   :  { %v6890_v29 = vand.u32 4294901760, %v113_v27  ;;  %v259_v30 = vand.u32 4294901760, %v6875_v21  ;;  %149 = vmatpush.msra.mxu0 %v6835_v6  ;;  %327 = vmatpush.msra.mxu2 %v6864_v17  ;;  %v236_v33 = vsub.f32 %v6860_v16, %v235_v24  ;;  %v242_v34 = vsub.f32 %v6864_v17, %v241_v25 }
  0x16   :  { %v248_v35 = vsub.f32 %v6867_v18, %v247_v26  ;;  %v265_v36 = vand.u32 4294901760, %v6880_v23  ;;  %400 = vmatpush.msra.mxu3 %v6835_v6  ;;  %v254_v41 = vsub.f32 %v6872_v20, %v253_v28  ;;  %v6921_v42 = vsub.f32 %v89_v14, %v6877_v22 }
  0x17   :  { %v6913_v38 = vsub.f32 %v113_v27, %v6890_v29  ;;  %151 = vmatpush.msra.mxu0 %v6846_v10  ;;  %v237_v39 = vand.u32 4294901760, %v236_v33  ;;  %330 = vmatpush.msra.mxu2 %v6867_v18  ;;  %v243_v40 = vand.u32 4294901760, %v242_v34  ;;  %v260_v45 = vsub.f32 %v6875_v21, %v259_v30 }
  0x18   :  { %402 = vmatpush.msra.mxu3 %v6846_v10  ;;  %v249_v49 = vand.u32 4294901760, %v248_v35  ;;  %v266_v50 = vsub.f32 %v6880_v23, %v265_v36  ;;  %v271_v51 = vand.u32 4294901760, %v6894_v31  ;;  %v116_v52 = vsel %vm111_vm0, %v82_v37, 0 }
  0x19   :  { %v6928_v44 = vand.u32 4294901760, %v6913_v38  ;;  %153 = vmatpush.msra.mxu0 %v6848_v11  ;;  %238 = vmatpush.msra.mxu1 %v237_v39  ;;  %v6949_v54 = vsub.f32 %v104_v32, %v6933_v46  ;;  %v6951_v55 = vand.u32 4294901760, %v116_v52  ;;  %v6953_v56 = vand.u32 4294901760, %v102_v43 }
  0x1a   :  { %333 = vmatpush.msra.mxu2 %v6872_v20  ;;  %404 = vmatpush.msra.mxu3 %v6848_v11  ;;  %v255_v57 = vand.u32 4294901760, %v254_v41  ;;  %v277_v58 = vand.u32 4294901760, %v6921_v42  ;;  %v119_v59 = vsel %vm111_vm0, %v83_v47, 0  ;;  %v6958_v60 = vand.u32 4294901760, %v100_v48 }
  0x1b   :  { %v163_v53 = vsub.f32 %v6913_v38, %v6928_v44  ;;  %155 = vmatpush.msra.mxu0 %v6850_v12  ;;  %244 = vmatpush.msra.mxu1 %v243_v40  ;;  %v689_v62 = vand.u32 4294901760, %v6949_v54  ;;  %v6966_v63 = vsub.f32 %v116_v52, %v6951_v55  ;;  %v6969_v0 = vsub.f32 %v102_v43, %v6953_v56  ;;  %v96_v52 = vld [vmem:[%s9060_s1 + $0x38] sm:$0xff] }
  0x1c   :  { %336 = vmatpush.msra.mxu2 %v6875_v21  ;;  %406 = vmatpush.msra.mxu3 %v6850_v12  ;;  %v261_v3 = vand.u32 4294901760, %v260_v45  ;;  %v272_v7 = vsub.f32 %v6894_v31, %v271_v51  ;;  %v6978_v8 = vand.u32 4294901760, %v119_v59  ;;  %v6981_v9 = vsub.f32 %v100_v48, %v6958_v60 }
  0x1d   :  { %v6962_v61 = vand.u32 4294901760, %v163_v53  ;;  %157 = vmatpush.msra.mxu0 %v6869_v19  ;;  %250 = vmatpush.msra.mxu1 %v249_v49  ;;  %v690_v13 = vsub.f32 %v6949_v54, %v689_v62  ;;  %v6989_v14 = vand.u32 4294901760, %v6966_v63  ;;  %v695_v15 = vand.u32 4294901760, %v6969_v0 }
  0x1e   :  { %339 = vmatpush.msra.mxu2 %v6880_v23  ;;  %408 = vmatpush.msra.mxu3 %v6869_v19  ;;  %v267_v27 = vand.u32 4294901760, %v266_v50  ;;  %v278_v32 = vsub.f32 %v6921_v42, %v277_v58  ;;  %v122_v33 = vsel %vm111_vm0, %v84_v1, 0  ;;  %v6997_v34 = vand.u32 4294901760, %v98_v2  ;;  %v87_v23 = vld [vmem:[#allocation4 + $0x30] sm:$0xff] }
  0x1f   :  { %159 = vmatpush.msra.mxu0 %v6877_v22  ;;  %256 = vmatpush.msra.mxu1 %v255_v57  ;;  %v171_v35 = vsub.f32 %v6966_v63, %v6989_v14  ;;  %v696_v37 = vsub.f32 %v6969_v0, %v695_v15  ;;  %v7007_v39 = vsub.f32 %v119_v59, %v6978_v8  ;;  %v701_v40 = vand.u32 4294901760, %v6981_v9 }
  0x20   :  { %165 = vmatmul.f32.vlgmr.msra.gmra.mxu0 %v6962_v61  ;;  %342 = vmatpush.msra.mxu2 %v6894_v31  ;;  %v273_v41 = vand.u32 4294901760, %v272_v7  ;;  %v691_v43 = vand.u32 4294901760, %v690_v13  ;;  %v7012_v45 = vsub.f32 %v98_v2, %v6997_v34  ;;  %v279_v47 = vand.u32 4294901760, %v278_v32 }
  0x21   :  { %262 = vmatpush.msra.mxu1 %v261_v3  ;;  %410 = vmatpush.msra.mxu3 %v6877_v22  ;;  %v697_v48 = vand.u32 4294901760, %v696_v37  ;;  %v7017_v49 = vand.u32 4294901760, %v122_v33  ;;  %v7026_v53 = vand.u32 4294901760, %v171_v35  ;;  %v7029_v57 = vand.u32 4294901760, %v7007_v39  ;;  %v86_v37 = vld [vmem:[#allocation4 + $0x28] sm:$0xff] }
  0x22   :  { %345 = vmatpush.msra.mxu2 %v6921_v42  ;;  %414 = vmatmul.f32.vlgmr.msra.gmra.mxu3 %v6928_v44  ;;  %v707_v50 = vand.u32 4294901760, %v7012_v45  ;;  %v702_v59 = vsub.f32 %v6981_v9, %v701_v40  ;;  %v7034_v1 = vand.u32 4294901760, %v96_v52 }
  0x23   :  { %268 = vmatpush.msra.mxu1 %v267_v27  ;;  %348 = vmatmul.f32.vlgmr.msra.gmra.mxu2 %v6913_v38  ;;  %v179_v3 = vsub.f32 %v7007_v39, %v7029_v57  ;;  %v7050_v17 = vsub.f32 %v122_v33, %v7017_v49 }
  0x24   :  { %599 = vmatpush.msrb.mxu2 %v6933_v46  ;;  %471 = vmatpush.msrb.mxu0 %v235_v24  ;;  %v708_v16 = vsub.f32 %v7012_v45, %v707_v50  ;;  %v85_v24 = vld [vmem:[#allocation4 + $0x20] sm:$0xff]  ;;  %v7043_v2 = vsub.f32 %v96_v52, %v7034_v1  ;;  %v703_v7 = vand.u32 4294901760, %v702_v59 }
  0x25   :  { %274 = vmatpush.msra.mxu1 %v273_v41  ;;  %692 = vmatpush.msrb.mxu3 %v691_v43  ;;  %v125_v13 = vsel %vm111_vm0, %v85_v24, 0  ;;  %v7067_v33 = vand.u32 4294901760, %v179_v3  ;;  %v7070_v35 = vand.u32 4294901760, %v7050_v17  ;;  %v90_v59 = vld [vmem:[%s9060_s1 + $0x8] sm:$0xff] }
  0x26   :  { %601 = vmatpush.msrb.mxu2 %v6953_v56  ;;  %475 = vmatpush.msrb.mxu0 %v241_v25  ;;  %v713_v25 = vand.u32 4294901760, %v7043_v2  ;;  %v709_v27 = vand.u32 4294901760, %v708_v16  ;;  %v7073_v18 = vand.u32 4294901760, %v125_v13  ;;  %v7139_v42 = vand.u32 4294901760, %v90_v59 }
  0x27   :  { %280 = vmatpush.msra.mxu1 %v279_v47  ;;  %698 = vmatpush.msrb.mxu3 %v697_v48 }
  0x28   :  { %173 = vmatmul.f32.gmra.mxu0 %v7026_v53  ;;  %282 = vmatmul.f32.vlgmr.msra.gmra.mxu1 %v6890_v29  ;;  %v714_v32 = vsub.f32 %v7043_v2, %v713_v25  ;;  %v7092_v20 = vsub.f32 %v125_v13, %v7073_v18  ;;  %v730_v16 = vsub.f32 %v90_v59, %v7139_v42 }
  0x29   :  { %542 = vmatpush.msrb.mxu1 %v6831_v4  ;;  %603 = vmatpush.msrb.mxu2 %v6958_v60  ;;  %v94_v4 = vld [vmem:[%s9060_s1 + $0x28] sm:$0xff] }
  0x2a   :  { %420 = vmatmul.f32.gmra.mxu3 %v6989_v14  ;;  %479 = vmatpush.msrb.mxu0 %v247_v26  ;;  %v7075_v26 = vand.u32 4294901760, %v94_v4  ;;  %v7113_v47 = vand.u32 4294901760, %v7092_v20  ;;  %v731_v13 = vand.u32 4294901760, %v730_v16 }
  0x2b   :  { %353 = vmatmul.f32.gmra.mxu2 %v6966_v63  ;;  %544 = vmatpush.msrb.mxu1 %v6833_v5  ;;  %v715_v5 = vand.u32 4294901760, %v714_v32 }
  0x2c   :  { %704 = vmatpush.msrb.mxu3 %v703_v7  ;;  %605 = vmatpush.msrb.mxu2 %v6997_v34  ;;  %v7082_v41 = vsub.f32 %v94_v4, %v7075_v26  ;;  %v732_v32 = vsub.f32 %v730_v16, %v731_v13 }
  0x2d   :  { %546 = vmatpush.msrb.mxu1 %v6835_v6  ;;  %483 = vmatpush.msrb.mxu0 %v253_v28  ;;  %v187_v6 = vsub.f32 %v7050_v17, %v7070_v35  ;;  %v128_v28 = vsel %vm111_vm0, %v86_v37, 0 }
  0x2e   :  { %710 = vmatpush.msrb.mxu3 %v709_v27  ;;  %607 = vmatpush.msrb.mxu2 %v7034_v1  ;;  %v719_v43 = vand.u32 4294901760, %v7082_v41  ;;  %v7103_v21 = vand.u32 4294901760, %v128_v28  ;;  %v88_v27 = vld [vmem:[#allocation4 + $0x38] sm:$0xff] }
  0x2f   :  { %548 = vmatpush.msrb.mxu1 %v6846_v10  ;;  %487 = vmatpush.msrb.mxu0 %v259_v30  ;;  %v92_v30 = vld [vmem:[%s9060_s1 + $0x18] sm:$0xff]  ;;  %v134_v4 = vsel %vm111_vm0, %v88_v27, 0 }
  0x30   :  { %181 = vmatmul.f32.gmra.mxu0 %v7067_v33  ;;  %286 = vmatmul.f32.gmra.mxu1 %v6951_v55  ;;  %v720_v10 = vsub.f32 %v7082_v41, %v719_v43  ;;  %v7116_v52 = vand.u32 4294901760, %v92_v30  ;;  %v7132_v31 = vsub.f32 %v128_v28, %v7103_v21  ;;  %v7184_v37 = vand.u32 4294901760, %v134_v4 }
  0x31   :  { %716 = vmatpush.msrb.mxu3 %v715_v5  ;;  %550 = vmatpush.msrb.mxu1 %v6848_v11  ;;  %v7110_v11 = vand.u32 4294901760, %v187_v6  ;;  %v733_v5 = vand.u32 4294901760, %v732_v32  ;;  %v1054_v6 = vld [vmem:[#allocation6 + $0x50] sm:$0xff] }
  0x32   :  { %426 = vmatmul.f32.gmra.mxu3 %v7029_v57  ;;  %609 = vmatpush.msrb.mxu2 %v7075_v26  ;;  %v721_v48 = vand.u32 4294901760, %v720_v10  ;;  %v7152_v3 = vand.u32 4294901760, %v7132_v31 }
  0x33   :  { %358 = vmatmul.f32.gmra.mxu2 %v7007_v39  ;;  %491 = vmatpush.msrb.mxu0 %v265_v36  ;;  %v7122_v36 = vsub.f32 %v92_v30, %v7116_v52 }
  0x34   :  { %552 = vmatpush.msrb.mxu1 %v6850_v12  ;;  %722 = vmatpush.msrb.mxu3 %v721_v48  ;;  %v195_v12 = vsub.f32 %v7092_v20, %v7113_v47  ;;  %v7306_v48 = vld [vmem:[%s9061_s2] sm:$0x3]  ;;  %s6737_s2 = smov 64  }
  0x35   :  { %495 = vmatpush.msrb.mxu0 %v271_v51  ;;  %611 = vmatpush.msrb.mxu2 %v7116_v52  ;;  %v725_v51 = vand.u32 4294901760, %v7122_v36  ;;  %9176 = vst [vmem:[#allocation15_spill] sm:$0xff] %v7306_v48 }
  0x36   :  { %554 = vmatpush.msrb.mxu1 %v6869_v19  ;;  %v131_v19 = vsel %vm111_vm0, %v87_v23, 0  ;;  %v7149_v24 = vand.u32 4294901760, %v195_v12 }
  0x37   :  { %499 = vmatpush.msrb.mxu0 %v277_v58  ;;  %v726_v58 = vsub.f32 %v7122_v36, %v725_v51  ;;  %613 = vmatpush.msrb.mxu2 %v7139_v42 }
  0x38   :  { %189 = vmatmul.f32.gmra.mxu0 %v7110_v11  ;;  %290 = vmatmul.f32.gmra.mxu1 %v6978_v8 }
  0x39   :  { %556 = vmatpush.msrb.mxu1 %v6877_v22  ;;  %778 = vmatpush.msra.mxu0 %v6949_v54  ;;  %v7154_v22 = vand.u32 4294901760, %v131_v19  ;;  %v727_v7 = vand.u32 4294901760, %v726_v58  ;;  %v203_v54 = vsub.f32 %v7132_v31, %v7152_v3 }
  0x3a   :  { %432 = vmatmul.f32.gmra.mxu3 %v7070_v35  ;;  %925 = vmatpush.msra.mxu2 %v689_v62 }
  0x3b   :  { %850 = vmatpush.msra.mxu1 %v6933_v46  ;;  %363 = vmatmul.f32.gmra.mxu2 %v7050_v17  ;;  %v7170_v62 = vsub.f32 %v131_v19, %v7154_v22 }
  0x3c   :  { %781 = vmatpush.msra.mxu0 %v6969_v0  ;;  %728 = vmatpush.msrb.mxu3 %v727_v7  ;;  %v7179_v0 = vand.u32 4294901760, %v203_v54 }
  0x3d   :  { %852 = vmatpush.msra.mxu1 %v6953_v56  ;;  %929 = vmatpush.msra.mxu2 %v695_v15  ;;  %v7182_v15 = vand.u32 4294901760, %v7170_v62 }
  0x3e   :  { %784 = vmatpush.msra.mxu0 %v6981_v9  ;;  %734 = vmatpush.msrb.mxu3 %v733_v5  ;;  %v7201_v9 = vsub.f32 %v134_v4, %v7184_v37 }
  0x3f   :  { %854 = vmatpush.msra.mxu1 %v6958_v60  ;;  %933 = vmatpush.msra.mxu2 %v701_v40 }
  0x40   :  { %787 = vmatpush.msra.mxu0 %v7012_v45  ;;  %294 = vmatmul.f32.gmra.mxu1 %v7017_v49  ;;  %v7213_v40 = vand.u32 4294901760, %v7201_v9 }
  0x41   :  { %197 = vmatmul.f32.gmra.mxu0 %v7149_v24  ;;  %856 = vmatpush.msra.mxu1 %v6997_v34 }
  0x42   :  { %438 = vmatmul.f32.gmra.mxu3 %v7113_v47  ;;  %790 = vmatpush.msra.mxu0 %v7043_v2 }
  0x43   :  { %368 = vmatmul.f32.gmra.mxu2 %v7092_v20  ;;  %996 = vmatpush.msra.mxu3 %v6933_v46  ;;  %v211_v46 = vsub.f32 %v7170_v62, %v7182_v15 }
  0x44   :  { %937 = vmatpush.msra.mxu2 %v707_v50  ;;  %858 = vmatpush.msra.mxu1 %v7034_v1 }
  0x45   :  { %793 = vmatpush.msra.mxu0 %v7082_v41  ;;  %998 = vmatpush.msra.mxu3 %v6953_v56  ;;  %v7210_v56 = vand.u32 4294901760, %v211_v46 }
  0x46   :  { %941 = vmatpush.msra.mxu2 %v713_v25  ;;  %860 = vmatpush.msra.mxu1 %v7075_v26 }
  0x47   :  { %796 = vmatpush.msra.mxu0 %v7122_v36  ;;  %1000 = vmatpush.msra.mxu3 %v6958_v60  ;;  %v219_v60 = vsub.f32 %v7201_v9, %v7213_v40 }
  0x48   :  { %298 = vmatmul.f32.gmra.mxu1 %v7073_v18  ;;  %945 = vmatpush.msra.mxu2 %v719_v43  ;;  %v7286_v43 = vand.u32 4294901760, %v1054_v6 }
  0x49   :  { %205 = vmatmul.f32.gmra.mxu0 %v7179_v0  ;;  %862 = vmatpush.msra.mxu1 %v7116_v52 }
  0x4a   :  { %444 = vmatmul.f32.gmra.mxu3 %v7152_v3  ;;  %949 = vmatpush.msra.mxu2 %v725_v51  ;;  %9173 = vst [vmem:[#allocation12_spill] sm:$0xff] %v7286_v43  ;;  %v7291_v30 = vsub.f32 %v1054_v6, %v7286_v43  ;;  %v7313_v51 = vperm.slane %v7306_v48, 0 }
  0x4b   :  { %373 = vmatmul.f32.gmra.mxu2 %v7132_v31  ;;  %1002 = vmatpush.msra.mxu3 %v6997_v34  ;;  %v220_v34 = vand.u32 4294901760, %v219_v60  ;;  %v1048_v60 = vld [vmem:[#allocation6 + $0x20] sm:$0xff] }
  0x4c   :  { %799 = vmatpush.msra.mxu0 %v730_v16  ;;  %864 = vmatpush.msra.mxu1 %v7139_v42  ;;  %9174 = vst [vmem:[#allocation13_spill] sm:$0xff] %v7291_v30  ;;  %v1050_v16 = vld [vmem:[#allocation6 + $0x30] sm:$0xff] }
  0x4d   :  { %1004 = vmatpush.msra.mxu3 %v7034_v1  ;;  %953 = vmatpush.msra.mxu2 %v731_v13  ;;  %v1056_v1 = vld [vmem:[#allocation6 + $0x60] sm:$0xff]  ;;  %9178 = vst [vmem:[#allocation17_spill] sm:$0xff] %v7313_v51  ;;  %v7334_v7 = vand.u32 4294901760, %v1050_v16 }
  0x4e   :  { %v7266_v25 = vand.u32 4294901760, %v1056_v1 }
  0x4f   :  { %1006 = vmatpush.msra.mxu3 %v7075_v26  ;;  %9181 = vst [vmem:[#allocation20_spill] sm:$0xff] %v7334_v7  ;;  %v7339_v5 = vsub.f32 %v1050_v16, %v7334_v7 }
  0x50   :  { %302 = vmatmul.f32.gmra.mxu1 %v7103_v21  ;;  %v7271_v26 = vsub.f32 %v1056_v1, %v7266_v25 }
  0x51   :  { %213 = vmatmul.f32.gmra.mxu0 %v7210_v56  ;;  %1008 = vmatpush.msra.mxu3 %v7116_v52  ;;  %v1052_v52 = vld [vmem:[#allocation6 + $0x40] sm:$0xff]  ;;  %9183 = vst [vmem:[#allocation22_spill] sm:$0xff] %v7339_v5 }
  0x52   :  { %450 = vmatmul.f32.gmra.mxu3 %v7182_v15  ;;  %v7281_v41 = vand.u32 4294901760, %v7271_v26  ;;  %v7310_v36 = vand.u32 4294901760, %v1052_v52 }
  0x53   :  { %378 = vmatmul.f32.gmra.mxu2 %v7170_v62  ;;  %1010 = vmatpush.msra.mxu3 %v7139_v42 }
  0x54   :  { %9172 = vst [vmem:[#allocation11_spill] sm:$0xff] %v7281_v41  ;;  %v1113_v28 = vsub.f32 %v7271_v26, %v7281_v41  ;;  %v7318_v19 = vsub.f32 %v1052_v52, %v7310_v36 }
  0x55   :  { %9177 = vst [vmem:[#allocation16_spill] sm:$0xff] %v7310_v36 }
  0x56   :  { %v7288_v10 = vand.u32 4294901760, %v1113_v28  ;;  %9179 = vst [vmem:[#allocation18_spill] sm:$0xff] %v7318_v19  ;;  %v7329_v58 = vand.u32 4294901760, %v7318_v19  ;;  %v1059_v28 = vld [vmem:[#allocation6 + $0x78] sm:$0xff] }
  0x57   :  { %v7368_v16 = vand.u32 4294901760, %v1059_v28 }
  0x58   :  { %306 = vmatmul.f32.gmra.mxu1 %v7154_v22  ;;  %9180 = vst [vmem:[#allocation19_spill] sm:$0xff] %v7329_v58 }
  0x59   :  { %221 = vmatmul.f32.gmra.mxu0 %v220_v34 }
  0x5a   :  { %456 = vmatmul.f32.gmra.mxu3 %v7213_v40 }
  0x5b   :  { %383 = vmatmul.f32.gmra.mxu2 %v7201_v9 }
  0x60   :  { %310 = vmatmul.f32.gmra.mxu1 %v7184_v37 }
  0x61   :  { %501 = vmatmul.f32.vlgmr.msrb.gmra.mxu0 %v6890_v29 }
  0x62   :  { %736 = vmatmul.f32.vlgmr.msrb.gmra.mxu3 %v6890_v29 }
  0x63   :  { %619 = vmatmul.f32.vlgmr.msrb.gmra.mxu2 %v6962_v61  ;;  %v1058_v61 = vld [vmem:[#allocation6 + $0x70] sm:$0xff] }
  0x64   :  { %v7249_v45 = vand.u32 4294901760, %v1058_v61 }
  0x66   :  { %v7252_v50 = vsub.f32 %v1058_v61, %v7249_v45  ;;  %1072 = vmatpush.msrb.mxu0 %v7249_v45  ;;  %1204 = vmatpush.msrb.mxu3 %v7249_v45 }
  0x68   :  { %558 = vmatmul.f32.vlgmr.msrb.gmra.mxu1 %v6890_v29  ;;  %1167 = vmatpush.msrb.mxu2 %v7252_v50 }
  0x69   :  { %505 = vmatmul.f32.gmra.mxu0 %v6951_v55  ;;  %1206 = vmatpush.msrb.mxu3 %v7266_v25 }
  0x6a   :  { %740 = vmatmul.f32.gmra.mxu3 %v6951_v55  ;;  %1074 = vmatpush.msrb.mxu0 %v7266_v25 }
  0x6b   :  { %627 = vmatmul.f32.gmra.mxu2 %v7026_v53  ;;  %v7261_v53 = vand.u32 4294901760, %v7252_v50  ;;  %1208 = vmatpush.msrb.mxu3 %v7286_v43 }
  0x6c   :  { %1170 = vmatpush.msrb.mxu2 %v7271_v26  ;;  %1076 = vmatpush.msrb.mxu0 %v7286_v43 }
  0x6d   :  { %9171 = vst [vmem:[#allocation10_spill] sm:$0xff] %v7261_v53  ;;  %v1107_v2 = vsub.f32 %v7252_v50, %v7261_v53  ;;  %1210 = vmatpush.msrb.mxu3 %v7310_v36 }
  0x6e   :  { %1173 = vmatpush.msrb.mxu2 %v7291_v30  ;;  %1078 = vmatpush.msrb.mxu0 %v7310_v36 }
  0x6f   :  { %1212 = vmatpush.msrb.mxu3 %v7334_v7 }
  0x70   :  { %562 = vmatmul.f32.gmra.mxu1 %v6951_v55  ;;  %1176 = vmatpush.msrb.mxu2 %v7318_v19 }
  0x71   :  { %509 = vmatmul.f32.gmra.mxu0 %v6978_v8 }
  0x72   :  { %744 = vmatmul.f32.gmra.mxu3 %v6978_v8  ;;  %1080 = vmatpush.msrb.mxu0 %v7334_v7 }
  0x73   :  { %635 = vmatmul.f32.gmra.mxu2 %v7067_v33  ;;  %v7268_v33 = vand.u32 4294901760, %v1107_v2 }
  0x74   :  { %1179 = vmatpush.msrb.mxu2 %v7339_v5 }
  0x75   :  { %1109 = vmatpush.msrb.mxu1 %v7268_v33 }
  0x77   :  { %1115 = vmatpush.msrb.mxu1 %v7288_v10 }
  0x78   :  { %566 = vmatmul.f32.gmra.mxu1 %v6978_v8 }
  0x79   :  { %513 = vmatmul.f32.gmra.mxu0 %v7017_v49 }
  0x7a   :  { %748 = vmatmul.f32.gmra.mxu3 %v7017_v49 }
  0x7b   :  { %643 = vmatmul.f32.gmra.mxu2 %v7110_v11  ;;  %v7301_v11 = vand.u32 4294901760, %v7291_v30 }
  0x7d   :  { %9175 = vst [vmem:[#allocation14_spill] sm:$0xff] %v7301_v11  ;;  %v1119_v23 = vsub.f32 %v7291_v30, %v7301_v11 }
  0x7f   :  { %v7315_v59 = vand.u32 4294901760, %v1119_v23 }
  0x80   :  { %570 = vmatmul.f32.gmra.mxu1 %v7017_v49 }
  0x81   :  { %517 = vmatmul.f32.gmra.mxu0 %v7073_v18  ;;  %1121 = vmatpush.msrb.mxu1 %v7315_v59 }
  0x82   :  { %752 = vmatmul.f32.gmra.mxu3 %v7073_v18 }
  0x83   :  { %651 = vmatmul.f32.gmra.mxu2 %v7149_v24  ;;  %v1125_v24 = vsub.f32 %v7318_v19, %v7329_v58 }
  0x85   :  { %v7336_v4 = vand.u32 4294901760, %v1125_v24 }
  0x87   :  { %9182 = vst [vmem:[#allocation21_spill] sm:$0xff] %v7336_v4  ;;  %1127 = vmatpush.msrb.mxu1 %v7336_v4 }
  0x88   :  { %574 = vmatmul.f32.gmra.mxu1 %v7073_v18 }
  0x89   :  { %521 = vmatmul.f32.gmra.mxu0 %v7103_v21 }
  0x8a   :  { %756 = vmatmul.f32.gmra.mxu3 %v7103_v21 }
  0x8b   :  { %659 = vmatmul.f32.gmra.mxu2 %v7179_v0 }
  0x90   :  { %578 = vmatmul.f32.gmra.mxu1 %v7103_v21 }
  0x91   :  { %525 = vmatmul.f32.gmra.mxu0 %v7154_v22 }
  0x92   :  { %760 = vmatmul.f32.gmra.mxu3 %v7154_v22 }
  0x93   :  { %667 = vmatmul.f32.gmra.mxu2 %v7210_v56  ;;  %v7352_v56 = vand.u32 4294901760, %v7339_v5 }
  0x95   :  { %9185 = vst [vmem:[#allocation24_spill] sm:$0xff] %v7352_v56 }
  0x98   :  { %582 = vmatmul.f32.gmra.mxu1 %v7154_v22 }
  0x99   :  { %529 = vmatmul.f32.gmra.mxu0 %v7184_v37 }
  0x9a   :  { %764 = vmatmul.f32.gmra.mxu3 %v7184_v37 }
  0x9b   :  { %675 = vmatmul.f32.gmra.mxu2 %v220_v34  ;;  %v7355_v34 = vand.u32 4294901760, %v1048_v60 }
  0x9d   :  { %v166_v12 = vpop.f32.mrf.mxu0  ;;  %9186 = vst [vmem:[#allocation25_spill] sm:$0xff] %v7355_v34  ;;  %v7360_v2 = vsub.f32 %v1048_v60, %v7355_v34  ;;  %1082 = vmatpush.msrb.mxu0 %v7355_v34  ;;  %1214 = vmatpush.msrb.mxu3 %v7355_v34 }
  0x9e   :  { %v167_v42 = vadd.f32 %v166_v12, %v7313_v51 }
  0x9f   :  { %9187 = vst [vmem:[#allocation26_spill] sm:$0xff] %v7360_v2  ;;  %1182 = vmatpush.msrb.mxu2 %v7360_v2  ;;  %v7372_v24 = vand.u32 4294901760, %v7360_v2 }
  0xa0   :  { %586 = vmatmul.f32.gmra.mxu1 %v7184_v37 }
  0xa1   :  { %802 = vmatmul.f32.vlgmr.msra.gmra.mxu0 %v6913_v38  ;;  %9190 = vst [vmem:[#allocation29_spill] sm:$0xff] %v7372_v24  ;;  %v1137_v60 = vsub.f32 %v7360_v2, %v7372_v24 }
  0xa2   :  { %1012 = vmatmul.f32.vlgmr.msra.gmra.mxu3 %v6890_v29 }
  0xa3   :  { %955 = vmatmul.f32.vlgmr.msra.gmra.mxu2 %v6890_v29 }
  0xa5   :  { %v174_v38 = vpop.f32.mrf.mxu0  ;;  %v283_v13 = vpop.f32.mrf.mxu1 }
  0xa6   :  { %v284_v27 = vadd.f32 %v283_v13, %v167_v42  ;;  %v349_v32 = vpop.f32.mrf.mxu2  ;;  %v415_v54 = vpop.f32.mrf.mxu3  ;;  %v175_v0 = vadd.f32 %v174_v38, %v7313_v51  ;;  %v1044_v42 = vld [vmem:[#allocation6] sm:$0xff] }
  0xa7   :  { %v7378_v13 = vand.u32 4294901760, %v1044_v42 }
  0xa8   :  { %v350_v29 = vadd.f32 %v349_v32, %v284_v27  ;;  %868 = vmatmul.f32.vlgmr.msra.gmra.mxu1 %v6928_v44  ;;  %v1131_v44 = vsub.f32 %v7339_v5, %v7352_v56  ;;  %v1057_v27 = vld [vmem:[#allocation6 + $0x68] sm:$0xff] }
  0xa9   :  { %807 = vmatmul.f32.gmra.mxu0 %v6966_v63  ;;  %v1046_v63 = vld [vmem:[#allocation6 + $0x10] sm:$0xff]  ;;  %9192 = vst [vmem:[#allocation31_spill] sm:$0xff] %v7378_v13 }
  0xaa   :  { %v7348_v46 = vadd.f32 %v415_v54, %v350_v29  ;;  %1016 = vmatmul.f32.gmra.mxu3 %v6951_v55  ;;  %v7364_v6 = vand.u32 4294901760, %v1046_v63  ;;  %v7366_v12 = vand.u32 4294901760, %v1131_v44  ;;  %v7382_v54 = vand.u32 4294901760, %v1057_v27 }
  0xab   :  { %959 = vmatmul.f32.gmra.mxu2 %v6951_v55  ;;  %v7385_v29 = vsub.f32 %v1059_v28, %v7368_v16  ;;  %v7393_v44 = vsub.f32 %v1044_v42, %v7378_v13  ;;  %v1053_v42 = vld [vmem:[#allocation6 + $0x48] sm:$0xff] }
  0xac   :  { %9184 = vst [vmem:[#allocation23_spill] sm:$0xff] %v7348_v46  ;;  %1084 = vmatpush.msrb.mxu0 %v7364_v6  ;;  %v7376_v38 = vsub.f32 %v1046_v63, %v7364_v6  ;;  %1133 = vmatpush.msrb.mxu1 %v7366_v12  ;;  %v7408_v28 = vsub.f32 %v1057_v27, %v7382_v54 }
  0xad   :  { %v182_v61 = vpop.f32.mrf.mxu0  ;;  %v287_v1 = vpop.f32.mrf.mxu1  ;;  %9188 = vst [vmem:[#allocation27_spill] sm:$0xff] %v7364_v6  ;;  %1216 = vmatpush.msrb.mxu3 %v7364_v6 }
  0xae   :  { %v288_v52 = vadd.f32 %v287_v1, %v175_v0  ;;  %v354_v55 = vpop.f32.mrf.mxu2  ;;  %v421_v23 = vpop.f32.mrf.mxu3  ;;  %9189 = vst [vmem:[#allocation28_spill] sm:$0xff] %v7366_v12  ;;  %v183_v0 = vadd.f32 %v182_v61, %v7313_v51  ;;  %1185 = vmatpush.msrb.mxu2 %v7376_v38  ;;  %1086 = vmatpush.msrb.mxu0 %v7378_v13  ;;  %v7403_v61 = vand.u32 4294901760, %v7385_v29 }
  0xaf   :  { %9191 = vst [vmem:[#allocation30_spill] sm:$0xff] %v7376_v38  ;;  %1218 = vmatpush.msrb.mxu3 %v7378_v13 }
  0xb0   :  { %v355_v32 = vadd.f32 %v354_v55, %v288_v52  ;;  %874 = vmatmul.f32.gmra.mxu1 %v6989_v14  ;;  %9193 = vst [vmem:[#allocation32_spill] sm:$0xff] %v7393_v44  ;;  %v1055_v14 = vld [vmem:[#allocation6 + $0x58] sm:$0xff]  ;;  %v7411_v52 = vand.u32 4294901760, %v1137_v60  ;;  %1188 = vmatpush.msrb.mxu2 %v7393_v44  ;;  %v1344_v27 = vsub.f32 %v7385_v29, %v7403_v61 }
  0xb1   :  { %812 = vmatmul.f32.gmra.mxu0 %v7007_v39  ;;  %v7396_v39 = vand.u32 4294901760, %v7376_v38  ;;  %v7405_v1 = vand.u32 4294901760, %v1055_v14 }
  0xb2   :  { %v7398_v63 = vadd.f32 %v421_v23, %v355_v32  ;;  %1020 = vmatmul.f32.gmra.mxu3 %v6978_v8  ;;  %9196 = vst [vmem:[#allocation35_spill] sm:$0xff] %v7411_v52  ;;  %v7417_v23 = vand.u32 4294901760, %v7393_v44  ;;  %1237 = vmatpush.msra.mxu0 %v7261_v53  ;;  %v7426_v32 = vand.u32 4294901760, %v1053_v42  ;;  %v1051_v53 = vld [vmem:[#allocation6 + $0x38] sm:$0xff] }
  0xb3   :  { %9194 = vst [vmem:[#allocation33_spill] sm:$0xff] %v7396_v39  ;;  %963 = vmatmul.f32.gmra.mxu2 %v6978_v8  ;;  %v1143_v55 = vsub.f32 %v7376_v38, %v7396_v39  ;;  %v7424_v8 = vand.u32 4294901760, %v7408_v28  ;;  %v7429_v60 = vsub.f32 %v1055_v14, %v7405_v1  ;;  %1139 = vmatpush.msrb.mxu1 %v7411_v52  ;;  %v7441_v14 = vand.u32 4294901760, %v1344_v27 }
  0xb4   :  { %9195 = vst [vmem:[#allocation34_spill] sm:$0xff] %v7398_v63  ;;  %1309 = vmatpush.msra.mxu2 %v7368_v16  ;;  %v1149_v48 = vsub.f32 %v7393_v44, %v7417_v23  ;;  %1241 = vmatpush.msra.mxu0 %v7281_v41  ;;  %v1049_v41 = vld [vmem:[#allocation6 + $0x28] sm:$0xff] }
  0xb5   :  { %9197 = vst [vmem:[#allocation36_spill] sm:$0xff] %v7417_v23  ;;  %v7431_v51 = vpop.f32.mrf.mxu0  ;;  %v291_v63 = vpop.f32.mrf.mxu1  ;;  %v7435_v46 = vand.u32 4294901760, %v1143_v55  ;;  %v7450_v44 = vand.u32 4294901760, %v7429_v60  ;;  %1346 = vmatpush.msra.mxu3 %v7441_v14 }
  0xb6   :  { %9198 = vst [vmem:[#allocation37_spill] sm:$0xff] %v7431_v51  ;;  %v292_v38 = vadd.f32 %v291_v63, %v183_v0  ;;  %v359_v12 = vpop.f32.mrf.mxu2  ;;  %v427_v2 = vpop.f32.mrf.mxu3  ;;  %v1350_v51 = vsub.f32 %v7408_v28, %v7424_v8  ;;  %1311 = vmatpush.msra.mxu2 %v7382_v54  ;;  %v7447_v55 = vand.u32 4294901760, %v1149_v48  ;;  %v7452_v0 = vand.u32 4294901760, %v1051_v53  ;;  %1245 = vmatpush.msra.mxu0 %v7301_v11 }
  0xb7   :  { %9199 = vst [vmem:[#allocation38_spill] sm:$0xff] %v7435_v46  ;;  %1145 = vmatpush.msrb.mxu1 %v7435_v46  ;;  %v7455_v63 = vsub.f32 %v1053_v42, %v7426_v32  ;;  %v7461_v46 = vand.u32 4294901760, %v1049_v41  ;;  %v1356_v48 = vsub.f32 %v7429_v60, %v7450_v44 }
  0xb8   :  { %9200 = vst [vmem:[#allocation39_spill] sm:$0xff] %v7441_v14  ;;  %v360_v27 = vadd.f32 %v359_v12, %v292_v38  ;;  %880 = vmatmul.f32.gmra.mxu1 %v7029_v57  ;;  %v7459_v52 = vand.u32 4294901760, %v1350_v51  ;;  %v7471_v12 = vsub.f32 %v1051_v53, %v7452_v0  ;;  %1313 = vmatpush.msra.mxu2 %v7405_v1 }
  0xb9   :  { %9201 = vst [vmem:[#allocation40_spill] sm:$0xff] %v7447_v55  ;;  %817 = vmatmul.f32.gmra.mxu0 %v7050_v17  ;;  %1151 = vmatpush.msrb.mxu1 %v7447_v55  ;;  %v7468_v42 = vand.u32 4294901760, %v7455_v63  ;;  %v1047_v17 = vld [vmem:[#allocation6 + $0x18] sm:$0xff]  ;;  %v7480_v51 = vsub.f32 %v1049_v41, %v7461_v46  ;;  %v7484_v14 = vand.u32 4294901760, %v1356_v48 }
  0xba   :  { %9202 = vst [vmem:[#allocation41_spill] sm:$0xff] %v7459_v52  ;;  %v7473_v38 = vadd.f32 %v427_v2, %v360_v27  ;;  %1024 = vmatmul.f32.gmra.mxu3 %v7017_v49  ;;  %v7477_v57 = vand.u32 4294901760, %v1047_v17  ;;  %v7489_v2 = vand.u32 4294901760, %v7471_v12  ;;  %v1045_v27 = vld [vmem:[#allocation6 + $0x8] sm:$0xff]  ;;  %1249 = vmatpush.msra.mxu0 %v7329_v58 }
  0xbb   :  { %967 = vmatmul.f32.gmra.mxu2 %v7017_v49  ;;  %1280 = vmatpush.msra.mxu1 %v7249_v45  ;;  %9204 = vst [vmem:[#allocation43_spill] sm:$0xff] %v7484_v14  ;;  %v1362_v53 = vsub.f32 %v7455_v63, %v7468_v42  ;;  %v7494_v41 = vand.u32 4294901760, %v7480_v51 }
  0xbc   :  { %9203 = vst [vmem:[#allocation42_spill] sm:$0xff] %v7473_v38  ;;  %1352 = vmatpush.msra.mxu3 %v7459_v52  ;;  %v7496_v38 = vand.u32 4294901760, %v1045_v27  ;;  %v7499_v49 = vsub.f32 %v1047_v17, %v7477_v57  ;;  %v1368_v52 = vsub.f32 %v7471_v12, %v7489_v2  ;;  %1315 = vmatpush.msra.mxu2 %v7426_v32 }
  0xbd   :  { %v7503_v11 = vpop.f32.mrf.mxu1  ;;  %1282 = vmatpush.msra.mxu1 %v7266_v25  ;;  %v7507_v55 = vand.u32 4294901760, %v1362_v53  ;;  %v1374_v17 = vsub.f32 %v7480_v51, %v7494_v41  ;;  %1253 = vmatpush.msra.mxu0 %v7352_v56 }
  0xbe   :  { %v7501_v48 = vpop.f32.mrf.mxu0  ;;  %9206 = vst [vmem:[#allocation45_spill] sm:$0xff] %v7503_v11  ;;  %v7511_v4 = vpop.f32.mrf.mxu2  ;;  %1358 = vmatpush.msra.mxu3 %v7484_v14  ;;  %v7525_v53 = vsub.f32 %v1045_v27, %v7496_v38  ;;  %1317 = vmatpush.msra.mxu2 %v7452_v0 }
  0xbf   :  { %9205 = vst [vmem:[#allocation44_spill] sm:$0xff] %v7501_v48  ;;  %v7513_v5 = vpop.f32.mrf.mxu3  ;;  %v7520_v48 = vand.u32 4294901760, %v7499_v49  ;;  %1284 = vmatpush.msra.mxu1 %v7286_v43  ;;  %1257 = vmatpush.msra.mxu0 %v7372_v24  ;;  %v7540_v27 = vand.u32 4294901760, %v1374_v17 }
  0xc0   :  { %9207 = vst [vmem:[#allocation46_spill] sm:$0xff] %v7507_v55  ;;  %886 = vmatmul.f32.gmra.mxu1 %v7070_v35  ;;  %1364 = vmatpush.msra.mxu3 %v7507_v55  ;;  %v7536_v11 = vand.u32 4294901760, %v7525_v53 }
  0xc1   :  { %9208 = vst [vmem:[#allocation47_spill] sm:$0xff] %v7511_v4  ;;  %822 = vmatmul.f32.gmra.mxu0 %v7092_v20  ;;  %v1380_v4 = vsub.f32 %v7499_v49, %v7520_v48  ;;  %1286 = vmatpush.msra.mxu1 %v7310_v36 }
  0xc2   :  { %9209 = vst [vmem:[#allocation48_spill] sm:$0xff] %v7513_v5  ;;  %v7529_v5 = vand.u32 4294901760, %v1368_v52  ;;  %1028 = vmatmul.f32.gmra.mxu3 %v7073_v18  ;;  %v1386_v35 = vsub.f32 %v7525_v53, %v7536_v11  ;;  %1319 = vmatpush.msra.mxu2 %v7461_v46 }
  0xc3   :  { %9211 = vst [vmem:[#allocation50_spill] sm:$0xff] %v7540_v27  ;;  %971 = vmatmul.f32.gmra.mxu2 %v7073_v18  ;;  %1261 = vmatpush.msra.mxu0 %v7396_v39  ;;  %v7554_v17 = vand.u32 4294901760, %v1380_v4 }
  0xc4   :  { %9210 = vst [vmem:[#allocation49_spill] sm:$0xff] %v7529_v5  ;;  %1370 = vmatpush.msra.mxu3 %v7529_v5  ;;  %1288 = vmatpush.msra.mxu1 %v7334_v7 }
  0xc5   :  { %v7550_v52 = vpop.f32.mrf.mxu1  ;;  %9214 = vst [vmem:[#allocation53_spill] sm:$0xff] %v7554_v17  ;;  %1321 = vmatpush.msra.mxu2 %v7477_v57  ;;  %1265 = vmatpush.msra.mxu0 %v7417_v23 }
  0xc6   :  { %v7548_v20 = vpop.f32.mrf.mxu0  ;;  %9213 = vst [vmem:[#allocation52_spill] sm:$0xff] %v7550_v52  ;;  %v7556_v18 = vpop.f32.mrf.mxu2  ;;  %1376 = vmatpush.msra.mxu3 %v7540_v27  ;;  %1290 = vmatpush.msra.mxu1 %v7355_v34 }
  0xc7   :  { %9212 = vst [vmem:[#allocation51_spill] sm:$0xff] %v7548_v20  ;;  %v7558_v24 = vpop.f32.mrf.mxu3  ;;  %v7564_v20 = vand.u32 4294901760, %v1386_v35  ;;  %1323 = vmatpush.msra.mxu2 %v7496_v38 }
  0xc8   :  { %9215 = vst [vmem:[#allocation54_spill] sm:$0xff] %v7556_v18  ;;  %892 = vmatmul.f32.gmra.mxu1 %v7113_v47  ;;  %1382 = vmatpush.msra.mxu3 %v7554_v17 }
  0xc9   :  { %9216 = vst [vmem:[#allocation55_spill] sm:$0xff] %v7558_v24  ;;  %827 = vmatmul.f32.gmra.mxu0 %v7132_v31  ;;  %1292 = vmatpush.msra.mxu1 %v7364_v6 }
  0xca   :  { %9217 = vst [vmem:[#allocation56_spill] sm:$0xff] %v7564_v20  ;;  %1032 = vmatmul.f32.gmra.mxu3 %v7103_v21 }
  0xcb   :  { %975 = vmatmul.f32.gmra.mxu2 %v7103_v21  ;;  %1388 = vmatpush.msra.mxu3 %v7564_v20 }
  0xcc   :  { %1294 = vmatpush.msra.mxu1 %v7378_v13 }
  0xcd   :  { %v7577_v35 = vpop.f32.mrf.mxu1 }
  0xce   :  { %v7575_v4 = vpop.f32.mrf.mxu0  ;;  %9219 = vst [vmem:[#allocation58_spill] sm:$0xff] %v7577_v35  ;;  %v7579_v31 = vpop.f32.mrf.mxu2 }
  0xcf   :  { %9218 = vst [vmem:[#allocation57_spill] sm:$0xff] %v7575_v4  ;;  %v7581_v47 = vpop.f32.mrf.mxu3 }
  0xd0   :  { %9220 = vst [vmem:[#allocation59_spill] sm:$0xff] %v7579_v31  ;;  %898 = vmatmul.f32.gmra.mxu1 %v7152_v3 }
  0xd1   :  { %9221 = vst [vmem:[#allocation60_spill] sm:$0xff] %v7581_v47  ;;  %832 = vmatmul.f32.gmra.mxu0 %v7170_v62 }
  0xd2   :  { %1036 = vmatmul.f32.gmra.mxu3 %v7154_v22 }
  0xd3   :  { %979 = vmatmul.f32.gmra.mxu2 %v7154_v22 }
  0xd5   :  { %v7589_v24 = vpop.f32.mrf.mxu1 }
  0xd6   :  { %v7587_v21 = vpop.f32.mrf.mxu0  ;;  %9223 = vst [vmem:[#allocation62_spill] sm:$0xff] %v7589_v24  ;;  %v7591_v18 = vpop.f32.mrf.mxu2 }
  0xd7   :  { %9222 = vst [vmem:[#allocation61_spill] sm:$0xff] %v7587_v21  ;;  %v7593_v4 = vpop.f32.mrf.mxu3 }
  0xd8   :  { %9224 = vst [vmem:[#allocation63_spill] sm:$0xff] %v7591_v18  ;;  %904 = vmatmul.f32.gmra.mxu1 %v7182_v15  ;;  %v6736_v18 = vmov 0.0  }
  0xd9   :  { %9225 = vst [vmem:[#allocation64_spill] sm:$0xff] %v7593_v4  ;;  %837 = vmatmul.f32.gmra.mxu0 %v7201_v9 }
  0xda   :  { %1040 = vmatmul.f32.gmra.mxu3 %v7184_v37 }
  0xdb   :  { %983 = vmatmul.f32.gmra.mxu2 %v7184_v37 }
  0xdd   :  { %v7599_v3 = vpop.f32.mrf.mxu1 }
  0xde   :  { %9226 = vst [vmem:[#allocation65_spill] sm:$0xff] %v7599_v3  ;;  %v7601_v62 = vpop.f32.mrf.mxu0  ;;  %v7603_v22 = vpop.f32.mrf.mxu2 }
  0xdf   :  { %9227 = vst [vmem:[#allocation66_spill] sm:$0xff] %v7603_v22  ;;  %v7605_v21 = vpop.f32.mrf.mxu3 }
  0xe0   :  { %9228 = vst [vmem:[#allocation67_spill] sm:$0xff] %v7605_v21  ;;  %910 = vmatmul.f32.gmra.mxu1 %v7213_v40 }
  0xe1   :  { %1092 = vmatmul.f32.vlgmr.msrb.gmra.mxu0 %v6736_v18 }
  0xe2   :  { %1404 = vmatpush.msrb.mxu0 %v7385_v29  ;;  %1222 = vmatmul.f32.vlgmr.msrb.gmra.mxu3 %v6736_v18 }
  0xe3   :  { %1191 = vmatmul.f32.vlgmr.msrb.gmra.mxu2 %v6736_v18  ;;  %1517 = vmatpush.msrb.mxu3 %v7368_v16 }
  0xe4   :  { %1407 = vmatpush.msrb.mxu0 %v7408_v28  ;;  %1474 = vmatpush.msrb.mxu2 %v7403_v61 }
  0xe5   :  { %v7614_v37 = vpop.f32.mrf.mxu1  ;;  %1519 = vmatpush.msrb.mxu3 %v7382_v54 }
  0xe6   :  { %v7612_v15 = vpop.f32.mrf.mxu0  ;;  %1410 = vmatpush.msrb.mxu0 %v7429_v60  ;;  %v7617_v9 = vpop.f32.mrf.mxu2  ;;  %1478 = vmatpush.msrb.mxu2 %v7424_v8 }
  0xe7   :  { %9229 = vst [vmem:[#allocation68_spill] sm:$0xff] %v7612_v15  ;;  %v7619_v40 = vpop.f32.mrf.mxu3  ;;  %1521 = vmatpush.msrb.mxu3 %v7405_v1  ;;  %v9250_v15 = vld [vmem:[#allocation32_spill] sm:$0xff] }
  0xe8   :  { %1413 = vmatpush.msrb.mxu0 %v7455_v63  ;;  %1153 = vmatmul.f32.vlgmr.msrb.gmra.mxu1 %v6736_v18 }
  0xe9   :  { %1482 = vmatpush.msrb.mxu2 %v7450_v44  ;;  %1441 = vmatpush.msrb.mxu1 %v7368_v16 }
  0xea   :  { %1267 = vmatmul.f32.vlgmr.msra.gmra.mxu0 %v6736_v18  ;;  %1390 = vmatmul.f32.vlgmr.msra.gmra.mxu3 %v6736_v18 }
  0xeb   :  { %1486 = vmatpush.msrb.mxu2 %v7468_v42  ;;  %1443 = vmatpush.msrb.mxu1 %v7382_v54 }
  0xec   :  { %1329 = vmatmul.f32.vlgmr.msra.gmra.mxu2 %v6736_v18  ;;  %1416 = vmatpush.msrb.mxu0 %v7471_v12 }
  0xed   :  { %v7632_v22 = vpop.f32.mrf.mxu1  ;;  %1445 = vmatpush.msrb.mxu1 %v7405_v1  ;;  %1490 = vmatpush.msrb.mxu2 %v7489_v2 }
  0xee   :  { %v7630_v21 = vpop.f32.mrf.mxu0  ;;  %9231 = vst [vmem:[#allocation70_spill] sm:$0xff] %v7632_v22  ;;  %1523 = vmatpush.msrb.mxu3 %v7426_v32  ;;  %v7637_v3 = vpop.f32.mrf.mxu2  ;;  %1419 = vmatpush.msrb.mxu0 %v7480_v51 }
  0xef   :  { %9230 = vst [vmem:[#allocation69_spill] sm:$0xff] %v7630_v21  ;;  %v7639_v4 = vpop.f32.mrf.mxu3  ;;  %1447 = vmatpush.msrb.mxu1 %v7426_v32  ;;  %1494 = vmatpush.msrb.mxu2 %v7494_v41  ;;  %v9242_v21 = vld [vmem:[#allocation22_spill] sm:$0xff] }
  0xf0   :  { %9232 = vst [vmem:[#allocation71_spill] sm:$0xff] %v7637_v3  ;;  %1525 = vmatpush.msrb.mxu3 %v7452_v0  ;;  %1296 = vmatmul.f32.vlgmr.msra.gmra.mxu1 %v6736_v18 }
  0xf1   :  { %9233 = vst [vmem:[#allocation72_spill] sm:$0xff] %v7639_v4  ;;  %1422 = vmatpush.msrb.mxu0 %v7499_v49  ;;  %1449 = vmatpush.msrb.mxu1 %v7452_v0 }
  0xf2   :  { %1498 = vmatpush.msrb.mxu2 %v7520_v48  ;;  %1527 = vmatpush.msrb.mxu3 %v7461_v46 }
  0xf3   :  { %1425 = vmatpush.msrb.mxu0 %v7525_v53  ;;  %1451 = vmatpush.msrb.mxu1 %v7461_v46 }
  0xf4   :  { %1502 = vmatpush.msrb.mxu2 %v7536_v11  ;;  %1529 = vmatpush.msrb.mxu3 %v7477_v57 }
  0xf5   :  { %1428 = vmatmul.f32.vlgmr.msrb.gmra.mxu0 %v6736_v18  ;;  %1504 = vmatmul.f32.vlgmr.msrb.gmra.mxu2 %v6736_v18  ;;  %v7655_v47 = vpop.f32.mrf.mxu1 }
  0xf6   :  { %v7653_v24 = vpop.f32.mrf.mxu0  ;;  %9235 = vst [vmem:[#allocation74_spill] sm:$0xff] %v7655_v47  ;;  %1453 = vmatpush.msrb.mxu1 %v7477_v57  ;;  %1531 = vmatpush.msrb.mxu3 %v7496_v38  ;;  %v7659_v31 = vpop.f32.mrf.mxu2 }
  0xf7   :  { %9234 = vst [vmem:[#allocation73_spill] sm:$0xff] %v7653_v24  ;;  %v7661_v35 = vpop.f32.mrf.mxu3  ;;  %1533 = vmatmul.f32.vlgmr.msrb.gmra.mxu3 %v6736_v18  ;;  %1706 = vmatpush.msra.mxu2 %v7252_v50 }
  0xf8   :  { %9236 = vst [vmem:[#allocation75_spill] sm:$0xff] %v7659_v31  ;;  %1455 = vmatpush.msrb.mxu1 %v7496_v38  ;;  %1743 = vmatpush.msra.mxu3 %v7249_v45 }
  0xf9   :  { %9237 = vst [vmem:[#allocation76_spill] sm:$0xff] %v7661_v35  ;;  %1459 = vmatmul.f32.vlgmr.msrb.gmra.mxu1 %v6736_v18  ;;  %1709 = vmatpush.msra.mxu2 %v7271_v26  ;;  %v9243_v35 = vld [vmem:[#allocation21_spill] sm:$0xff] }
  0xfa   :  { %1648 = vmatpush.msra.mxu1 %v7268_v33  ;;  %1745 = vmatpush.msra.mxu3 %v7266_v25 }
  0xfb   :  { %1712 = vmatpush.msra.mxu2 %v7291_v30  ;;  %1611 = vmatpush.msra.mxu0 %v7249_v45 }
  0xfc   :  { %1654 = vmatpush.msra.mxu1 %v7288_v10  ;;  %1747 = vmatpush.msra.mxu3 %v7286_v43 }
  0xfd   :  { %v7675_v24 = vpop.f32.mrf.mxu1  ;;  %1715 = vmatpush.msra.mxu2 %v7318_v19  ;;  %1613 = vmatpush.msra.mxu0 %v7266_v25 }
  0xfe   :  { %v7673_v52 = vpop.f32.mrf.mxu0  ;;  %9239 = vst [vmem:[#allocation78_spill] sm:$0xff] %v7675_v24  ;;  %v7679_v18 = vpop.f32.mrf.mxu2  ;;  %1660 = vmatpush.msra.mxu1 %v7315_v59  ;;  %1749 = vmatpush.msra.mxu3 %v7310_v36  ;;  %v9245_v24 = vld [vmem:[#allocation28_spill] sm:$0xff] }
  0xff   :  { %9238 = vst [vmem:[#allocation77_spill] sm:$0xff] %v7673_v52  ;;  %v7681_v47 = vpop.f32.mrf.mxu3  ;;  %1718 = vmatpush.msra.mxu2 %v9242_v21  ;;  %1615 = vmatpush.msra.mxu0 %v7286_v43  ;;  %v9244_v52 = vld [vmem:[#allocation26_spill] sm:$0xff] }
 0x100   :  { %9240 = vst [vmem:[#allocation79_spill] sm:$0xff] %v7679_v18  ;;  %1666 = vmatpush.msra.mxu1 %v9243_v35  ;;  %1751 = vmatpush.msra.mxu3 %v7334_v7  ;;  %v9247_v18 = vld [vmem:[#allocation35_spill] sm:$0xff] }
 0x101   :  { %9241 = vst [vmem:[#allocation80_spill] sm:$0xff] %v7681_v47  ;;  %1721 = vmatpush.msra.mxu2 %v9244_v52  ;;  %1617 = vmatpush.msra.mxu0 %v7310_v36  ;;  %v9246_v47 = vld [vmem:[#allocation30_spill] sm:$0xff] }
 0x102   :  { %1672 = vmatpush.msra.mxu1 %v9245_v24  ;;  %1753 = vmatpush.msra.mxu3 %v7355_v34  ;;  %v9253_v52 = vld [vmem:[#allocation38_spill] sm:$0xff] }
 0x103   :  { %1724 = vmatpush.msra.mxu2 %v9246_v47  ;;  %1619 = vmatpush.msra.mxu0 %v7334_v7  ;;  %v9254_v47 = vld [vmem:[#allocation40_spill] sm:$0xff] }
 0x104   :  { %1678 = vmatpush.msra.mxu1 %v9247_v18  ;;  %1755 = vmatpush.msra.mxu3 %v7364_v6 }
 0x105   :  { %v7699_v22 = vpop.f32.mrf.mxu1  ;;  %1727 = vmatpush.msra.mxu2 %v9250_v15  ;;  %1621 = vmatpush.msra.mxu0 %v7355_v34 }
 0x106   :  { %v7697_v31 = vpop.f32.mrf.mxu0  ;;  %9249 = vst [vmem:[#allocation82_spill] sm:$0xff] %v7699_v22  ;;  %v7703_v4 = vpop.f32.mrf.mxu2  ;;  %1684 = vmatpush.msra.mxu1 %v9253_v52  ;;  %1757 = vmatpush.msra.mxu3 %v7378_v13  ;;  %v9256_v22 = vld [vmem:[#allocation41_spill] sm:$0xff]  ;;  %v9262_v52 = vld [vmem:[#allocation11_spill] sm:$0xff] }
 0x107   :  { %9248 = vst [vmem:[#allocation81_spill] sm:$0xff] %v7697_v31  ;;  %v7705_v3 = vpop.f32.mrf.mxu3  ;;  %1848 = vmatpush.msrb.mxu2 %v7368_v16  ;;  %1623 = vmatpush.msra.mxu0 %v7364_v6  ;;  %v9255_v31 = vld [vmem:[#allocation39_spill] sm:$0xff] }
 0x108   :  { %9251 = vst [vmem:[#allocation83_spill] sm:$0xff] %v7703_v4  ;;  %1690 = vmatpush.msra.mxu1 %v9254_v47  ;;  %1885 = vmatpush.msrb.mxu3 %v9255_v31 }
 0x109   :  { %9252 = vst [vmem:[#allocation84_spill] sm:$0xff] %v7705_v3  ;;  %1850 = vmatpush.msrb.mxu2 %v7382_v54  ;;  %1625 = vmatpush.msra.mxu0 %v7378_v13  ;;  %v9257_v3 = vld [vmem:[#allocation10_spill] sm:$0xff] }
 0x10a   :  { %1819 = vmatpush.msrb.mxu1 %v7249_v45  ;;  %1891 = vmatpush.msrb.mxu3 %v9256_v22  ;;  %v9300_v22 = vld [vmem:[#allocation15_spill] sm:$0xff] }
 0x10b   :  { %1852 = vmatpush.msrb.mxu2 %v7405_v1  ;;  %1776 = vmatpush.msrb.mxu0 %v9257_v3  ;;  %v9263_v3 = vld [vmem:[#allocation14_spill] sm:$0xff] }
 0x10c   :  { %1821 = vmatpush.msrb.mxu1 %v7266_v25  ;;  %1897 = vmatpush.msrb.mxu3 %v7484_v14 }
 0x10d   :  { %1854 = vmatpush.msrb.mxu2 %v7426_v32  ;;  %v7723_v15 = vpop.f32.mrf.mxu1  ;;  %1780 = vmatpush.msrb.mxu0 %v9262_v52 }
 0x10e   :  { %v7721_v4 = vpop.f32.mrf.mxu0  ;;  %9259 = vst [vmem:[#allocation86_spill] sm:$0xff] %v7723_v15  ;;  %1823 = vmatpush.msrb.mxu1 %v7286_v43  ;;  %v7727_v31 = vpop.f32.mrf.mxu2  ;;  %1903 = vmatpush.msrb.mxu3 %v7507_v55 }
 0x10f   :  { %9258 = vst [vmem:[#allocation85_spill] sm:$0xff] %v7721_v4  ;;  %v7729_v47 = vpop.f32.mrf.mxu3  ;;  %1856 = vmatpush.msrb.mxu2 %v7452_v0  ;;  %1784 = vmatpush.msrb.mxu0 %v9263_v3 }
 0x110   :  { %9260 = vst [vmem:[#allocation87_spill] sm:$0xff] %v7727_v31  ;;  %1825 = vmatpush.msrb.mxu1 %v7310_v36  ;;  %1909 = vmatpush.msrb.mxu3 %v7529_v5 }
 0x111   :  { %9261 = vst [vmem:[#allocation88_spill] sm:$0xff] %v7729_v47  ;;  %1858 = vmatpush.msrb.mxu2 %v7461_v46  ;;  %1788 = vmatpush.msrb.mxu0 %v7329_v58  ;;  %v9268_v58 = vld [vmem:[#allocation29_spill] sm:$0xff] }
 0x112   :  { %1827 = vmatpush.msrb.mxu1 %v7334_v7  ;;  %1915 = vmatpush.msrb.mxu3 %v7540_v27 }
 0x113   :  { %1860 = vmatpush.msrb.mxu2 %v7477_v57  ;;  %1792 = vmatpush.msrb.mxu0 %v7352_v56 }
 0x114   :  { %1829 = vmatpush.msrb.mxu1 %v7355_v34  ;;  %1921 = vmatpush.msrb.mxu3 %v7554_v17 }
 0x115   :  { %1862 = vmatpush.msrb.mxu2 %v7496_v38  ;;  %v7747_v47 = vpop.f32.mrf.mxu1  ;;  %1796 = vmatpush.msrb.mxu0 %v9268_v58 }
 0x116   :  { %v7745_v4 = vpop.f32.mrf.mxu0  ;;  %9265 = vst [vmem:[#allocation90_spill] sm:$0xff] %v7747_v47  ;;  %1831 = vmatpush.msrb.mxu1 %v7364_v6  ;;  %v7751_v15 = vpop.f32.mrf.mxu2  ;;  %1927 = vmatpush.msrb.mxu3 %v7564_v20 }
 0x117   :  { %9264 = vst [vmem:[#allocation89_spill] sm:$0xff] %v7745_v4  ;;  %v7753_v31 = vpop.f32.mrf.mxu3  ;;  %1800 = vmatpush.msrb.mxu0 %v7396_v39 }
 0x118   :  { %9266 = vst [vmem:[#allocation91_spill] sm:$0xff] %v7751_v15  ;;  %1833 = vmatpush.msrb.mxu1 %v7378_v13 }
 0x119   :  { %9267 = vst [vmem:[#allocation92_spill] sm:$0xff] %v7753_v31  ;;  %1804 = vmatpush.msrb.mxu0 %v7417_v23 }
 0x11d   :  { %v7760_v4 = vpop.f32.mrf.mxu1 }
 0x11e   :  { %9269 = vst [vmem:[#allocation93_spill] sm:$0xff] %v7760_v4  ;;  %v803_v47 = vpop.f32.mrf.mxu0  ;;  %v7762_v56 = vpop.f32.mrf.mxu2 }
 0x11f   :  { %9270 = vst [vmem:[#allocation94_spill] sm:$0xff] %v7762_v56  ;;  %v7764_v17 = vpop.f32.mrf.mxu3 }
 0x120   :  { %9271 = vst [vmem:[#allocation95_spill] sm:$0xff] %v7764_v17 }
 0x125   :  { %v869_v31 = vpop.f32.mrf.mxu1 }
 0x126   :  { %v7766_v15 = vpop.f32.mrf.mxu0  ;;  %v956_v27 = vpop.f32.mrf.mxu2 }
 0x127   :  { %9272 = vst [vmem:[#allocation96_spill] sm:$0xff] %v7766_v15  ;;  %v1013_v58 = vpop.f32.mrf.mxu3 }
 0x12d   :  { %v7770_v3 = vpop.f32.mrf.mxu1 }
 0x12e   :  { %v7768_v5 = vpop.f32.mrf.mxu0  ;;  %9274 = vst [vmem:[#allocation98_spill] sm:$0xff] %v7770_v3  ;;  %v7772_v20 = vpop.f32.mrf.mxu2 }
 0x12f   :  { %9273 = vst [vmem:[#allocation97_spill] sm:$0xff] %v7768_v5  ;;  %v7774_v39 = vpop.f32.mrf.mxu3 }
 0x130   :  { %9275 = vst [vmem:[#allocation99_spill] sm:$0xff] %v7772_v20 }
 0x131   :  { %9276 = vst [vmem:[#allocation100_spill] sm:$0xff] %v7774_v39 }
 0x135   :  { %v7778_v4 = vpop.f32.mrf.mxu1 }
 0x136   :  { %v7776_v23 = vpop.f32.mrf.mxu0  ;;  %9278 = vst [vmem:[#allocation102_spill] sm:$0xff] %v7778_v4  ;;  %v7780_v56 = vpop.f32.mrf.mxu2 }
 0x137   :  { %9277 = vst [vmem:[#allocation101_spill] sm:$0xff] %v7776_v23  ;;  %v7782_v17 = vpop.f32.mrf.mxu3 }
 0x138   :  { %9279 = vst [vmem:[#allocation103_spill] sm:$0xff] %v7780_v56 }
 0x139   :  { %9280 = vst [vmem:[#allocation104_spill] sm:$0xff] %v7782_v17 }
 0x13d   :  { %v7786_v55 = vpop.f32.mrf.mxu1 }
 0x13e   :  { %v7784_v15 = vpop.f32.mrf.mxu0  ;;  %9282 = vst [vmem:[#allocation106_spill] sm:$0xff] %v7786_v55  ;;  %v7788_v52 = vpop.f32.mrf.mxu2 }
 0x13f   :  { %9281 = vst [vmem:[#allocation105_spill] sm:$0xff] %v7784_v15  ;;  %v7790_v5 = vpop.f32.mrf.mxu3 }
 0x140   :  { %9283 = vst [vmem:[#allocation107_spill] sm:$0xff] %v7788_v52 }
 0x141   :  { %9284 = vst [vmem:[#allocation108_spill] sm:$0xff] %v7790_v5 }
 0x145   :  { %v7794_v20 = vpop.f32.mrf.mxu1 }
 0x146   :  { %v7792_v3 = vpop.f32.mrf.mxu0  ;;  %9286 = vst [vmem:[#allocation110_spill] sm:$0xff] %v7794_v20  ;;  %v7796_v39 = vpop.f32.mrf.mxu2 }
 0x147   :  { %9285 = vst [vmem:[#allocation109_spill] sm:$0xff] %v7792_v3  ;;  %v7798_v23 = vpop.f32.mrf.mxu3 }
 0x148   :  { %9287 = vst [vmem:[#allocation111_spill] sm:$0xff] %v7796_v39 }
 0x149   :  { %9288 = vst [vmem:[#allocation112_spill] sm:$0xff] %v7798_v23 }
 0x14d   :  { %v7802_v56 = vpop.f32.mrf.mxu1 }
 0x14e   :  { %v7800_v4 = vpop.f32.mrf.mxu0  ;;  %9290 = vst [vmem:[#allocation114_spill] sm:$0xff] %v7802_v56  ;;  %v7804_v17 = vpop.f32.mrf.mxu2 }
 0x14f   :  { %9289 = vst [vmem:[#allocation113_spill] sm:$0xff] %v7800_v4  ;;  %v7806_v15 = vpop.f32.mrf.mxu3 }
 0x150   :  { %9291 = vst [vmem:[#allocation115_spill] sm:$0xff] %v7804_v17 }
 0x151   :  { %9292 = vst [vmem:[#allocation116_spill] sm:$0xff] %v7806_v15  ;;  %v7823_v15 = vperm.slane %v9300_v22, 1 }
 0x153   :  { %9301 = vst [vmem:[#allocation15_spill] sm:$0xff] %v7823_v15 }
 0x155   :  { %v7810_v52 = vpop.f32.mrf.mxu1 }
 0x156   :  { %v7808_v55 = vpop.f32.mrf.mxu0  ;;  %9294 = vst [vmem:[#allocation118_spill] sm:$0xff] %v7810_v52  ;;  %v7812_v5 = vpop.f32.mrf.mxu2  ;;  %v621_v52 = vadd.f32 %v7617_v9, %v7823_v15 }
 0x157   :  { %9293 = vst [vmem:[#allocation117_spill] sm:$0xff] %v7808_v55  ;;  %v7814_v3 = vpop.f32.mrf.mxu3 }
 0x158   :  { %9295 = vst [vmem:[#allocation119_spill] sm:$0xff] %v7812_v5 }
 0x159   :  { %9296 = vst [vmem:[#allocation120_spill] sm:$0xff] %v7814_v3  ;;  %v738_v3 = vadd.f32 %v7619_v40, %v621_v52 }
 0x15b   :  { %v804_v6 = vadd.f32 %v803_v47, %v738_v3 }
 0x15d   :  { %v7816_v20 = vpop.f32.mrf.mxu1  ;;  %v870_v7 = vadd.f32 %v869_v31, %v804_v6  ;;  %v9302_v6 = vld [vmem:[#allocation23_spill] sm:$0xff] }
 0x15e   :  { %9297 = vst [vmem:[#allocation121_spill] sm:$0xff] %v7816_v20  ;;  %v1093_v39 = vpop.f32.mrf.mxu0  ;;  %v7818_v23 = vpop.f32.mrf.mxu2 }
 0x15f   :  { %9298 = vst [vmem:[#allocation122_spill] sm:$0xff] %v7818_v23  ;;  %v7820_v4 = vpop.f32.mrf.mxu3  ;;  %v957_v18 = vadd.f32 %v956_v27, %v870_v7 }
 0x160   :  { %9299 = vst [vmem:[#allocation123_spill] sm:$0xff] %v7820_v4 }
 0x161   :  { %v1014_v43 = vadd.f32 %v1013_v58, %v957_v18 }
 0x165   :  { %v1154_v56 = vpop.f32.mrf.mxu1 }
 0x166   :  { %v1192_v14 = vpop.f32.mrf.mxu2  ;;  %v1155_v52 = vadd.f32 %v1154_v56, %v1093_v39 }
 0x167   :  { %v1223_v17 = vpop.f32.mrf.mxu3  ;;  %v1268_v55 = vpop.f32.mrf.mxu0 }
 0x168   :  { %v1193_v47 = vadd.f32 %v1192_v14, %v1155_v52 }
 0x16d   :  { %v1297_v5 = vpop.f32.mrf.mxu1 }
 0x16f   :  { %v1330_v13 = vpop.f32.mrf.mxu2  ;;  %v1391_v20 = vpop.f32.mrf.mxu3 }
 0x170   :  { %v1392_v34 = vadd.f32 %v1391_v20, %v1330_v13  ;;  %v1224_v13 = vadd.f32 %v1223_v17, %v1193_v47 }
 0x172   :  { %v1429_v23 = vpop.f32.mrf.mxu0  ;;  %v1269_v20 = vadd.f32 %v1268_v55, %v1224_v13 }
 0x173   :  { %v1430_v4 = vadd.f32 %v1429_v23, %v1392_v34  ;;  %v503_v34 = vadd.f32 %v7601_v62, %v9302_v6 }
 0x174   :  { %v1298_v7 = vadd.f32 %v1297_v5, %v1269_v20 }
 0x175   :  { %v560_v23 = vadd.f32 %v7614_v37, %v503_v34 }
 0x176   :  { %v1460_v21 = vpop.f32.mrf.mxu1 }
 0x177   :  { %v1461_v36 = vadd.f32 %v1460_v21, %v1430_v4 }
 0x178   :  { %v1505_v19 = vpop.f32.mrf.mxu2 }
 0x179   :  { %v1506_v22 = vadd.f32 %v1505_v19, %v1461_v36  ;;  %v1537_v36 = vadd.f32 %v1298_v7, %v560_v23 }
 0x17a   :  { %v1534_v24 = vpop.f32.mrf.mxu3 }
 0x17b   :  { %v1535_v30 = vadd.f32 %v1534_v24, %v1506_v22  ;;  %v6509_v19 = vmul.f32 -1.442695, %v1537_v36 }
 0x17d   :  { %v1538_v35 = vadd.f32 %v1535_v30, %v1014_v43 }
 0x17f   :  { %6556 = vtanh.f32 %v1538_v35  ;;  %v6510_v18 = vmul.f32 -1.442695, %v1538_v35 }
 0x180   :  { %6558 = vpow2.f32 %v6509_v19 }
 0x185   :  { %v6557_v9 = vpop.eup %6556 }
 0x186   :  { %1580 = vrot.lane.b32.xlu0 %v6557_v9, %s6737_s2  ;;  %v6559_v58 = vpop.eup %6558 }
 0x187   :  { %v1545_v43 = vadd.f32 1.0, %v6559_v58 }
 0x189   :  { %6560 = vrcp.f32 %v1545_v43  ;;  %v1558_v39 = vand.u32 2147483648, %v1545_v43  ;;  %vm1552_vm2 = vweird.f32 %v1545_v43  ;;  %v1556_v14 = vand.u32 2147483647, %v1545_v43 }
 0x18b   :  { %v1559_v5 = vor.u32 1.1754944e-38, %v1558_v39  ;;  %vm1557_vm4 = vcmp.eq.f32.partialorder %v1556_v14, 8.507059e+37  ;;  %v9303_v39 = vld [vmem:[#allocation21_spill] sm:$0xff] }
 0x18c   :  { %v9304_v14 = vld [vmem:[#allocation13_spill] sm:$0xff] }
 0x18f   :  { %v6561_v30 = vpop.eup %6560 }
 0x190   :  { %v1548_v24 = vmul.f32 %v6561_v30, %v1545_v43  ;;  %vm1553_vm1 = vweird.f32 %v6561_v30 }
 0x191   :  { %vm1554_vm3 = vmor %vm1552_vm2, %vm1553_vm1 }
 0x192   :  { %v1549_v27 = vsub.f32 1.0, %v1548_v24 }
 0x194   :  { %v1550_v4 = vmul.f32 %v6561_v30, %v1549_v27 }
 0x196   :  { %v1551_v56 = vadd.f32 %v6561_v30, %v1550_v4 }
 0x198   :  { %v1555_v55 = vsel %vm1554_vm3, %v6561_v30, %v1551_v56 }
 0x199   :  { %v1560_v31 = vsel %vm1557_vm4, %v1559_v5, %v1555_v55  ;;  %v9305_v55 = vld [vmem:[#allocation12_spill] sm:$0xff] }
 0x19a   :  { %v1578_v3 = vmul.f32 0.0, %v1560_v31  ;;  %v9306_v5 = vld [vmem:[#allocation28_spill] sm:$0xff] }
 0x1f8   :  { %v1581_v17 = vpop.permute.xlu0 %1580 }
 0x1f9   :  { %v1583_v21 = vmul.f32 %v1581_v17, %v1560_v31  ;;  %v9307_v17 = vld [vmem:[#allocation18_spill] sm:$0xff]  ;;  %v9308_v31 = vld [vmem:[#allocation16_spill] sm:$0xff] }
 0x1fb   :  { %1585 = vrot.lane.b32.xlu0 %v1583_v21, %s6737_s2  ;;  %v9309_v21 = vld [vmem:[#allocation35_spill] sm:$0xff] }
 0x26d   :  { %v1586_v62 = vpop.permute.xlu0 %1585 }
 0x26e   :  { %v7833_v37 = vadd.f32 %v1586_v62, %v1578_v3  ;;  %v9310_v3 = vld [vmem:[#allocation22_spill] sm:$0xff]  ;;  %v9311_v62 = vld [vmem:[#allocation20_spill] sm:$0xff] }
 0x270   :  { %6562 = vtanh.f32 %v7833_v37 }
 0x271   :  { %6564 = vpow2.f32 %v6510_v18  ;;  %v9313_v18 = vld [vmem:[#allocation26_spill] sm:$0xff] }
 0x276   :  { %v6563_v40 = vpop.eup %6562 }
 0x277   :  { %1591 = vrot.lane.b32.xlu1 %v6563_v40, %s6737_s2  ;;  %v6565_v22 = vpop.eup %6564  ;;  %v9312_v40 = vld [vmem:[#allocation38_spill] sm:$0xff] }
 0x278   :  { %v1546_v9 = vadd.f32 1.0, %v6565_v22  ;;  %v9314_v22 = vld [vmem:[#allocation25_spill] sm:$0xff] }
 0x27a   :  { %6566 = vrcp.f32 %v1546_v9  ;;  %v1573_v34 = vand.u32 2147483648, %v1546_v9  ;;  %vm1567_vm6 = vweird.f32 %v1546_v9  ;;  %v1571_v7 = vand.u32 2147483647, %v1546_v9 }
 0x27c   :  { %v1574_v36 = vor.u32 1.1754944e-38, %v1573_v34  ;;  %vm1572_vm8 = vcmp.eq.f32.partialorder %v1571_v7, 8.507059e+37  ;;  %v9321_v34 = vld [vmem:[#allocation41_spill] sm:$0xff]  ;;  %v9322_v7 = vld [vmem:[#allocation10_spill] sm:$0xff] }
 0x280   :  { %v6567_v52 = vpop.eup %6566 }
 0x281   :  { %v1563_v47 = vmul.f32 %v6567_v52, %v1546_v9  ;;  %vm1568_vm5 = vweird.f32 %v6567_v52  ;;  %v9315_v9 = vld [vmem:[#allocation40_spill] sm:$0xff] }
 0x282   :  { %vm1569_vm7 = vmor %vm1567_vm6, %vm1568_vm5 }
 0x283   :  { %v1564_v13 = vsub.f32 1.0, %v1563_v47  ;;  %v9317_v47 = vld [vmem:[#allocation27_spill] sm:$0xff] }
 0x285   :  { %v1565_v20 = vmul.f32 %v6567_v52, %v1564_v13  ;;  %v9318_v13 = vld [vmem:[#allocation32_spill] sm:$0xff] }
 0x287   :  { %v1566_v6 = vadd.f32 %v6567_v52, %v1565_v20  ;;  %v9319_v20 = vld [vmem:[#allocation31_spill] sm:$0xff] }
 0x289   :  { %v1570_v23 = vsel %vm1569_vm7, %v6567_v52, %v1566_v6  ;;  %v9316_v52 = vld [vmem:[#allocation30_spill] sm:$0xff]  ;;  %v9320_v6 = vld [vmem:[#allocation39_spill] sm:$0xff] }
 0x28a   :  { %v1575_v19 = vsel %vm1572_vm8, %v1574_v36, %v1570_v23  ;;  %v9323_v23 = vld [vmem:[#allocation43_spill] sm:$0xff] }
 0x28b   :  { %v9324_v36 = vld [vmem:[#allocation11_spill] sm:$0xff] }
 0x2e9   :  { %v1592_v35 = vpop.permute.xlu1 %1591 }
 0x2ea   :  { %v1594_v58 = vmul.f32 %v1592_v35, %v1575_v19  ;;  %v9325_v19 = vld [vmem:[#allocation46_spill] sm:$0xff] }
 0x2eb   :  { %v9326_v35 = vld [vmem:[#allocation14_spill] sm:$0xff] }
 0x2ec   :  { %1596 = vst.msk [vmem:[#allocation2] sm:$0xff] %vm1595_vm9, %v1594_v58  ;;  %v1600_v43 = vsel %vm111_vm0, %v1594_v58, 0 }
 0x2ed   :  { %1598 = vst.msk [vmem:[#allocation2 + $0x38] sm:$0xff] %vm1597_vm10, %v1594_v58  ;;  %v1626_v30 = vand.u32 4294901760, %v1600_v43  ;;  %v9327_v58 = vld [vmem:[#allocation49_spill] sm:$0xff] }
 0x2ef   :  { %v1627_v24 = vsub.f32 %v1600_v43, %v1626_v30  ;;  %1692 = vmatmul.f32.vlgmr.msra.gmra.mxu1 %v1626_v30  ;;  %v9328_v43 = vld [vmem:[#allocation19_spill] sm:$0xff] }
 0x2f0   :  { %1980 = vmatpush.msra.mxu1 %v7368_v16 }
 0x2f1   :  { %1730 = vmatmul.f32.vlgmr.msra.gmra.mxu2 %v1627_v24  ;;  %v1628_v27 = vand.u32 4294901760, %v1627_v24 }
 0x2f2   :  { %1982 = vmatpush.msra.mxu1 %v7382_v54  ;;  %2013 = vmatpush.msra.mxu2 %v7403_v61 }
 0x2f3   :  { %1761 = vmatmul.f32.vlgmr.msra.gmra.mxu3 %v1628_v27  ;;  %v1629_v4 = vsub.f32 %v1627_v24, %v1628_v27 }
 0x2f4   :  { %1984 = vmatpush.msra.mxu1 %v7405_v1  ;;  %2017 = vmatpush.msra.mxu2 %v7424_v8 }
 0x2f5   :  { %2056 = vmatpush.msra.mxu3 %v7368_v16  ;;  %v1630_v56 = vand.u32 4294901760, %v1629_v4  ;;  %v9332_v4 = vld [vmem:[#allocation29_spill] sm:$0xff] }
 0x2f6   :  { %1986 = vmatpush.msra.mxu1 %v7426_v32  ;;  %2021 = vmatpush.msra.mxu2 %v7450_v44 }
 0x2f7   :  { %2058 = vmatpush.msra.mxu3 %v7382_v54  ;;  %1631 = vmatmul.f32.vlgmr.msra.gmra.mxu0 %v1630_v56 }
 0x2f8   :  { %1835 = vmatmul.f32.vlgmr.msrb.gmra.mxu1 %v1626_v30  ;;  %1943 = vmatpush.msra.mxu0 %v7385_v29 }
 0x2f9   :  { %1988 = vmatpush.msra.mxu1 %v7452_v0  ;;  %2025 = vmatpush.msra.mxu2 %v7468_v42 }
 0x2fa   :  { %2060 = vmatpush.msra.mxu3 %v7405_v1  ;;  %1868 = vmatmul.f32.vlgmr.msrb.gmra.mxu2 %v1630_v56  ;;  %v9333_v56 = vld [vmem:[#allocation56_spill] sm:$0xff] }
 0x2fb   :  { %1946 = vmatpush.msra.mxu0 %v7408_v28  ;;  %1990 = vmatpush.msra.mxu1 %v7461_v46 }
 0x2fc   :  { %2029 = vmatpush.msra.mxu2 %v7489_v2  ;;  %2062 = vmatpush.msra.mxu3 %v7426_v32 }
 0x2fd   :  { %1929 = vmatmul.f32.vlgmr.msrb.gmra.mxu3 %v1626_v30  ;;  %1949 = vmatpush.msra.mxu0 %v7429_v60 }
 0x2fe   :  { %1992 = vmatpush.msra.mxu1 %v7477_v57  ;;  %2033 = vmatpush.msra.mxu2 %v7494_v41 }
 0x2ff   :  { %2064 = vmatpush.msra.mxu3 %v7452_v0  ;;  %1952 = vmatpush.msra.mxu0 %v7455_v63 }
 0x300   :  { %1994 = vmatpush.msra.mxu1 %v7496_v38  ;;  %2037 = vmatpush.msra.mxu2 %v7520_v48 }
 0x301   :  { %2066 = vmatpush.msra.mxu3 %v7461_v46  ;;  %1806 = vmatmul.f32.vlgmr.msrb.gmra.mxu0 %v1626_v30 }
 0x302   :  { %1998 = vmatmul.f32.vlgmr.msra.gmra.mxu1 %v1628_v27  ;;  %1955 = vmatpush.msra.mxu0 %v7471_v12  ;;  %v9331_v27 = vld [vmem:[#allocation53_spill] sm:$0xff] }
 0x303   :  { %2041 = vmatpush.msra.mxu2 %v7536_v11  ;;  %2068 = vmatpush.msra.mxu3 %v7477_v57 }
 0x304   :  { %2043 = vmatmul.f32.vlgmr.msra.gmra.mxu2 %v1626_v30  ;;  %1958 = vmatpush.msra.mxu0 %v7480_v51 }
 0x305   :  { %2070 = vmatpush.msra.mxu3 %v7496_v38  ;;  %2185 = vmatpush.msrb.mxu1 %v7268_v33 }
 0x306   :  { %2072 = vmatmul.f32.vlgmr.msra.gmra.mxu3 %v1626_v30  ;;  %1961 = vmatpush.msra.mxu0 %v7499_v49  ;;  %v9329_v30 = vld [vmem:[#allocation50_spill] sm:$0xff] }
 0x307   :  { %2191 = vmatpush.msrb.mxu1 %v7288_v10  ;;  %2243 = vmatpush.msrb.mxu2 %v7252_v50 }
 0x308   :  { %1964 = vmatpush.msra.mxu0 %v7525_v53  ;;  %2280 = vmatpush.msrb.mxu3 %v7249_v45 }
 0x309   :  { %1967 = vmatmul.f32.vlgmr.msra.gmra.mxu0 %v1627_v24  ;;  %2197 = vmatpush.msrb.mxu1 %v7315_v59  ;;  %v9330_v24 = vld [vmem:[#allocation24_spill] sm:$0xff] }
 0x30a   :  { %2246 = vmatpush.msrb.mxu2 %v7271_v26  ;;  %2282 = vmatpush.msrb.mxu3 %v7266_v25 }
 0x30b   :  { %2203 = vmatpush.msrb.mxu1 %v9303_v39  ;;  %2148 = vmatpush.msrb.mxu0 %v7249_v45 }
 0x30c   :  { %2249 = vmatpush.msrb.mxu2 %v9304_v14  ;;  %2284 = vmatpush.msrb.mxu3 %v9305_v55 }
 0x30d   :  { %2209 = vmatpush.msrb.mxu1 %v9306_v5  ;;  %2150 = vmatpush.msrb.mxu0 %v7266_v25 }
 0x30e   :  { %2252 = vmatpush.msrb.mxu2 %v9307_v17  ;;  %2286 = vmatpush.msrb.mxu3 %v9308_v31 }
 0x30f   :  { %2215 = vmatpush.msrb.mxu1 %v9309_v21  ;;  %2152 = vmatpush.msrb.mxu0 %v9305_v55 }
 0x310   :  { %2255 = vmatpush.msrb.mxu2 %v9310_v3  ;;  %2288 = vmatpush.msrb.mxu3 %v9311_v62 }
 0x311   :  { %2221 = vmatpush.msrb.mxu1 %v9312_v40  ;;  %2154 = vmatpush.msrb.mxu0 %v9308_v31 }
 0x312   :  { %2258 = vmatpush.msrb.mxu2 %v9313_v18  ;;  %2290 = vmatpush.msrb.mxu3 %v9314_v22  ;;  %v9340_v18 = vld [vmem:[#allocation99_spill] sm:$0xff] }
 0x313   :  { %2227 = vmatpush.msrb.mxu1 %v9315_v9  ;;  %2156 = vmatpush.msrb.mxu0 %v9311_v62 }
 0x314   :  { %2261 = vmatpush.msrb.mxu2 %v9316_v52  ;;  %2292 = vmatpush.msrb.mxu3 %v9317_v47 }
 0x315   :  { %2356 = vmatpush.msra.mxu1 %v7249_v45  ;;  %2158 = vmatpush.msrb.mxu0 %v9314_v22 }
 0x316   :  { %2264 = vmatpush.msrb.mxu2 %v9318_v13  ;;  %2294 = vmatpush.msrb.mxu3 %v9319_v20 }
 0x317   :  { %2358 = vmatpush.msra.mxu1 %v7266_v25  ;;  %2160 = vmatpush.msrb.mxu0 %v9317_v47 }
 0x318   :  { %2385 = vmatpush.msra.mxu2 %v7368_v16  ;;  %2422 = vmatpush.msra.mxu3 %v9320_v6 }
 0x319   :  { %2360 = vmatpush.msra.mxu1 %v9305_v55  ;;  %2162 = vmatpush.msrb.mxu0 %v9319_v20 }
 0x31a   :  { %2387 = vmatpush.msra.mxu2 %v7382_v54  ;;  %2428 = vmatpush.msra.mxu3 %v9321_v34 }
 0x31b   :  { %2362 = vmatpush.msra.mxu1 %v9308_v31  ;;  %2313 = vmatpush.msra.mxu0 %v9322_v7 }
 0x31c   :  { %2389 = vmatpush.msra.mxu2 %v7405_v1  ;;  %2434 = vmatpush.msra.mxu3 %v9323_v23 }
 0x31d   :  { %2364 = vmatpush.msra.mxu1 %v9311_v62  ;;  %2317 = vmatpush.msra.mxu0 %v9324_v36 }
 0x31e   :  { %2391 = vmatpush.msra.mxu2 %v7426_v32  ;;  %2440 = vmatpush.msra.mxu3 %v9325_v19 }
 0x31f   :  { %2366 = vmatpush.msra.mxu1 %v9314_v22  ;;  %2321 = vmatpush.msra.mxu0 %v9326_v35  ;;  %v9334_v35 = vld [vmem:[#allocation33_spill] sm:$0xff] }
 0x320   :  { %2393 = vmatpush.msra.mxu2 %v7452_v0  ;;  %2446 = vmatpush.msra.mxu3 %v9327_v58  ;;  %v9335_v58 = vld [vmem:[#allocation36_spill] sm:$0xff] }
 0x321   :  { %2368 = vmatpush.msra.mxu1 %v9317_v47  ;;  %2325 = vmatpush.msra.mxu0 %v9328_v43 }
 0x322   :  { %2395 = vmatpush.msra.mxu2 %v7461_v46  ;;  %2452 = vmatpush.msra.mxu3 %v9329_v30  ;;  %v9336_v30 = vld [vmem:[#allocation71_spill] sm:$0xff] }
 0x323   :  { %2370 = vmatpush.msra.mxu1 %v9319_v20  ;;  %2329 = vmatpush.msra.mxu0 %v9330_v24  ;;  %v629_v7 = vadd.f32 %v9336_v30, %v7823_v15  ;;  %v9337_v20 = vld [vmem:[#allocation72_spill] sm:$0xff] }
 0x324   :  { %2397 = vmatpush.msra.mxu2 %v7477_v57  ;;  %2458 = vmatpush.msra.mxu3 %v9331_v27  ;;  %v9341_v15 = vld [vmem:[#allocation100_spill] sm:$0xff] }
 0x325   :  { %2333 = vmatpush.msra.mxu0 %v9332_v4  ;;  %v742_v27 = vadd.f32 %v9337_v20, %v629_v7  ;;  %v9338_v4 = vld [vmem:[#allocation96_spill] sm:$0xff] }
 0x326   :  { %2399 = vmatpush.msra.mxu2 %v7496_v38  ;;  %2464 = vmatpush.msra.mxu3 %v9333_v56  ;;  %v9339_v56 = vld [vmem:[#allocation98_spill] sm:$0xff] }
 0x327   :  { %2337 = vmatpush.msra.mxu0 %v9334_v35  ;;  %v809_v47 = vadd.f32 %v9338_v4, %v742_v27 }
 0x329   :  { %2341 = vmatpush.msra.mxu0 %v9335_v58  ;;  %v876_v52 = vadd.f32 %v9339_v56, %v809_v47 }
 0x32b   :  { %v961_v40 = vadd.f32 %v9340_v18, %v876_v52 }
 0x32d   :  { %v1018_v31 = vadd.f32 %v9341_v15, %v961_v40 }
 0x36c   :  { %v1693_v43 = vpop.f32.mrf.mxu1 }
 0x374   :  { %v1632_v19 = vpop.f32.mrf.mxu0  ;;  %v1731_v36 = vpop.f32.mrf.mxu2 }
 0x375   :  { %v1836_v24 = vpop.f32.mrf.mxu1  ;;  %v1694_v7 = vadd.f32 %v1693_v43, %v1632_v19 }
 0x376   :  { %v1762_v23 = vpop.f32.mrf.mxu3 }
 0x377   :  { %v1732_v47 = vadd.f32 %v1731_v36, %v1694_v7 }
 0x37d   :  { %v1869_v6 = vpop.f32.mrf.mxu2 }
 0x37e   :  { %v1807_v34 = vpop.f32.mrf.mxu0 }
 0x37f   :  { %v1999_v22 = vpop.f32.mrf.mxu1 }
 0x380   :  { %v1930_v13 = vpop.f32.mrf.mxu3 }
 0x381   :  { %v1931_v35 = vadd.f32 %v1930_v13, %v1869_v6  ;;  %v1763_v13 = vadd.f32 %v1762_v23, %v1732_v47 }
 0x383   :  { %v1808_v6 = vadd.f32 %v1807_v34, %v1763_v13 }
 0x385   :  { %v1837_v18 = vadd.f32 %v1836_v24, %v1808_v6 }
 0x386   :  { %v1968_v9 = vpop.f32.mrf.mxu0 }
 0x387   :  { %v1969_v58 = vadd.f32 %v1968_v9, %v1931_v35  ;;  %v2044_v3 = vpop.f32.mrf.mxu2  ;;  %v9342_v9 = vld [vmem:[#allocation34_spill] sm:$0xff]  ;;  %v9343_v35 = vld [vmem:[#allocation68_spill] sm:$0xff] }
 0x388   :  { %v507_v27 = vadd.f32 %v9343_v35, %v9342_v9 }
 0x389   :  { %v2000_v62 = vadd.f32 %v1999_v22, %v1969_v58  ;;  %v2073_v30 = vpop.f32.mrf.mxu3  ;;  %v9344_v22 = vld [vmem:[#allocation70_spill] sm:$0xff] }
 0x38a   :  { %v564_v52 = vadd.f32 %v9344_v22, %v507_v27 }
 0x38b   :  { %v2045_v21 = vadd.f32 %v2044_v3, %v2000_v62 }
 0x38c   :  { %v2076_v3 = vadd.f32 %v1837_v18, %v564_v52 }
 0x38d   :  { %v2074_v17 = vadd.f32 %v2073_v30, %v2045_v21 }
 0x38e   :  { %v6511_v62 = vmul.f32 -1.442695, %v2076_v3 }
 0x38f   :  { %v2077_v5 = vadd.f32 %v2074_v17, %v1018_v31 }
 0x391   :  { %6568 = vtanh.f32 %v2077_v5  ;;  %v6512_v13 = vmul.f32 -1.442695, %v2077_v5 }
 0x392   :  { %6570 = vpow2.f32 %v6511_v62 }
 0x397   :  { %v6569_v20 = vpop.eup %6568 }
 0x398   :  { %2119 = vrot.lane.b32.xlu1 %v6569_v20, %s6737_s2  ;;  %v6571_v15 = vpop.eup %6570 }
 0x399   :  { %v2084_v21 = vadd.f32 1.0, %v6571_v15 }
 0x39b   :  { %6572 = vrcp.f32 %v2084_v21  ;;  %v2097_v23 = vand.u32 2147483648, %v2084_v21  ;;  %vm2091_vm12 = vweird.f32 %v2084_v21  ;;  %v2095_v34 = vand.u32 2147483647, %v2084_v21 }
 0x39d   :  { %v2098_v43 = vor.u32 1.1754944e-38, %v2097_v23  ;;  %vm2096_vm14 = vcmp.eq.f32.partialorder %v2095_v34, 8.507059e+37 }
 0x3a1   :  { %v6573_v17 = vpop.eup %6572 }
 0x3a2   :  { %v2087_v31 = vmul.f32 %v6573_v17, %v2084_v21  ;;  %vm2092_vm11 = vweird.f32 %v6573_v17 }
 0x3a3   :  { %vm2093_vm13 = vmor %vm2091_vm12, %vm2092_vm11 }
 0x3a4   :  { %v2088_v40 = vsub.f32 1.0, %v2087_v31 }
 0x3a6   :  { %v2089_v58 = vmul.f32 %v6573_v17, %v2088_v40 }
 0x3a8   :  { %v2090_v19 = vadd.f32 %v6573_v17, %v2089_v58 }
 0x3aa   :  { %v2094_v36 = vsel %vm2093_vm13, %v6573_v17, %v2090_v19 }
 0x3ab   :  { %v2099_v4 = vsel %vm2096_vm14, %v2098_v43, %v2094_v36  ;;  %v9345_v36 = vld [vmem:[#allocation28_spill] sm:$0xff]  ;;  %v9346_v43 = vld [vmem:[#allocation18_spill] sm:$0xff] }
 0x3ac   :  { %v2117_v30 = vmul.f32 %v2099_v4, %v7833_v37 }
 0x40a   :  { %v2120_v24 = vpop.permute.xlu1 %2119 }
 0x40b   :  { %v2122_v56 = vmul.f32 %v2120_v24, %v2099_v4  ;;  %v9347_v24 = vld [vmem:[#allocation16_spill] sm:$0xff]  ;;  %v9348_v4 = vld [vmem:[#allocation35_spill] sm:$0xff] }
 0x40d   :  { %2124 = vrot.lane.b32.xlu2 %v2122_v56, %s6737_s2  ;;  %v9349_v56 = vld [vmem:[#allocation22_spill] sm:$0xff] }
 0x467   :  { %v2125_v20 = vpop.permute.xlu2 %2124 }
 0x468   :  { %v7949_v7 = vadd.f32 %v2125_v20, %v2117_v30  ;;  %v9350_v30 = vld [vmem:[#allocation20_spill] sm:$0xff]  ;;  %v9351_v20 = vld [vmem:[#allocation38_spill] sm:$0xff] }
 0x46a   :  { %6574 = vtanh.f32 %v7949_v7 }
 0x46b   :  { %6576 = vpow2.f32 %v6512_v13  ;;  %v9353_v13 = vld [vmem:[#allocation25_spill] sm:$0xff] }
 0x470   :  { %v6575_v47 = vpop.eup %6574 }
 0x471   :  { %2130 = vrot.lane.b32.xlu2 %v6575_v47, %s6737_s2  ;;  %v6577_v6 = vpop.eup %6576  ;;  %v9352_v47 = vld [vmem:[#allocation26_spill] sm:$0xff] }
 0x472   :  { %v2085_v9 = vadd.f32 1.0, %v6577_v6  ;;  %v9354_v6 = vld [vmem:[#allocation40_spill] sm:$0xff] }
 0x474   :  { %6578 = vrcp.f32 %v2085_v9  ;;  %v2112_v37 = vand.u32 2147483648, %v2085_v9  ;;  %vm2106_vm1 = vweird.f32 %v2085_v9  ;;  %v2110_v3 = vand.u32 2147483647, %v2085_v9 }
 0x476   :  { %v2113_v15 = vor.u32 1.1754944e-38, %v2112_v37  ;;  %vm2111_vm3 = vcmp.eq.f32.partialorder %v2110_v3, 8.507059e+37  ;;  %v9361_v37 = vld [vmem:[#allocation10_spill] sm:$0xff]  ;;  %v9362_v3 = vld [vmem:[#allocation43_spill] sm:$0xff] }
 0x47a   :  { %v6579_v35 = vpop.eup %6578 }
 0x47b   :  { %v2102_v27 = vmul.f32 %v6579_v35, %v2085_v9  ;;  %vm2107_vm15 = vweird.f32 %v6579_v35  ;;  %v9355_v9 = vld [vmem:[#allocation30_spill] sm:$0xff] }
 0x47c   :  { %vm2108_vm2 = vmor %vm2106_vm1, %vm2107_vm15 }
 0x47d   :  { %v2103_v18 = vsub.f32 1.0, %v2102_v27  ;;  %v9357_v27 = vld [vmem:[#allocation32_spill] sm:$0xff] }
 0x47f   :  { %v2104_v22 = vmul.f32 %v6579_v35, %v2103_v18  ;;  %v9358_v18 = vld [vmem:[#allocation31_spill] sm:$0xff] }
 0x481   :  { %v2105_v52 = vadd.f32 %v6579_v35, %v2104_v22  ;;  %v9359_v22 = vld [vmem:[#allocation39_spill] sm:$0xff] }
 0x483   :  { %v2109_v62 = vsel %vm2108_vm2, %v6579_v35, %v2105_v52  ;;  %v9356_v35 = vld [vmem:[#allocation27_spill] sm:$0xff]  ;;  %v9360_v52 = vld [vmem:[#allocation41_spill] sm:$0xff] }
 0x484   :  { %v2114_v21 = vsel %vm2111_vm3, %v2113_v15, %v2109_v62  ;;  %v9363_v62 = vld [vmem:[#allocation11_spill] sm:$0xff]  ;;  %v9364_v15 = vld [vmem:[#allocation46_spill] sm:$0xff] }
 0x4cb   :  { %v2131_v17 = vpop.permute.xlu2 %2130 }
 0x4cc   :  { %v2133_v5 = vmul.f32 %v2131_v17, %v2114_v21  ;;  %v9365_v21 = vld [vmem:[#allocation14_spill] sm:$0xff]  ;;  %v9366_v17 = vld [vmem:[#allocation49_spill] sm:$0xff] }
 0x4ce   :  { %2134 = vst.msk [vmem:[#allocation2 + $0x8] sm:$0xff] %vm1595_vm9, %v2133_v5  ;;  %v2137_v31 = vsel %vm111_vm0, %v2133_v5, 0 }
 0x4cf   :  { %2135 = vst.msk [vmem:[#allocation2 + $0x30] sm:$0xff] %vm1597_vm10, %v2133_v5  ;;  %v2163_v40 = vand.u32 4294901760, %v2137_v31  ;;  %v9367_v5 = vld [vmem:[#allocation19_spill] sm:$0xff] }
 0x4d1   :  { %v2164_v58 = vsub.f32 %v2137_v31, %v2163_v40  ;;  %2229 = vmatmul.f32.vlgmr.msrb.gmra.mxu1 %v2163_v40  ;;  %v9368_v31 = vld [vmem:[#allocation50_spill] sm:$0xff] }
 0x4d2   :  { %2517 = vmatpush.msrb.mxu1 %v7368_v16 }
 0x4d3   :  { %2267 = vmatmul.f32.vlgmr.msrb.gmra.mxu2 %v2164_v58  ;;  %v2165_v19 = vand.u32 4294901760, %v2164_v58 }
 0x4d4   :  { %2519 = vmatpush.msrb.mxu1 %v7382_v54  ;;  %2550 = vmatpush.msrb.mxu2 %v7403_v61 }
 0x4d5   :  { %2298 = vmatmul.f32.vlgmr.msrb.gmra.mxu3 %v2165_v19  ;;  %v2166_v23 = vsub.f32 %v2164_v58, %v2165_v19 }
 0x4d6   :  { %2521 = vmatpush.msrb.mxu1 %v7405_v1  ;;  %2554 = vmatpush.msrb.mxu2 %v7424_v8 }
 0x4d7   :  { %2593 = vmatpush.msrb.mxu3 %v7368_v16  ;;  %v2167_v34 = vand.u32 4294901760, %v2166_v23  ;;  %v9372_v23 = vld [vmem:[#allocation56_spill] sm:$0xff] }
 0x4d8   :  { %2523 = vmatpush.msrb.mxu1 %v7426_v32  ;;  %2558 = vmatpush.msrb.mxu2 %v7450_v44 }
 0x4d9   :  { %2595 = vmatpush.msrb.mxu3 %v7382_v54  ;;  %2168 = vmatmul.f32.vlgmr.msrb.gmra.mxu0 %v2167_v34 }
 0x4da   :  { %2372 = vmatmul.f32.vlgmr.msra.gmra.mxu1 %v2163_v40  ;;  %2480 = vmatpush.msrb.mxu0 %v7385_v29 }
 0x4db   :  { %2525 = vmatpush.msrb.mxu1 %v7452_v0  ;;  %2562 = vmatpush.msrb.mxu2 %v7468_v42 }
 0x4dc   :  { %2597 = vmatpush.msrb.mxu3 %v7405_v1  ;;  %2405 = vmatmul.f32.vlgmr.msra.gmra.mxu2 %v2167_v34  ;;  %v9373_v34 = vld [vmem:[#allocation33_spill] sm:$0xff] }
 0x4dd   :  { %2483 = vmatpush.msrb.mxu0 %v7408_v28  ;;  %2527 = vmatpush.msrb.mxu1 %v7461_v46 }
 0x4de   :  { %2566 = vmatpush.msrb.mxu2 %v7489_v2  ;;  %2599 = vmatpush.msrb.mxu3 %v7426_v32 }
 0x4df   :  { %2466 = vmatmul.f32.vlgmr.msra.gmra.mxu3 %v2163_v40  ;;  %2486 = vmatpush.msrb.mxu0 %v7429_v60 }
 0x4e0   :  { %2529 = vmatpush.msrb.mxu1 %v7477_v57  ;;  %2570 = vmatpush.msrb.mxu2 %v7494_v41 }
 0x4e1   :  { %2601 = vmatpush.msrb.mxu3 %v7452_v0  ;;  %2489 = vmatpush.msrb.mxu0 %v7455_v63 }
 0x4e2   :  { %2531 = vmatpush.msrb.mxu1 %v7496_v38  ;;  %2574 = vmatpush.msrb.mxu2 %v7520_v48 }
 0x4e3   :  { %2603 = vmatpush.msrb.mxu3 %v7461_v46  ;;  %2343 = vmatmul.f32.vlgmr.msra.gmra.mxu0 %v2163_v40 }
 0x4e4   :  { %2535 = vmatmul.f32.vlgmr.msrb.gmra.mxu1 %v2165_v19  ;;  %2492 = vmatpush.msrb.mxu0 %v7471_v12  ;;  %v9371_v19 = vld [vmem:[#allocation29_spill] sm:$0xff] }
 0x4e5   :  { %2578 = vmatpush.msrb.mxu2 %v7536_v11  ;;  %2605 = vmatpush.msrb.mxu3 %v7477_v57 }
 0x4e6   :  { %2580 = vmatmul.f32.vlgmr.msrb.gmra.mxu2 %v2163_v40  ;;  %2495 = vmatpush.msrb.mxu0 %v7480_v51 }
 0x4e7   :  { %2607 = vmatpush.msrb.mxu3 %v7496_v38  ;;  %2722 = vmatpush.msra.mxu1 %v7268_v33 }
 0x4e8   :  { %2609 = vmatmul.f32.vlgmr.msrb.gmra.mxu3 %v2163_v40  ;;  %2498 = vmatpush.msrb.mxu0 %v7499_v49  ;;  %v9369_v40 = vld [vmem:[#allocation24_spill] sm:$0xff] }
 0x4e9   :  { %2728 = vmatpush.msra.mxu1 %v7288_v10  ;;  %2780 = vmatpush.msra.mxu2 %v7252_v50 }
 0x4ea   :  { %2501 = vmatpush.msrb.mxu0 %v7525_v53  ;;  %2817 = vmatpush.msra.mxu3 %v7249_v45 }
 0x4eb   :  { %2504 = vmatmul.f32.vlgmr.msrb.gmra.mxu0 %v2164_v58  ;;  %2734 = vmatpush.msra.mxu1 %v7315_v59  ;;  %v9370_v58 = vld [vmem:[#allocation53_spill] sm:$0xff] }
 0x4ec   :  { %2783 = vmatpush.msra.mxu2 %v7271_v26  ;;  %2819 = vmatpush.msra.mxu3 %v7266_v25 }
 0x4ed   :  { %2740 = vmatpush.msra.mxu1 %v9303_v39  ;;  %2685 = vmatpush.msra.mxu0 %v7249_v45 }
 0x4ee   :  { %2786 = vmatpush.msra.mxu2 %v9304_v14  ;;  %2821 = vmatpush.msra.mxu3 %v9305_v55 }
 0x4ef   :  { %2746 = vmatpush.msra.mxu1 %v9345_v36  ;;  %2687 = vmatpush.msra.mxu0 %v7266_v25 }
 0x4f0   :  { %2789 = vmatpush.msra.mxu2 %v9346_v43  ;;  %2823 = vmatpush.msra.mxu3 %v9347_v24 }
 0x4f1   :  { %2752 = vmatpush.msra.mxu1 %v9348_v4  ;;  %2689 = vmatpush.msra.mxu0 %v9305_v55 }
 0x4f2   :  { %2792 = vmatpush.msra.mxu2 %v9349_v56  ;;  %2825 = vmatpush.msra.mxu3 %v9350_v30 }
 0x4f3   :  { %2758 = vmatpush.msra.mxu1 %v9351_v20  ;;  %2691 = vmatpush.msra.mxu0 %v9347_v24 }
 0x4f4   :  { %2795 = vmatpush.msra.mxu2 %v9352_v47  ;;  %2827 = vmatpush.msra.mxu3 %v9353_v13  ;;  %v9380_v47 = vld [vmem:[#allocation103_spill] sm:$0xff] }
 0x4f5   :  { %2764 = vmatpush.msra.mxu1 %v9354_v6  ;;  %2693 = vmatpush.msra.mxu0 %v9350_v30 }
 0x4f6   :  { %2798 = vmatpush.msra.mxu2 %v9355_v9  ;;  %2829 = vmatpush.msra.mxu3 %v9356_v35 }
 0x4f7   :  { %2893 = vmatpush.msrb.mxu1 %v7249_v45  ;;  %2695 = vmatpush.msra.mxu0 %v9353_v13 }
 0x4f8   :  { %2801 = vmatpush.msra.mxu2 %v9357_v27  ;;  %2831 = vmatpush.msra.mxu3 %v9358_v18 }
 0x4f9   :  { %2895 = vmatpush.msrb.mxu1 %v7266_v25  ;;  %2697 = vmatpush.msra.mxu0 %v9356_v35 }
 0x4fa   :  { %2922 = vmatpush.msrb.mxu2 %v7368_v16  ;;  %2959 = vmatpush.msrb.mxu3 %v9359_v22 }
 0x4fb   :  { %2897 = vmatpush.msrb.mxu1 %v9305_v55  ;;  %2699 = vmatpush.msra.mxu0 %v9358_v18 }
 0x4fc   :  { %2924 = vmatpush.msrb.mxu2 %v7382_v54  ;;  %2965 = vmatpush.msrb.mxu3 %v9360_v52 }
 0x4fd   :  { %2899 = vmatpush.msrb.mxu1 %v9347_v24  ;;  %2850 = vmatpush.msrb.mxu0 %v9361_v37 }
 0x4fe   :  { %2926 = vmatpush.msrb.mxu2 %v7405_v1  ;;  %2971 = vmatpush.msrb.mxu3 %v9362_v3  ;;  %v9375_v3 = vld [vmem:[#allocation15_spill] sm:$0xff] }
 0x4ff   :  { %2901 = vmatpush.msrb.mxu1 %v9350_v30  ;;  %2854 = vmatpush.msrb.mxu0 %v9363_v62 }
 0x500   :  { %2928 = vmatpush.msrb.mxu2 %v7426_v32  ;;  %2977 = vmatpush.msrb.mxu3 %v9364_v15 }
 0x501   :  { %2903 = vmatpush.msrb.mxu1 %v9353_v13  ;;  %2858 = vmatpush.msrb.mxu0 %v9365_v21 }
 0x502   :  { %2930 = vmatpush.msrb.mxu2 %v7452_v0  ;;  %2983 = vmatpush.msrb.mxu3 %v9366_v17  ;;  %v9374_v17 = vld [vmem:[#allocation36_spill] sm:$0xff] }
 0x503   :  { %2905 = vmatpush.msrb.mxu1 %v9356_v35  ;;  %2862 = vmatpush.msrb.mxu0 %v9367_v5 }
 0x504   :  { %2932 = vmatpush.msrb.mxu2 %v7461_v46  ;;  %2989 = vmatpush.msrb.mxu3 %v9368_v31  ;;  %v9376_v31 = vld [vmem:[#allocation75_spill] sm:$0xff] }
 0x505   :  { %2907 = vmatpush.msrb.mxu1 %v9358_v18  ;;  %2866 = vmatpush.msrb.mxu0 %v9369_v40  ;;  %v637_v37 = vadd.f32 %v9376_v31, %v9375_v3  ;;  %v9377_v18 = vld [vmem:[#allocation76_spill] sm:$0xff] }
 0x506   :  { %2934 = vmatpush.msrb.mxu2 %v7477_v57  ;;  %2995 = vmatpush.msrb.mxu3 %v9370_v58  ;;  %v9381_v3 = vld [vmem:[#allocation104_spill] sm:$0xff] }
 0x507   :  { %2870 = vmatpush.msrb.mxu0 %v9371_v19  ;;  %v746_v58 = vadd.f32 %v9377_v18, %v637_v37  ;;  %v9378_v19 = vld [vmem:[#allocation97_spill] sm:$0xff] }
 0x508   :  { %2936 = vmatpush.msrb.mxu2 %v7496_v38  ;;  %3001 = vmatpush.msrb.mxu3 %v9372_v23  ;;  %v9379_v23 = vld [vmem:[#allocation102_spill] sm:$0xff] }
 0x509   :  { %2874 = vmatpush.msrb.mxu0 %v9373_v34  ;;  %v814_v35 = vadd.f32 %v9378_v19, %v746_v58  ;;  %v9383_v58 = vld [vmem:[#allocation69_spill] sm:$0xff] }
 0x50b   :  { %2878 = vmatpush.msrb.mxu0 %v9374_v17  ;;  %v882_v9 = vadd.f32 %v9379_v23, %v814_v35 }
 0x50d   :  { %v965_v20 = vadd.f32 %v9380_v47, %v882_v9 }
 0x50f   :  { %v1022_v24 = vadd.f32 %v9381_v3, %v965_v20 }
 0x54e   :  { %v2230_v5 = vpop.f32.mrf.mxu1 }
 0x556   :  { %v2169_v21 = vpop.f32.mrf.mxu0  ;;  %v2268_v15 = vpop.f32.mrf.mxu2 }
 0x557   :  { %v2373_v40 = vpop.f32.mrf.mxu1  ;;  %v2231_v37 = vadd.f32 %v2230_v5, %v2169_v21 }
 0x558   :  { %v2299_v62 = vpop.f32.mrf.mxu3 }
 0x559   :  { %v2269_v35 = vadd.f32 %v2268_v15, %v2231_v37 }
 0x55f   :  { %v2406_v22 = vpop.f32.mrf.mxu2 }
 0x560   :  { %v2344_v52 = vpop.f32.mrf.mxu0 }
 0x561   :  { %v2536_v13 = vpop.f32.mrf.mxu1 }
 0x562   :  { %v2467_v27 = vpop.f32.mrf.mxu3 }
 0x563   :  { %v2468_v34 = vadd.f32 %v2467_v27, %v2406_v22  ;;  %v2300_v27 = vadd.f32 %v2299_v62, %v2269_v35 }
 0x565   :  { %v2345_v22 = vadd.f32 %v2344_v52, %v2300_v27 }
 0x567   :  { %v2374_v47 = vadd.f32 %v2373_v40, %v2345_v22 }
 0x568   :  { %v2505_v6 = vpop.f32.mrf.mxu0 }
 0x569   :  { %v2506_v17 = vadd.f32 %v2505_v6, %v2468_v34  ;;  %v2581_v56 = vpop.f32.mrf.mxu2  ;;  %v9382_v6 = vld [vmem:[#allocation42_spill] sm:$0xff] }
 0x56a   :  { %v511_v19 = vadd.f32 %v9383_v58, %v9382_v6 }
 0x56b   :  { %v2537_v30 = vadd.f32 %v2536_v13, %v2506_v17  ;;  %v2610_v31 = vpop.f32.mrf.mxu3  ;;  %v9384_v13 = vld [vmem:[#allocation74_spill] sm:$0xff] }
 0x56c   :  { %v568_v9 = vadd.f32 %v9384_v13, %v511_v19 }
 0x56d   :  { %v2582_v4 = vadd.f32 %v2581_v56, %v2537_v30 }
 0x56e   :  { %v2613_v56 = vadd.f32 %v2374_v47, %v568_v9 }
 0x56f   :  { %v2611_v43 = vadd.f32 %v2610_v31, %v2582_v4 }
 0x570   :  { %v6513_v30 = vmul.f32 -1.442695, %v2613_v56 }
 0x571   :  { %v2614_v36 = vadd.f32 %v2611_v43, %v1022_v24 }
 0x573   :  { %6580 = vtanh.f32 %v2614_v36  ;;  %v6514_v27 = vmul.f32 -1.442695, %v2614_v36 }
 0x574   :  { %6582 = vpow2.f32 %v6513_v30 }
 0x579   :  { %v6581_v18 = vpop.eup %6580 }
 0x57a   :  { %2656 = vrot.lane.b32.xlu0 %v6581_v18, %s6737_s2  ;;  %v6583_v20 = vpop.eup %6582 }
 0x57b   :  { %v2621_v4 = vadd.f32 1.0, %v6583_v20 }
 0x57d   :  { %6584 = vrcp.f32 %v2621_v4  ;;  %v2634_v62 = vand.u32 2147483648, %v2621_v4  ;;  %vm2628_vm5 = vweird.f32 %v2621_v4  ;;  %v2632_v52 = vand.u32 2147483647, %v2621_v4 }
 0x57f   :  { %v2635_v5 = vor.u32 1.1754944e-38, %v2634_v62  ;;  %vm2633_vm7 = vcmp.eq.f32.partialorder %v2632_v52, 8.507059e+37 }
 0x583   :  { %v6585_v43 = vpop.eup %6584 }
 0x584   :  { %v2624_v24 = vmul.f32 %v6585_v43, %v2621_v4  ;;  %vm2629_vm4 = vweird.f32 %v6585_v43 }
 0x585   :  { %vm2630_vm6 = vmor %vm2628_vm5, %vm2629_vm4 }
 0x586   :  { %v2625_v3 = vsub.f32 1.0, %v2624_v24 }
 0x588   :  { %v2626_v17 = vmul.f32 %v6585_v43, %v2625_v3 }
 0x58a   :  { %v2627_v21 = vadd.f32 %v6585_v43, %v2626_v17 }
 0x58c   :  { %v2631_v15 = vsel %vm2630_vm6, %v6585_v43, %v2627_v21 }
 0x58d   :  { %v2636_v23 = vsel %vm2633_vm7, %v2635_v5, %v2631_v15  ;;  %v9385_v15 = vld [vmem:[#allocation28_spill] sm:$0xff]  ;;  %v9386_v5 = vld [vmem:[#allocation18_spill] sm:$0xff] }
 0x58e   :  { %v2654_v31 = vmul.f32 %v2636_v23, %v7949_v7 }
 0x5ec   :  { %v2657_v40 = vpop.permute.xlu0 %2656 }
 0x5ed   :  { %v2659_v34 = vmul.f32 %v2657_v40, %v2636_v23  ;;  %v9387_v40 = vld [vmem:[#allocation16_spill] sm:$0xff]  ;;  %v9388_v23 = vld [vmem:[#allocation35_spill] sm:$0xff] }
 0x5ef   :  { %2661 = vrot.lane.b32.xlu1 %v2659_v34, %s6737_s2  ;;  %v9389_v34 = vld [vmem:[#allocation22_spill] sm:$0xff] }
 0x661   :  { %v2662_v18 = vpop.permute.xlu1 %2661 }
 0x662   :  { %v8065_v37 = vadd.f32 %v2662_v18, %v2654_v31  ;;  %v9390_v31 = vld [vmem:[#allocation20_spill] sm:$0xff]  ;;  %v9391_v18 = vld [vmem:[#allocation38_spill] sm:$0xff] }
 0x664   :  { %6586 = vtanh.f32 %v8065_v37 }
 0x665   :  { %6588 = vpow2.f32 %v6514_v27  ;;  %v9393_v27 = vld [vmem:[#allocation25_spill] sm:$0xff] }
 0x66a   :  { %v6587_v35 = vpop.eup %6586 }
 0x66b   :  { %2667 = vrot.lane.b32.xlu2 %v6587_v35, %s6737_s2  ;;  %v6589_v22 = vpop.eup %6588  ;;  %v9392_v35 = vld [vmem:[#allocation26_spill] sm:$0xff] }
 0x66c   :  { %v2622_v6 = vadd.f32 1.0, %v6589_v22  ;;  %v9394_v22 = vld [vmem:[#allocation40_spill] sm:$0xff] }
 0x66e   :  { %6590 = vrcp.f32 %v2622_v6  ;;  %v2649_v7 = vand.u32 2147483648, %v2622_v6  ;;  %vm2643_vm11 = vweird.f32 %v2622_v6  ;;  %v2647_v56 = vand.u32 2147483647, %v2622_v6 }
 0x670   :  { %v2650_v20 = vor.u32 1.1754944e-38, %v2649_v7  ;;  %vm2648_vm13 = vcmp.eq.f32.partialorder %v2647_v56, 8.507059e+37  ;;  %v9401_v7 = vld [vmem:[#allocation10_spill] sm:$0xff]  ;;  %v9402_v56 = vld [vmem:[#allocation43_spill] sm:$0xff] }
 0x674   :  { %v6591_v58 = vpop.eup %6590 }
 0x675   :  { %v2639_v19 = vmul.f32 %v6591_v58, %v2622_v6  ;;  %vm2644_vm8 = vweird.f32 %v6591_v58  ;;  %v9395_v6 = vld [vmem:[#allocation30_spill] sm:$0xff] }
 0x676   :  { %vm2645_vm12 = vmor %vm2643_vm11, %vm2644_vm8 }
 0x677   :  { %v2640_v47 = vsub.f32 1.0, %v2639_v19  ;;  %v9397_v19 = vld [vmem:[#allocation32_spill] sm:$0xff] }
 0x679   :  { %v2641_v13 = vmul.f32 %v6591_v58, %v2640_v47  ;;  %v9398_v47 = vld [vmem:[#allocation31_spill] sm:$0xff] }
 0x67b   :  { %v2642_v9 = vadd.f32 %v6591_v58, %v2641_v13  ;;  %v9399_v13 = vld [vmem:[#allocation39_spill] sm:$0xff] }
 0x67d   :  { %v2646_v30 = vsel %vm2645_vm12, %v6591_v58, %v2642_v9  ;;  %v9396_v58 = vld [vmem:[#allocation27_spill] sm:$0xff]  ;;  %v9400_v9 = vld [vmem:[#allocation41_spill] sm:$0xff] }
 0x67e   :  { %v2651_v4 = vsel %vm2648_vm13, %v2650_v20, %v2646_v30  ;;  %v9403_v30 = vld [vmem:[#allocation11_spill] sm:$0xff]  ;;  %v9404_v20 = vld [vmem:[#allocation46_spill] sm:$0xff] }
 0x6c5   :  { %v2668_v43 = vpop.permute.xlu2 %2667 }
 0x6c6   :  { %v2670_v36 = vmul.f32 %v2668_v43, %v2651_v4  ;;  %v9405_v4 = vld [vmem:[#allocation14_spill] sm:$0xff]  ;;  %v9406_v43 = vld [vmem:[#allocation49_spill] sm:$0xff] }
 0x6c8   :  { %2671 = vst.msk [vmem:[#allocation2 + $0x10] sm:$0xff] %vm1595_vm9, %v2670_v36  ;;  %v2674_v24 = vsel %vm111_vm0, %v2670_v36, 0 }
 0x6c9   :  { %2672 = vst.msk [vmem:[#allocation2 + $0x28] sm:$0xff] %vm1597_vm10, %v2670_v36  ;;  %v2700_v3 = vand.u32 4294901760, %v2674_v24  ;;  %v9407_v36 = vld [vmem:[#allocation19_spill] sm:$0xff] }
 0x6cb   :  { %v2701_v17 = vsub.f32 %v2674_v24, %v2700_v3  ;;  %2766 = vmatmul.f32.vlgmr.msra.gmra.mxu1 %v2700_v3  ;;  %v9408_v24 = vld [vmem:[#allocation50_spill] sm:$0xff] }
 0x6cc   :  { %3054 = vmatpush.msra.mxu1 %v7368_v16 }
 0x6cd   :  { %2804 = vmatmul.f32.vlgmr.msra.gmra.mxu2 %v2701_v17  ;;  %v2702_v21 = vand.u32 4294901760, %v2701_v17 }
 0x6ce   :  { %3056 = vmatpush.msra.mxu1 %v7382_v54  ;;  %3087 = vmatpush.msra.mxu2 %v7403_v61 }
 0x6cf   :  { %2835 = vmatmul.f32.vlgmr.msra.gmra.mxu3 %v2702_v21  ;;  %v2703_v62 = vsub.f32 %v2701_v17, %v2702_v21 }
 0x6d0   :  { %3058 = vmatpush.msra.mxu1 %v7405_v1  ;;  %3091 = vmatpush.msra.mxu2 %v7424_v8 }
 0x6d1   :  { %3130 = vmatpush.msra.mxu3 %v7368_v16  ;;  %v2704_v52 = vand.u32 4294901760, %v2703_v62  ;;  %v9412_v62 = vld [vmem:[#allocation56_spill] sm:$0xff] }
 0x6d2   :  { %3060 = vmatpush.msra.mxu1 %v7426_v32  ;;  %3095 = vmatpush.msra.mxu2 %v7450_v44 }
 0x6d3   :  { %3132 = vmatpush.msra.mxu3 %v7382_v54  ;;  %2705 = vmatmul.f32.vlgmr.msra.gmra.mxu0 %v2704_v52 }
 0x6d4   :  { %2909 = vmatmul.f32.vlgmr.msrb.gmra.mxu1 %v2700_v3  ;;  %3017 = vmatpush.msra.mxu0 %v7385_v29 }
 0x6d5   :  { %3062 = vmatpush.msra.mxu1 %v7452_v0  ;;  %3099 = vmatpush.msra.mxu2 %v7468_v42 }
 0x6d6   :  { %3134 = vmatpush.msra.mxu3 %v7405_v1  ;;  %2942 = vmatmul.f32.vlgmr.msrb.gmra.mxu2 %v2704_v52  ;;  %v9413_v52 = vld [vmem:[#allocation33_spill] sm:$0xff] }
 0x6d7   :  { %3020 = vmatpush.msra.mxu0 %v7408_v28  ;;  %3064 = vmatpush.msra.mxu1 %v7461_v46 }
 0x6d8   :  { %3103 = vmatpush.msra.mxu2 %v7489_v2  ;;  %3136 = vmatpush.msra.mxu3 %v7426_v32 }
 0x6d9   :  { %3003 = vmatmul.f32.vlgmr.msrb.gmra.mxu3 %v2700_v3  ;;  %3023 = vmatpush.msra.mxu0 %v7429_v60 }
 0x6da   :  { %3066 = vmatpush.msra.mxu1 %v7477_v57  ;;  %3107 = vmatpush.msra.mxu2 %v7494_v41 }
 0x6db   :  { %3138 = vmatpush.msra.mxu3 %v7452_v0  ;;  %3026 = vmatpush.msra.mxu0 %v7455_v63 }
 0x6dc   :  { %3068 = vmatpush.msra.mxu1 %v7496_v38  ;;  %3111 = vmatpush.msra.mxu2 %v7520_v48 }
 0x6dd   :  { %3140 = vmatpush.msra.mxu3 %v7461_v46  ;;  %2880 = vmatmul.f32.vlgmr.msrb.gmra.mxu0 %v2700_v3 }
 0x6de   :  { %3072 = vmatmul.f32.vlgmr.msra.gmra.mxu1 %v2702_v21  ;;  %3029 = vmatpush.msra.mxu0 %v7471_v12  ;;  %v9411_v21 = vld [vmem:[#allocation29_spill] sm:$0xff] }
 0x6df   :  { %3115 = vmatpush.msra.mxu2 %v7536_v11  ;;  %3142 = vmatpush.msra.mxu3 %v7477_v57 }
 0x6e0   :  { %3117 = vmatmul.f32.vlgmr.msra.gmra.mxu2 %v2700_v3  ;;  %3032 = vmatpush.msra.mxu0 %v7480_v51 }
 0x6e1   :  { %3144 = vmatpush.msra.mxu3 %v7496_v38  ;;  %3259 = vmatpush.msrb.mxu1 %v7268_v33 }
 0x6e2   :  { %3146 = vmatmul.f32.vlgmr.msra.gmra.mxu3 %v2700_v3  ;;  %3035 = vmatpush.msra.mxu0 %v7499_v49  ;;  %v9409_v3 = vld [vmem:[#allocation24_spill] sm:$0xff] }
 0x6e3   :  { %3265 = vmatpush.msrb.mxu1 %v7288_v10  ;;  %3317 = vmatpush.msrb.mxu2 %v7252_v50 }
 0x6e4   :  { %3038 = vmatpush.msra.mxu0 %v7525_v53  ;;  %3354 = vmatpush.msrb.mxu3 %v7249_v45 }
 0x6e5   :  { %3041 = vmatmul.f32.vlgmr.msra.gmra.mxu0 %v2701_v17  ;;  %3271 = vmatpush.msrb.mxu1 %v7315_v59  ;;  %v9410_v17 = vld [vmem:[#allocation53_spill] sm:$0xff] }
 0x6e6   :  { %3320 = vmatpush.msrb.mxu2 %v7271_v26  ;;  %3356 = vmatpush.msrb.mxu3 %v7266_v25 }
 0x6e7   :  { %3277 = vmatpush.msrb.mxu1 %v9303_v39  ;;  %3222 = vmatpush.msrb.mxu0 %v7249_v45 }
 0x6e8   :  { %3323 = vmatpush.msrb.mxu2 %v9304_v14  ;;  %3358 = vmatpush.msrb.mxu3 %v9305_v55 }
 0x6e9   :  { %3283 = vmatpush.msrb.mxu1 %v9385_v15  ;;  %3224 = vmatpush.msrb.mxu0 %v7266_v25 }
 0x6ea   :  { %3326 = vmatpush.msrb.mxu2 %v9386_v5  ;;  %3360 = vmatpush.msrb.mxu3 %v9387_v40 }
 0x6eb   :  { %3289 = vmatpush.msrb.mxu1 %v9388_v23  ;;  %3226 = vmatpush.msrb.mxu0 %v9305_v55 }
 0x6ec   :  { %3329 = vmatpush.msrb.mxu2 %v9389_v34  ;;  %3362 = vmatpush.msrb.mxu3 %v9390_v31 }
 0x6ed   :  { %3295 = vmatpush.msrb.mxu1 %v9391_v18  ;;  %3228 = vmatpush.msrb.mxu0 %v9387_v40 }
 0x6ee   :  { %3332 = vmatpush.msrb.mxu2 %v9392_v35  ;;  %3364 = vmatpush.msrb.mxu3 %v9393_v27  ;;  %v9420_v35 = vld [vmem:[#allocation107_spill] sm:$0xff] }
 0x6ef   :  { %3301 = vmatpush.msrb.mxu1 %v9394_v22  ;;  %3230 = vmatpush.msrb.mxu0 %v9390_v31 }
 0x6f0   :  { %3335 = vmatpush.msrb.mxu2 %v9395_v6  ;;  %3366 = vmatpush.msrb.mxu3 %v9396_v58 }
 0x6f1   :  { %3430 = vmatpush.msra.mxu1 %v7249_v45  ;;  %3232 = vmatpush.msrb.mxu0 %v9393_v27 }
 0x6f2   :  { %3338 = vmatpush.msrb.mxu2 %v9397_v19  ;;  %3368 = vmatpush.msrb.mxu3 %v9398_v47 }
 0x6f3   :  { %3432 = vmatpush.msra.mxu1 %v7266_v25  ;;  %3234 = vmatpush.msrb.mxu0 %v9396_v58 }
 0x6f4   :  { %3459 = vmatpush.msra.mxu2 %v7368_v16  ;;  %3496 = vmatpush.msra.mxu3 %v9399_v13 }
 0x6f5   :  { %3434 = vmatpush.msra.mxu1 %v9305_v55  ;;  %3236 = vmatpush.msrb.mxu0 %v9398_v47 }
 0x6f6   :  { %3461 = vmatpush.msra.mxu2 %v7382_v54  ;;  %3502 = vmatpush.msra.mxu3 %v9400_v9 }
 0x6f7   :  { %3436 = vmatpush.msra.mxu1 %v9387_v40  ;;  %3387 = vmatpush.msra.mxu0 %v9401_v7 }
 0x6f8   :  { %3463 = vmatpush.msra.mxu2 %v7405_v1  ;;  %3508 = vmatpush.msra.mxu3 %v9402_v56  ;;  %v9415_v56 = vld [vmem:[#allocation15_spill] sm:$0xff] }
 0x6f9   :  { %3438 = vmatpush.msra.mxu1 %v9390_v31  ;;  %3391 = vmatpush.msra.mxu0 %v9403_v30 }
 0x6fa   :  { %3465 = vmatpush.msra.mxu2 %v7426_v32  ;;  %3514 = vmatpush.msra.mxu3 %v9404_v20 }
 0x6fb   :  { %3440 = vmatpush.msra.mxu1 %v9393_v27  ;;  %3395 = vmatpush.msra.mxu0 %v9405_v4 }
 0x6fc   :  { %3467 = vmatpush.msra.mxu2 %v7452_v0  ;;  %3520 = vmatpush.msra.mxu3 %v9406_v43  ;;  %v9414_v43 = vld [vmem:[#allocation36_spill] sm:$0xff] }
 0x6fd   :  { %3442 = vmatpush.msra.mxu1 %v9396_v58  ;;  %3399 = vmatpush.msra.mxu0 %v9407_v36 }
 0x6fe   :  { %3469 = vmatpush.msra.mxu2 %v7461_v46  ;;  %3526 = vmatpush.msra.mxu3 %v9408_v24  ;;  %v9416_v24 = vld [vmem:[#allocation79_spill] sm:$0xff] }
 0x6ff   :  { %3444 = vmatpush.msra.mxu1 %v9398_v47  ;;  %3403 = vmatpush.msra.mxu0 %v9409_v3  ;;  %v645_v7 = vadd.f32 %v9416_v24, %v9415_v56  ;;  %v9417_v47 = vld [vmem:[#allocation80_spill] sm:$0xff] }
 0x700   :  { %3471 = vmatpush.msra.mxu2 %v7477_v57  ;;  %3532 = vmatpush.msra.mxu3 %v9410_v17  ;;  %v9421_v56 = vld [vmem:[#allocation108_spill] sm:$0xff] }
 0x701   :  { %3407 = vmatpush.msra.mxu0 %v9411_v21  ;;  %v750_v17 = vadd.f32 %v9417_v47, %v645_v7  ;;  %v9418_v21 = vld [vmem:[#allocation101_spill] sm:$0xff] }
 0x702   :  { %3473 = vmatpush.msra.mxu2 %v7496_v38  ;;  %3538 = vmatpush.msra.mxu3 %v9412_v62  ;;  %v9419_v62 = vld [vmem:[#allocation106_spill] sm:$0xff]  ;;  %v9422_v7 = vld [vmem:[#allocation17_spill] sm:$0xff] }
 0x703   :  { %3411 = vmatpush.msra.mxu0 %v9413_v52  ;;  %v819_v58 = vadd.f32 %v9418_v21, %v750_v17 }
 0x705   :  { %3415 = vmatpush.msra.mxu0 %v9414_v43  ;;  %v888_v6 = vadd.f32 %v9419_v62, %v819_v58  ;;  %v9423_v58 = vld [vmem:[#allocation37_spill] sm:$0xff] }
 0x707   :  { %v969_v18 = vadd.f32 %v9420_v35, %v888_v6  ;;  %v9425_v35 = vld [vmem:[#allocation47_spill] sm:$0xff] }
 0x709   :  { %v1026_v40 = vadd.f32 %v9421_v56, %v969_v18  ;;  %v9427_v18 = vld [vmem:[#allocation73_spill] sm:$0xff] }
 0x748   :  { %v2767_v36 = vpop.f32.mrf.mxu1 }
 0x750   :  { %v2706_v4 = vpop.f32.mrf.mxu0  ;;  %v2805_v20 = vpop.f32.mrf.mxu2 }
 0x751   :  { %v2910_v3 = vpop.f32.mrf.mxu1 }
 0x752   :  { %v2836_v30 = vpop.f32.mrf.mxu3 }
 0x759   :  { %v2943_v13 = vpop.f32.mrf.mxu2 }
 0x75a   :  { %v2881_v9 = vpop.f32.mrf.mxu0 }
 0x75b   :  { %v3073_v27 = vpop.f32.mrf.mxu1 }
 0x75c   :  { %v3004_v19 = vpop.f32.mrf.mxu3 }
 0x75d   :  { %v3005_v52 = vadd.f32 %v3004_v19, %v2943_v13  ;;  %v191_v19 = vadd.f32 %v9423_v58, %v9422_v7  ;;  %v2768_v13 = vadd.f32 %v2767_v36, %v2706_v4 }
 0x75f   :  { %v2806_v21 = vadd.f32 %v2805_v20, %v2768_v13 }
 0x761   :  { %v2837_v6 = vadd.f32 %v2836_v30, %v2806_v21 }
 0x762   :  { %v3042_v22 = vpop.f32.mrf.mxu0 }
 0x763   :  { %v3043_v43 = vadd.f32 %v3042_v22, %v3005_v52  ;;  %v3118_v34 = vpop.f32.mrf.mxu2  ;;  %v9424_v22 = vld [vmem:[#allocation45_spill] sm:$0xff] }
 0x764   :  { %v296_v17 = vadd.f32 %v9424_v22, %v191_v19 }
 0x765   :  { %v3074_v31 = vadd.f32 %v3073_v27, %v3043_v43  ;;  %v3147_v24 = vpop.f32.mrf.mxu3 }
 0x766   :  { %v365_v27 = vadd.f32 %v9425_v35, %v296_v17 }
 0x767   :  { %v3119_v23 = vadd.f32 %v3118_v34, %v3074_v31  ;;  %v2882_v34 = vadd.f32 %v2881_v9, %v2837_v6  ;;  %v9426_v31 = vld [vmem:[#allocation48_spill] sm:$0xff] }
 0x768   :  { %v434_v43 = vadd.f32 %v9426_v31, %v365_v27 }
 0x769   :  { %v3148_v5 = vadd.f32 %v3147_v24, %v3119_v23 }
 0x76a   :  { %v515_v23 = vadd.f32 %v9427_v18, %v434_v43 }
 0x76b   :  { %v3151_v15 = vadd.f32 %v3148_v5, %v1026_v40  ;;  %v2911_v5 = vadd.f32 %v2910_v3, %v2882_v34  ;;  %v9428_v40 = vld [vmem:[#allocation78_spill] sm:$0xff] }
 0x76c   :  { %v572_v56 = vadd.f32 %v9428_v40, %v515_v23 }
 0x76d   :  { %6592 = vtanh.f32 %v3151_v15  ;;  %v6516_v31 = vmul.f32 -1.442695, %v3151_v15 }
 0x76e   :  { %v3150_v62 = vadd.f32 %v2911_v5, %v572_v56 }
 0x770   :  { %v6515_v52 = vmul.f32 -1.442695, %v3150_v62 }
 0x772   :  { %6594 = vpow2.f32 %v6515_v52 }
 0x773   :  { %v6593_v47 = vpop.eup %6592 }
 0x774   :  { %3193 = vrot.lane.b32.xlu0 %v6593_v47, %s6737_s2 }
 0x778   :  { %v6595_v24 = vpop.eup %6594 }
 0x779   :  { %v3158_v47 = vadd.f32 1.0, %v6595_v24 }
 0x77b   :  { %6596 = vrcp.f32 %v3158_v47  ;;  %v3171_v9 = vand.u32 2147483648, %v3158_v47  ;;  %vm3165_vm15 = vweird.f32 %v3158_v47  ;;  %v3169_v30 = vand.u32 2147483647, %v3158_v47 }
 0x77d   :  { %v3172_v3 = vor.u32 1.1754944e-38, %v3171_v9  ;;  %vm3170_vm2 = vcmp.eq.f32.partialorder %v3169_v30, 8.507059e+37 }
 0x781   :  { %v6597_v4 = vpop.eup %6596 }
 0x782   :  { %v3161_v36 = vmul.f32 %v6597_v4, %v3158_v47  ;;  %vm3166_vm14 = vweird.f32 %v6597_v4 }
 0x783   :  { %vm3167_vm1 = vmor %vm3165_vm15, %vm3166_vm14 }
 0x784   :  { %v3162_v20 = vsub.f32 1.0, %v3161_v36 }
 0x786   :  { %v3163_v58 = vmul.f32 %v6597_v4, %v3162_v20 }
 0x788   :  { %v3164_v19 = vadd.f32 %v6597_v4, %v3163_v58 }
 0x78a   :  { %v3168_v13 = vsel %vm3167_vm1, %v6597_v4, %v3164_v19 }
 0x78b   :  { %v3173_v17 = vsel %vm3170_vm2, %v3172_v3, %v3168_v13  ;;  %v9429_v3 = vld [vmem:[#allocation28_spill] sm:$0xff] }
 0x78c   :  { %v3191_v35 = vmul.f32 %v3173_v17, %v8065_v37 }
 0x7e6   :  { %v3194_v22 = vpop.permute.xlu0 %3193 }
 0x7e7   :  { %v3196_v21 = vmul.f32 %v3194_v22, %v3173_v17  ;;  %v9430_v22 = vld [vmem:[#allocation18_spill] sm:$0xff]  ;;  %v9431_v17 = vld [vmem:[#allocation16_spill] sm:$0xff] }
 0x7e9   :  { %3198 = vrot.lane.b32.xlu1 %v3196_v21, %s6737_s2  ;;  %v9432_v21 = vld [vmem:[#allocation35_spill] sm:$0xff] }
 0x85b   :  { %v3199_v27 = vpop.permute.xlu1 %3198 }
 0x85c   :  { %v8185_v6 = vadd.f32 %v3199_v27, %v3191_v35  ;;  %v9433_v35 = vld [vmem:[#allocation22_spill] sm:$0xff]  ;;  %v9434_v27 = vld [vmem:[#allocation20_spill] sm:$0xff] }
 0x85e   :  { %6598 = vtanh.f32 %v8185_v6 }
 0x85f   :  { %6600 = vpow2.f32 %v6516_v31  ;;  %v9436_v31 = vld [vmem:[#allocation26_spill] sm:$0xff] }
 0x864   :  { %v6599_v34 = vpop.eup %6598 }
 0x865   :  { %3204 = vrot.lane.b32.xlu2 %v6599_v34, %s6737_s2  ;;  %v6601_v43 = vpop.eup %6600  ;;  %v9435_v34 = vld [vmem:[#allocation38_spill] sm:$0xff] }
 0x866   :  { %v3159_v18 = vadd.f32 1.0, %v6601_v43  ;;  %v9437_v43 = vld [vmem:[#allocation25_spill] sm:$0xff] }
 0x868   :  { %6602 = vrcp.f32 %v3159_v18  ;;  %v3186_v37 = vand.u32 2147483648, %v3159_v18  ;;  %vm3180_vm4 = vweird.f32 %v3159_v18  ;;  %v3184_v52 = vand.u32 2147483647, %v3159_v18 }
 0x86a   :  { %v3187_v47 = vor.u32 1.1754944e-38, %v3186_v37  ;;  %vm3185_vm6 = vcmp.eq.f32.partialorder %v3184_v52, 8.507059e+37  ;;  %v9444_v37 = vld [vmem:[#allocation41_spill] sm:$0xff]  ;;  %v9445_v52 = vld [vmem:[#allocation10_spill] sm:$0xff] }
 0x86e   :  { %v6603_v23 = vpop.eup %6602 }
 0x86f   :  { %v3176_v5 = vmul.f32 %v6603_v23, %v3159_v18  ;;  %vm3181_vm3 = vweird.f32 %v6603_v23  ;;  %v9438_v18 = vld [vmem:[#allocation40_spill] sm:$0xff] }
 0x870   :  { %vm3182_vm5 = vmor %vm3180_vm4, %vm3181_vm3 }
 0x871   :  { %v3177_v40 = vsub.f32 1.0, %v3176_v5  ;;  %v9440_v5 = vld [vmem:[#allocation27_spill] sm:$0xff] }
 0x873   :  { %v3178_v56 = vmul.f32 %v6603_v23, %v3177_v40  ;;  %v9441_v40 = vld [vmem:[#allocation32_spill] sm:$0xff] }
 0x875   :  { %v3179_v62 = vadd.f32 %v6603_v23, %v3178_v56  ;;  %v9442_v56 = vld [vmem:[#allocation31_spill] sm:$0xff] }
 0x877   :  { %v3183_v24 = vsel %vm3182_vm5, %v6603_v23, %v3179_v62  ;;  %v9439_v23 = vld [vmem:[#allocation30_spill] sm:$0xff]  ;;  %v9443_v62 = vld [vmem:[#allocation39_spill] sm:$0xff] }
 0x878   :  { %v3188_v4 = vsel %vm3185_vm6, %v3187_v47, %v3183_v24  ;;  %v9446_v24 = vld [vmem:[#allocation43_spill] sm:$0xff] }
 0x879   :  { %v9447_v47 = vld [vmem:[#allocation11_spill] sm:$0xff] }
 0x8bf   :  { %v3205_v36 = vpop.permute.xlu2 %3204 }
 0x8c0   :  { %v3207_v15 = vmul.f32 %v3205_v36, %v3188_v4  ;;  %v9448_v4 = vld [vmem:[#allocation46_spill] sm:$0xff] }
 0x8c1   :  { %v9449_v36 = vld [vmem:[#allocation14_spill] sm:$0xff] }
 0x8c2   :  { %3208 = vst.msk [vmem:[#allocation2 + $0x18] sm:$0xff] %vm1595_vm9, %v3207_v15  ;;  %v3211_v20 = vsel %vm111_vm0, %v3207_v15, 0 }
 0x8c3   :  { %3209 = vst.msk [vmem:[#allocation2 + $0x20] sm:$0xff] %vm1597_vm10, %v3207_v15  ;;  %v3237_v58 = vand.u32 4294901760, %v3211_v20  ;;  %v9450_v15 = vld [vmem:[#allocation49_spill] sm:$0xff] }
 0x8c5   :  { %v3238_v19 = vsub.f32 %v3211_v20, %v3237_v58  ;;  %3303 = vmatmul.f32.vlgmr.msrb.gmra.mxu1 %v3237_v58  ;;  %v9451_v20 = vld [vmem:[#allocation19_spill] sm:$0xff] }
 0x8c6   :  { %3591 = vmatpush.msrb.mxu1 %v7368_v16 }
 0x8c7   :  { %3341 = vmatmul.f32.vlgmr.msrb.gmra.mxu2 %v3238_v19  ;;  %v3239_v9 = vand.u32 4294901760, %v3238_v19 }
 0x8c8   :  { %3593 = vmatpush.msrb.mxu1 %v7382_v54  ;;  %3624 = vmatpush.msrb.mxu2 %v7403_v61 }
 0x8c9   :  { %3372 = vmatmul.f32.vlgmr.msrb.gmra.mxu3 %v3239_v9  ;;  %v3240_v30 = vsub.f32 %v3238_v19, %v3239_v9 }
 0x8ca   :  { %3595 = vmatpush.msrb.mxu1 %v7405_v1  ;;  %3628 = vmatpush.msrb.mxu2 %v7424_v8 }
 0x8cb   :  { %3667 = vmatpush.msrb.mxu3 %v7368_v16  ;;  %v3241_v13 = vand.u32 4294901760, %v3240_v30  ;;  %v9455_v30 = vld [vmem:[#allocation29_spill] sm:$0xff] }
 0x8cc   :  { %3597 = vmatpush.msrb.mxu1 %v7426_v32  ;;  %3632 = vmatpush.msrb.mxu2 %v7450_v44 }
 0x8cd   :  { %3669 = vmatpush.msrb.mxu3 %v7382_v54  ;;  %3242 = vmatmul.f32.vlgmr.msrb.gmra.mxu0 %v3241_v13 }
 0x8ce   :  { %3446 = vmatmul.f32.vlgmr.msra.gmra.mxu1 %v3237_v58  ;;  %3554 = vmatpush.msrb.mxu0 %v7385_v29 }
 0x8cf   :  { %3599 = vmatpush.msrb.mxu1 %v7452_v0  ;;  %3636 = vmatpush.msrb.mxu2 %v7468_v42 }
 0x8d0   :  { %3671 = vmatpush.msrb.mxu3 %v7405_v1  ;;  %3479 = vmatmul.f32.vlgmr.msra.gmra.mxu2 %v3241_v13  ;;  %v9456_v13 = vld [vmem:[#allocation56_spill] sm:$0xff] }
 0x8d1   :  { %3557 = vmatpush.msrb.mxu0 %v7408_v28  ;;  %3601 = vmatpush.msrb.mxu1 %v7461_v46 }
 0x8d2   :  { %3640 = vmatpush.msrb.mxu2 %v7489_v2  ;;  %3673 = vmatpush.msrb.mxu3 %v7426_v32 }
 0x8d3   :  { %3540 = vmatmul.f32.vlgmr.msra.gmra.mxu3 %v3237_v58  ;;  %3560 = vmatpush.msrb.mxu0 %v7429_v60 }
 0x8d4   :  { %3603 = vmatpush.msrb.mxu1 %v7477_v57  ;;  %3644 = vmatpush.msrb.mxu2 %v7494_v41 }
 0x8d5   :  { %3675 = vmatpush.msrb.mxu3 %v7452_v0  ;;  %3563 = vmatpush.msrb.mxu0 %v7455_v63 }
 0x8d6   :  { %3605 = vmatpush.msrb.mxu1 %v7496_v38  ;;  %3648 = vmatpush.msrb.mxu2 %v7520_v48 }
 0x8d7   :  { %3677 = vmatpush.msrb.mxu3 %v7461_v46  ;;  %3417 = vmatmul.f32.vlgmr.msra.gmra.mxu0 %v3237_v58 }
 0x8d8   :  { %3609 = vmatmul.f32.vlgmr.msrb.gmra.mxu1 %v3239_v9  ;;  %3566 = vmatpush.msrb.mxu0 %v7471_v12  ;;  %v9454_v9 = vld [vmem:[#allocation53_spill] sm:$0xff] }
 0x8d9   :  { %3652 = vmatpush.msrb.mxu2 %v7536_v11  ;;  %3679 = vmatpush.msrb.mxu3 %v7477_v57 }
 0x8da   :  { %3654 = vmatmul.f32.vlgmr.msrb.gmra.mxu2 %v3237_v58  ;;  %3569 = vmatpush.msrb.mxu0 %v7480_v51 }
 0x8db   :  { %3681 = vmatpush.msrb.mxu3 %v7496_v38  ;;  %3796 = vmatpush.msra.mxu1 %v7268_v33 }
 0x8dc   :  { %3683 = vmatmul.f32.vlgmr.msrb.gmra.mxu3 %v3237_v58  ;;  %3572 = vmatpush.msrb.mxu0 %v7499_v49  ;;  %v9452_v58 = vld [vmem:[#allocation50_spill] sm:$0xff] }
 0x8dd   :  { %3802 = vmatpush.msra.mxu1 %v7288_v10  ;;  %3854 = vmatpush.msra.mxu2 %v7252_v50 }
 0x8de   :  { %3575 = vmatpush.msrb.mxu0 %v7525_v53  ;;  %3891 = vmatpush.msra.mxu3 %v7249_v45 }
 0x8df   :  { %3578 = vmatmul.f32.vlgmr.msrb.gmra.mxu0 %v3238_v19  ;;  %3808 = vmatpush.msra.mxu1 %v7315_v59  ;;  %v9453_v19 = vld [vmem:[#allocation24_spill] sm:$0xff] }
 0x8e0   :  { %3857 = vmatpush.msra.mxu2 %v7271_v26  ;;  %3893 = vmatpush.msra.mxu3 %v7266_v25 }
 0x8e1   :  { %3814 = vmatpush.msra.mxu1 %v9303_v39  ;;  %3759 = vmatpush.msra.mxu0 %v7249_v45 }
 0x8e2   :  { %3860 = vmatpush.msra.mxu2 %v9304_v14  ;;  %3895 = vmatpush.msra.mxu3 %v9305_v55 }
 0x8e3   :  { %3820 = vmatpush.msra.mxu1 %v9429_v3  ;;  %3761 = vmatpush.msra.mxu0 %v7266_v25 }
 0x8e4   :  { %3863 = vmatpush.msra.mxu2 %v9430_v22  ;;  %3897 = vmatpush.msra.mxu3 %v9431_v17 }
 0x8e5   :  { %3826 = vmatpush.msra.mxu1 %v9432_v21  ;;  %3763 = vmatpush.msra.mxu0 %v9305_v55 }
 0x8e6   :  { %3866 = vmatpush.msra.mxu2 %v9433_v35  ;;  %3899 = vmatpush.msra.mxu3 %v9434_v27 }
 0x8e7   :  { %3832 = vmatpush.msra.mxu1 %v9435_v34  ;;  %3765 = vmatpush.msra.mxu0 %v9431_v17  ;;  %v9464_v34 = vld [vmem:[#allocation111_spill] sm:$0xff] }
 0x8e8   :  { %3869 = vmatpush.msra.mxu2 %v9436_v31  ;;  %3901 = vmatpush.msra.mxu3 %v9437_v43 }
 0x8e9   :  { %3838 = vmatpush.msra.mxu1 %v9438_v18  ;;  %3767 = vmatpush.msra.mxu0 %v9434_v27 }
 0x8ea   :  { %3872 = vmatpush.msra.mxu2 %v9439_v23  ;;  %3903 = vmatpush.msra.mxu3 %v9440_v5 }
 0x8eb   :  { %3967 = vmatpush.msrb.mxu1 %v7249_v45  ;;  %3769 = vmatpush.msra.mxu0 %v9437_v43 }
 0x8ec   :  { %3875 = vmatpush.msra.mxu2 %v9441_v40  ;;  %3905 = vmatpush.msra.mxu3 %v9442_v56  ;;  %v9461_v40 = vld [vmem:[#allocation84_spill] sm:$0xff] }
 0x8ed   :  { %3969 = vmatpush.msrb.mxu1 %v7266_v25  ;;  %3771 = vmatpush.msra.mxu0 %v9440_v5 }
 0x8ee   :  { %3996 = vmatpush.msrb.mxu2 %v7368_v16  ;;  %4033 = vmatpush.msrb.mxu3 %v9443_v62 }
 0x8ef   :  { %3971 = vmatpush.msrb.mxu1 %v9305_v55  ;;  %3773 = vmatpush.msra.mxu0 %v9442_v56 }
 0x8f0   :  { %3998 = vmatpush.msrb.mxu2 %v7382_v54  ;;  %4039 = vmatpush.msrb.mxu3 %v9444_v37 }
 0x8f1   :  { %3973 = vmatpush.msrb.mxu1 %v9431_v17  ;;  %3924 = vmatpush.msrb.mxu0 %v9445_v52  ;;  %v9459_v52 = vld [vmem:[#allocation15_spill] sm:$0xff] }
 0x8f2   :  { %4000 = vmatpush.msrb.mxu2 %v7405_v1  ;;  %4045 = vmatpush.msrb.mxu3 %v9446_v24 }
 0x8f3   :  { %3975 = vmatpush.msrb.mxu1 %v9434_v27  ;;  %3928 = vmatpush.msrb.mxu0 %v9447_v47 }
 0x8f4   :  { %4002 = vmatpush.msrb.mxu2 %v7426_v32  ;;  %4051 = vmatpush.msrb.mxu3 %v9448_v4 }
 0x8f5   :  { %3977 = vmatpush.msrb.mxu1 %v9437_v43  ;;  %3932 = vmatpush.msrb.mxu0 %v9449_v36  ;;  %v9457_v36 = vld [vmem:[#allocation33_spill] sm:$0xff] }
 0x8f6   :  { %4004 = vmatpush.msrb.mxu2 %v7452_v0  ;;  %4057 = vmatpush.msrb.mxu3 %v9450_v15  ;;  %v9458_v15 = vld [vmem:[#allocation36_spill] sm:$0xff] }
 0x8f7   :  { %3979 = vmatpush.msrb.mxu1 %v9440_v5  ;;  %3936 = vmatpush.msrb.mxu0 %v9451_v20 }
 0x8f8   :  { %4006 = vmatpush.msrb.mxu2 %v7461_v46  ;;  %4063 = vmatpush.msrb.mxu3 %v9452_v58  ;;  %v9460_v58 = vld [vmem:[#allocation83_spill] sm:$0xff] }
 0x8f9   :  { %3981 = vmatpush.msrb.mxu1 %v9442_v56  ;;  %3940 = vmatpush.msrb.mxu0 %v9453_v19  ;;  %v653_v37 = vadd.f32 %v9460_v58, %v9459_v52  ;;  %v9465_v52 = vld [vmem:[#allocation112_spill] sm:$0xff] }
 0x8fa   :  { %4008 = vmatpush.msrb.mxu2 %v7477_v57  ;;  %4069 = vmatpush.msrb.mxu3 %v9454_v9 }
 0x8fb   :  { %3944 = vmatpush.msrb.mxu0 %v9455_v30  ;;  %v754_v9 = vadd.f32 %v9461_v40, %v653_v37  ;;  %v9462_v30 = vld [vmem:[#allocation105_spill] sm:$0xff] }
 0x8fc   :  { %4010 = vmatpush.msrb.mxu2 %v7496_v38  ;;  %4075 = vmatpush.msrb.mxu3 %v9456_v13  ;;  %v9463_v13 = vld [vmem:[#allocation110_spill] sm:$0xff] }
 0x8fd   :  { %3948 = vmatpush.msrb.mxu0 %v9457_v36  ;;  %v824_v23 = vadd.f32 %v9462_v30, %v754_v9 }
 0x8ff   :  { %3952 = vmatpush.msrb.mxu0 %v9458_v15  ;;  %v894_v18 = vadd.f32 %v9463_v13, %v824_v23  ;;  %v9466_v23 = vld [vmem:[#allocation44_spill] sm:$0xff] }
 0x901   :  { %v973_v27 = vadd.f32 %v9464_v34, %v894_v18  ;;  %v9468_v34 = vld [vmem:[#allocation54_spill] sm:$0xff] }
 0x903   :  { %v1030_v22 = vadd.f32 %v9465_v52, %v973_v27  ;;  %v9470_v27 = vld [vmem:[#allocation77_spill] sm:$0xff] }
 0x942   :  { %v3304_v20 = vpop.f32.mrf.mxu1 }
 0x94a   :  { %v3243_v4 = vpop.f32.mrf.mxu0  ;;  %v3342_v47 = vpop.f32.mrf.mxu2 }
 0x94b   :  { %v3447_v19 = vpop.f32.mrf.mxu1 }
 0x94c   :  { %v3373_v24 = vpop.f32.mrf.mxu3 }
 0x953   :  { %v3480_v56 = vpop.f32.mrf.mxu2 }
 0x954   :  { %v3418_v62 = vpop.f32.mrf.mxu0 }
 0x955   :  { %v3610_v31 = vpop.f32.mrf.mxu1 }
 0x956   :  { %v3541_v5 = vpop.f32.mrf.mxu3 }
 0x957   :  { %v3542_v36 = vadd.f32 %v3541_v5, %v3480_v56  ;;  %v199_v5 = vadd.f32 %v9466_v23, %v9422_v7  ;;  %v3305_v56 = vadd.f32 %v3304_v20, %v3243_v4 }
 0x95c   :  { %v3579_v43 = vpop.f32.mrf.mxu0 }
 0x95d   :  { %v3580_v15 = vadd.f32 %v3579_v43, %v3542_v36  ;;  %v3655_v21 = vpop.f32.mrf.mxu2  ;;  %v9467_v43 = vld [vmem:[#allocation52_spill] sm:$0xff]  ;;  %v3343_v36 = vadd.f32 %v3342_v47, %v3305_v56 }
 0x95e   :  { %v300_v37 = vadd.f32 %v9467_v43, %v199_v5 }
 0x95f   :  { %v3611_v35 = vadd.f32 %v3610_v31, %v3580_v15  ;;  %v3684_v58 = vpop.f32.mrf.mxu3  ;;  %v3374_v18 = vadd.f32 %v3373_v24, %v3343_v36 }
 0x960   :  { %v370_v31 = vadd.f32 %v9468_v34, %v300_v37 }
 0x961   :  { %v3656_v17 = vadd.f32 %v3655_v21, %v3611_v35  ;;  %v3419_v21 = vadd.f32 %v3418_v62, %v3374_v18  ;;  %v9469_v35 = vld [vmem:[#allocation55_spill] sm:$0xff] }
 0x962   :  { %v440_v15 = vadd.f32 %v9469_v35, %v370_v31 }
 0x963   :  { %v3685_v3 = vadd.f32 %v3684_v58, %v3656_v17 }
 0x964   :  { %v519_v17 = vadd.f32 %v9470_v27, %v440_v15 }
 0x965   :  { %v3688_v55 = vadd.f32 %v3685_v3, %v1030_v22  ;;  %v3448_v3 = vadd.f32 %v3447_v19, %v3419_v21  ;;  %v9471_v22 = vld [vmem:[#allocation82_spill] sm:$0xff] }
 0x966   :  { %v576_v52 = vadd.f32 %v9471_v22, %v519_v17 }
 0x967   :  { %6604 = vtanh.f32 %v3688_v55  ;;  %v6518_v21 = vmul.f32 -1.442695, %v3688_v55 }
 0x968   :  { %v3687_v9 = vadd.f32 %v3448_v3, %v576_v52 }
 0x96a   :  { %v6517_v30 = vmul.f32 -1.442695, %v3687_v9 }
 0x96c   :  { %6606 = vpow2.f32 %v6517_v30 }
 0x96d   :  { %v6605_v40 = vpop.eup %6604 }
 0x96e   :  { %3730 = vrot.lane.b32.xlu0 %v6605_v40, %s6737_s2 }
 0x972   :  { %v6607_v13 = vpop.eup %6606 }
 0x973   :  { %v3695_v58 = vadd.f32 1.0, %v6607_v13 }
 0x975   :  { %6608 = vrcp.f32 %v3695_v58  ;;  %v3708_v62 = vand.u32 2147483648, %v3695_v58  ;;  %vm3702_vm8 = vweird.f32 %v3695_v58  ;;  %v3706_v24 = vand.u32 2147483647, %v3695_v58 }
 0x977   :  { %v3709_v19 = vor.u32 1.1754944e-38, %v3708_v62  ;;  %vm3707_vm12 = vcmp.eq.f32.partialorder %v3706_v24, 8.507059e+37 }
 0x97b   :  { %v6609_v4 = vpop.eup %6608 }
 0x97c   :  { %v3698_v20 = vmul.f32 %v6609_v4, %v3695_v58  ;;  %vm3703_vm7 = vweird.f32 %v6609_v4 }
 0x97d   :  { %vm3704_vm11 = vmor %vm3702_vm8, %vm3703_vm7 }
 0x97e   :  { %v3699_v47 = vsub.f32 1.0, %v3698_v20 }
 0x980   :  { %v3700_v40 = vmul.f32 %v6609_v4, %v3699_v47 }
 0x982   :  { %v3701_v23 = vadd.f32 %v6609_v4, %v3700_v40 }
 0x984   :  { %v3705_v5 = vsel %vm3704_vm11, %v6609_v4, %v3701_v23 }
 0x985   :  { %v3710_v43 = vsel %vm3707_vm12, %v3709_v19, %v3705_v5  ;;  %v9472_v5 = vld [vmem:[#allocation12_spill] sm:$0xff] }
 0x986   :  { %v3728_v36 = vmul.f32 %v3710_v43, %v8185_v6  ;;  %v9473_v19 = vld [vmem:[#allocation28_spill] sm:$0xff] }
 0x9e0   :  { %v3731_v56 = vpop.permute.xlu0 %3730 }
 0x9e1   :  { %v3733_v37 = vmul.f32 %v3731_v56, %v3710_v43  ;;  %v9474_v56 = vld [vmem:[#allocation18_spill] sm:$0xff]  ;;  %v9475_v43 = vld [vmem:[#allocation16_spill] sm:$0xff] }
 0x9e3   :  { %3735 = vrot.lane.b32.xlu1 %v3733_v37, %s6737_s2  ;;  %v9476_v37 = vld [vmem:[#allocation35_spill] sm:$0xff] }
 0xa55   :  { %v3736_v34 = vpop.permute.xlu1 %3735 }
 0xa56   :  { %v8305_v31 = vadd.f32 %v3736_v34, %v3728_v36  ;;  %v9477_v36 = vld [vmem:[#allocation22_spill] sm:$0xff]  ;;  %v9478_v34 = vld [vmem:[#allocation20_spill] sm:$0xff] }
 0xa58   :  { %6610 = vtanh.f32 %v8305_v31 }
 0xa59   :  { %6612 = vpow2.f32 %v6518_v21  ;;  %v9480_v21 = vld [vmem:[#allocation26_spill] sm:$0xff] }
 0xa5e   :  { %v6611_v18 = vpop.eup %6610 }
 0xa5f   :  { %3741 = vrot.lane.b32.xlu2 %v6611_v18, %s6737_s2  ;;  %v6613_v35 = vpop.eup %6612  ;;  %v9479_v18 = vld [vmem:[#allocation38_spill] sm:$0xff] }
 0xa60   :  { %v3696_v15 = vadd.f32 1.0, %v6613_v35  ;;  %v9481_v35 = vld [vmem:[#allocation25_spill] sm:$0xff] }
 0xa62   :  { %6614 = vrcp.f32 %v3696_v15  ;;  %v3723_v6 = vand.u32 2147483648, %v3696_v15  ;;  %vm3717_vm14 = vweird.f32 %v3696_v15  ;;  %v3721_v9 = vand.u32 2147483647, %v3696_v15 }
 0xa64   :  { %v3724_v13 = vor.u32 1.1754944e-38, %v3723_v6  ;;  %vm3722_vm1 = vcmp.eq.f32.partialorder %v3721_v9, 8.507059e+37  ;;  %v9488_v6 = vld [vmem:[#allocation41_spill] sm:$0xff]  ;;  %v9489_v9 = vld [vmem:[#allocation10_spill] sm:$0xff] }
 0xa68   :  { %v6615_v27 = vpop.eup %6614 }
 0xa69   :  { %v3713_v17 = vmul.f32 %v6615_v27, %v3696_v15  ;;  %vm3718_vm13 = vweird.f32 %v6615_v27  ;;  %v9482_v15 = vld [vmem:[#allocation40_spill] sm:$0xff] }
 0xa6a   :  { %vm3719_vm15 = vmor %vm3717_vm14, %vm3718_vm13 }
 0xa6b   :  { %v3714_v3 = vsub.f32 1.0, %v3713_v17  ;;  %v9484_v17 = vld [vmem:[#allocation27_spill] sm:$0xff] }
 0xa6d   :  { %v3715_v22 = vmul.f32 %v6615_v27, %v3714_v3  ;;  %v9485_v3 = vld [vmem:[#allocation32_spill] sm:$0xff] }
 0xa6f   :  { %v3716_v52 = vadd.f32 %v6615_v27, %v3715_v22  ;;  %v9486_v22 = vld [vmem:[#allocation31_spill] sm:$0xff] }
 0xa71   :  { %v3720_v30 = vsel %vm3719_vm15, %v6615_v27, %v3716_v52  ;;  %v9483_v27 = vld [vmem:[#allocation30_spill] sm:$0xff]  ;;  %v9487_v52 = vld [vmem:[#allocation39_spill] sm:$0xff] }
 0xa72   :  { %v3725_v58 = vsel %vm3722_vm1, %v3724_v13, %v3720_v30  ;;  %v9490_v30 = vld [vmem:[#allocation43_spill] sm:$0xff] }
 0xa73   :  { %v9491_v13 = vld [vmem:[#allocation11_spill] sm:$0xff] }
 0xab9   :  { %v3742_v4 = vpop.permute.xlu2 %3741 }
 0xaba   :  { %v3744_v55 = vmul.f32 %v3742_v4, %v3725_v58  ;;  %v9492_v58 = vld [vmem:[#allocation46_spill] sm:$0xff] }
 0xabb   :  { %v9493_v4 = vld [vmem:[#allocation14_spill] sm:$0xff] }
 0xabc   :  { %3745 = vst.msk [vmem:[#allocation2 + $0x20] sm:$0xff] %vm1595_vm9, %v3744_v55  ;;  %v3748_v20 = vsel %vm111_vm0, %v3744_v55, 0 }
 0xabd   :  { %3746 = vst.msk [vmem:[#allocation2 + $0x18] sm:$0xff] %vm1597_vm10, %v3744_v55  ;;  %v3774_v47 = vand.u32 4294901760, %v3748_v20  ;;  %v9494_v55 = vld [vmem:[#allocation49_spill] sm:$0xff] }
 0xabf   :  { %v3775_v40 = vsub.f32 %v3748_v20, %v3774_v47  ;;  %3840 = vmatmul.f32.vlgmr.msra.gmra.mxu1 %v3774_v47  ;;  %v9495_v20 = vld [vmem:[#allocation19_spill] sm:$0xff] }
 0xac0   :  { %4128 = vmatpush.msra.mxu1 %v7368_v16 }
 0xac1   :  { %3878 = vmatmul.f32.vlgmr.msra.gmra.mxu2 %v3775_v40  ;;  %v3776_v23 = vand.u32 4294901760, %v3775_v40 }
 0xac2   :  { %4130 = vmatpush.msra.mxu1 %v7382_v54  ;;  %4161 = vmatpush.msra.mxu2 %v7403_v61 }
 0xac3   :  { %3909 = vmatmul.f32.vlgmr.msra.gmra.mxu3 %v3776_v23  ;;  %v3777_v62 = vsub.f32 %v3775_v40, %v3776_v23 }
 0xac4   :  { %4132 = vmatpush.msra.mxu1 %v7405_v1  ;;  %4165 = vmatpush.msra.mxu2 %v7424_v8 }
 0xac5   :  { %4204 = vmatpush.msra.mxu3 %v7368_v16  ;;  %v3778_v24 = vand.u32 4294901760, %v3777_v62  ;;  %v9499_v62 = vld [vmem:[#allocation29_spill] sm:$0xff] }
 0xac6   :  { %4134 = vmatpush.msra.mxu1 %v7426_v32  ;;  %4169 = vmatpush.msra.mxu2 %v7450_v44 }
 0xac7   :  { %4206 = vmatpush.msra.mxu3 %v7382_v54  ;;  %3779 = vmatmul.f32.vlgmr.msra.gmra.mxu0 %v3778_v24 }
 0xac8   :  { %3983 = vmatmul.f32.vlgmr.msrb.gmra.mxu1 %v3774_v47  ;;  %4091 = vmatpush.msra.mxu0 %v7385_v29 }
 0xac9   :  { %4136 = vmatpush.msra.mxu1 %v7452_v0  ;;  %4173 = vmatpush.msra.mxu2 %v7468_v42 }
 0xaca   :  { %4208 = vmatpush.msra.mxu3 %v7405_v1  ;;  %4016 = vmatmul.f32.vlgmr.msrb.gmra.mxu2 %v3778_v24  ;;  %v9500_v24 = vld [vmem:[#allocation56_spill] sm:$0xff] }
 0xacb   :  { %4094 = vmatpush.msra.mxu0 %v7408_v28  ;;  %4138 = vmatpush.msra.mxu1 %v7461_v46 }
 0xacc   :  { %4177 = vmatpush.msra.mxu2 %v7489_v2  ;;  %4210 = vmatpush.msra.mxu3 %v7426_v32 }
 0xacd   :  { %4077 = vmatmul.f32.vlgmr.msrb.gmra.mxu3 %v3774_v47  ;;  %4097 = vmatpush.msra.mxu0 %v7429_v60 }
 0xace   :  { %4140 = vmatpush.msra.mxu1 %v7477_v57  ;;  %4181 = vmatpush.msra.mxu2 %v7494_v41 }
 0xacf   :  { %4212 = vmatpush.msra.mxu3 %v7452_v0  ;;  %4100 = vmatpush.msra.mxu0 %v7455_v63 }
 0xad0   :  { %4142 = vmatpush.msra.mxu1 %v7496_v38  ;;  %4185 = vmatpush.msra.mxu2 %v7520_v48 }
 0xad1   :  { %4214 = vmatpush.msra.mxu3 %v7461_v46  ;;  %3954 = vmatmul.f32.vlgmr.msrb.gmra.mxu0 %v3774_v47 }
 0xad2   :  { %4146 = vmatmul.f32.vlgmr.msra.gmra.mxu1 %v3776_v23  ;;  %4103 = vmatpush.msra.mxu0 %v7471_v12  ;;  %v9498_v23 = vld [vmem:[#allocation53_spill] sm:$0xff] }
 0xad3   :  { %4189 = vmatpush.msra.mxu2 %v7536_v11  ;;  %4216 = vmatpush.msra.mxu3 %v7477_v57 }
 0xad4   :  { %4191 = vmatmul.f32.vlgmr.msra.gmra.mxu2 %v3774_v47  ;;  %4106 = vmatpush.msra.mxu0 %v7480_v51 }
 0xad5   :  { %4218 = vmatpush.msra.mxu3 %v7496_v38  ;;  %4333 = vmatpush.msrb.mxu1 %v7268_v33 }
 0xad6   :  { %4220 = vmatmul.f32.vlgmr.msra.gmra.mxu3 %v3774_v47  ;;  %4109 = vmatpush.msra.mxu0 %v7499_v49  ;;  %v9496_v47 = vld [vmem:[#allocation50_spill] sm:$0xff] }
 0xad7   :  { %4339 = vmatpush.msrb.mxu1 %v7288_v10  ;;  %4391 = vmatpush.msrb.mxu2 %v7252_v50 }
 0xad8   :  { %4112 = vmatpush.msra.mxu0 %v7525_v53  ;;  %4428 = vmatpush.msrb.mxu3 %v7249_v45 }
 0xad9   :  { %4115 = vmatmul.f32.vlgmr.msra.gmra.mxu0 %v3775_v40  ;;  %4345 = vmatpush.msrb.mxu1 %v7315_v59  ;;  %v9497_v40 = vld [vmem:[#allocation24_spill] sm:$0xff] }
 0xada   :  { %4394 = vmatpush.msrb.mxu2 %v7271_v26  ;;  %4430 = vmatpush.msrb.mxu3 %v7266_v25 }
 0xadb   :  { %4351 = vmatpush.msrb.mxu1 %v9303_v39  ;;  %4296 = vmatpush.msrb.mxu0 %v7249_v45 }
 0xadc   :  { %4397 = vmatpush.msrb.mxu2 %v9304_v14  ;;  %4432 = vmatpush.msrb.mxu3 %v9472_v5 }
 0xadd   :  { %4357 = vmatpush.msrb.mxu1 %v9473_v19  ;;  %4298 = vmatpush.msrb.mxu0 %v7266_v25 }
 0xade   :  { %4400 = vmatpush.msrb.mxu2 %v9474_v56  ;;  %4434 = vmatpush.msrb.mxu3 %v9475_v43 }
 0xadf   :  { %4363 = vmatpush.msrb.mxu1 %v9476_v37  ;;  %4300 = vmatpush.msrb.mxu0 %v9472_v5 }
 0xae0   :  { %4403 = vmatpush.msrb.mxu2 %v9477_v36  ;;  %4436 = vmatpush.msrb.mxu3 %v9478_v34  ;;  %v9514_v36 = vld [vmem:[#allocation115_spill] sm:$0xff] }
 0xae1   :  { %4369 = vmatpush.msrb.mxu1 %v9479_v18  ;;  %4302 = vmatpush.msrb.mxu0 %v9475_v43 }
 0xae2   :  { %4406 = vmatpush.msrb.mxu2 %v9480_v21  ;;  %4438 = vmatpush.msrb.mxu3 %v9481_v35  ;;  %v9509_v21 = vld [vmem:[#allocation81_spill] sm:$0xff] }
 0xae3   :  { %4375 = vmatpush.msrb.mxu1 %v9482_v15  ;;  %4304 = vmatpush.msrb.mxu0 %v9478_v34 }
 0xae4   :  { %4409 = vmatpush.msrb.mxu2 %v9483_v27  ;;  %4440 = vmatpush.msrb.mxu3 %v9484_v17  ;;  %v9507_v27 = vld [vmem:[#allocation15_spill] sm:$0xff] }
 0xae5   :  { %4504 = vmatpush.msra.mxu1 %v7249_v45  ;;  %4306 = vmatpush.msrb.mxu0 %v9481_v35 }
 0xae6   :  { %4412 = vmatpush.msrb.mxu2 %v9485_v3  ;;  %4442 = vmatpush.msrb.mxu3 %v9486_v22 }
 0xae7   :  { %4506 = vmatpush.msra.mxu1 %v7266_v25  ;;  %4308 = vmatpush.msrb.mxu0 %v9484_v17 }
 0xae8   :  { %4533 = vmatpush.msra.mxu2 %v7368_v16  ;;  %4570 = vmatpush.msra.mxu3 %v9487_v52 }
 0xae9   :  { %4508 = vmatpush.msra.mxu1 %v9472_v5  ;;  %4310 = vmatpush.msrb.mxu0 %v9486_v22 }
 0xaea   :  { %4535 = vmatpush.msra.mxu2 %v7382_v54  ;;  %4576 = vmatpush.msra.mxu3 %v9488_v6 }
 0xaeb   :  { %4510 = vmatpush.msra.mxu1 %v9475_v43  ;;  %4461 = vmatpush.msra.mxu0 %v9489_v9 }
 0xaec   :  { %4537 = vmatpush.msra.mxu2 %v7405_v1  ;;  %4582 = vmatpush.msra.mxu3 %v9490_v30 }
 0xaed   :  { %4512 = vmatpush.msra.mxu1 %v9478_v34  ;;  %4465 = vmatpush.msra.mxu0 %v9491_v13  ;;  %v9510_v34 = vld [vmem:[#allocation86_spill] sm:$0xff] }
 0xaee   :  { %4539 = vmatpush.msra.mxu2 %v7426_v32  ;;  %4588 = vmatpush.msra.mxu3 %v9492_v58 }
 0xaef   :  { %4514 = vmatpush.msra.mxu1 %v9481_v35  ;;  %4469 = vmatpush.msra.mxu0 %v9493_v4  ;;  %v9501_v4 = vld [vmem:[#allocation33_spill] sm:$0xff] }
 0xaf0   :  { %4541 = vmatpush.msra.mxu2 %v7452_v0  ;;  %4594 = vmatpush.msra.mxu3 %v9494_v55  ;;  %v9502_v55 = vld [vmem:[#allocation36_spill] sm:$0xff] }
 0xaf1   :  { %4516 = vmatpush.msra.mxu1 %v9484_v17  ;;  %4473 = vmatpush.msra.mxu0 %v9495_v20  ;;  %v9503_v20 = vld [vmem:[#allocation51_spill] sm:$0xff]  ;;  %v9506_v17 = vld [vmem:[#allocation60_spill] sm:$0xff] }
 0xaf2   :  { %4543 = vmatpush.msra.mxu2 %v7461_v46  ;;  %4600 = vmatpush.msra.mxu3 %v9496_v47  ;;  %v207_v58 = vadd.f32 %v9503_v20, %v9422_v7  ;;  %v9504_v47 = vld [vmem:[#allocation58_spill] sm:$0xff] }
 0xaf3   :  { %4518 = vmatpush.msra.mxu1 %v9486_v22  ;;  %4477 = vmatpush.msra.mxu0 %v9497_v40 }
 0xaf4   :  { %4545 = vmatpush.msra.mxu2 %v7477_v57  ;;  %4606 = vmatpush.msra.mxu3 %v9498_v23  ;;  %v304_v9 = vadd.f32 %v9504_v47, %v207_v58  ;;  %v9505_v23 = vld [vmem:[#allocation59_spill] sm:$0xff] }
 0xaf5   :  { %4481 = vmatpush.msra.mxu0 %v9499_v62 }
 0xaf6   :  { %4547 = vmatpush.msra.mxu2 %v7496_v38  ;;  %4612 = vmatpush.msra.mxu3 %v9500_v24  ;;  %v375_v3 = vadd.f32 %v9505_v23, %v304_v9 }
 0xaf7   :  { %4485 = vmatpush.msra.mxu0 %v9501_v4  ;;  %v9508_v4 = vld [vmem:[#allocation87_spill] sm:$0xff] }
 0xaf8   :  { %v446_v24 = vadd.f32 %v9506_v17, %v375_v3  ;;  %v661_v15 = vadd.f32 %v9508_v4, %v9507_v27 }
 0xaf9   :  { %4489 = vmatpush.msra.mxu0 %v9502_v55 }
 0xafa   :  { %v523_v20 = vadd.f32 %v9509_v21, %v446_v24 }
 0xafc   :  { %v580_v58 = vadd.f32 %v9510_v34, %v523_v20  ;;  %v9515_v34 = vld [vmem:[#allocation116_spill] sm:$0xff] }
 0xb3c   :  { %v3841_v13 = vpop.f32.mrf.mxu1 }
 0xb44   :  { %v3780_v30 = vpop.f32.mrf.mxu0  ;;  %v3879_v6 = vpop.f32.mrf.mxu2 }
 0xb45   :  { %v3842_v40 = vadd.f32 %v3841_v13, %v3780_v30  ;;  %v3984_v55 = vpop.f32.mrf.mxu1  ;;  %v9511_v30 = vld [vmem:[#allocation88_spill] sm:$0xff] }
 0xb46   :  { %v3910_v22 = vpop.f32.mrf.mxu3  ;;  %v758_v13 = vadd.f32 %v9511_v30, %v661_v15 }
 0xb47   :  { %v3880_v52 = vadd.f32 %v3879_v6, %v3842_v40  ;;  %v9512_v40 = vld [vmem:[#allocation109_spill] sm:$0xff] }
 0xb48   :  { %v829_v9 = vadd.f32 %v9512_v40, %v758_v13 }
 0xb49   :  { %v3911_v62 = vadd.f32 %v3910_v22, %v3880_v52  ;;  %v9513_v52 = vld [vmem:[#allocation114_spill] sm:$0xff] }
 0xb4a   :  { %v900_v17 = vadd.f32 %v9513_v52, %v829_v9 }
 0xb4c   :  { %v977_v37 = vadd.f32 %v9514_v36, %v900_v17 }
 0xb4d   :  { %v4017_v18 = vpop.f32.mrf.mxu2 }
 0xb4e   :  { %v3955_v35 = vpop.f32.mrf.mxu0  ;;  %v1034_v20 = vadd.f32 %v9515_v34, %v977_v37 }
 0xb4f   :  { %v3956_v7 = vadd.f32 %v3955_v35, %v3911_v62  ;;  %v4147_v27 = vpop.f32.mrf.mxu1 }
 0xb50   :  { %v4078_v47 = vpop.f32.mrf.mxu3 }
 0xb51   :  { %v3985_v6 = vadd.f32 %v3984_v55, %v3956_v7  ;;  %v4079_v3 = vadd.f32 %v4078_v47, %v4017_v18 }
 0xb53   :  { %v4224_v22 = vadd.f32 %v3985_v6, %v580_v58 }
 0xb55   :  { %v6519_v58 = vmul.f32 -1.442695, %v4224_v22 }
 0xb56   :  { %v4116_v23 = vpop.f32.mrf.mxu0 }
 0xb57   :  { %v4117_v4 = vadd.f32 %v4116_v23, %v4079_v3  ;;  %v4192_v35 = vpop.f32.mrf.mxu2 }
 0xb59   :  { %v4148_v21 = vadd.f32 %v4147_v27, %v4117_v4  ;;  %v4221_v24 = vpop.f32.mrf.mxu3 }
 0xb5b   :  { %v4193_v62 = vadd.f32 %v4192_v35, %v4148_v21 }
 0xb5d   :  { %v4222_v15 = vadd.f32 %v4221_v24, %v4193_v62 }
 0xb5f   :  { %v4225_v7 = vadd.f32 %v4222_v15, %v1034_v20 }
 0xb61   :  { %6616 = vtanh.f32 %v4225_v7  ;;  %v6520_v62 = vmul.f32 -1.442695, %v4225_v7 }
 0xb62   :  { %6618 = vpow2.f32 %v6519_v58 }
 0xb67   :  { %v6617_v55 = vpop.eup %6616 }
 0xb68   :  { %4267 = vrot.lane.b32.xlu0 %v6617_v55, %s6737_s2  ;;  %v6619_v18 = vpop.eup %6618 }
 0xb69   :  { %v4232_v30 = vadd.f32 1.0, %v6619_v18 }
 0xb6b   :  { %6620 = vrcp.f32 %v4232_v30  ;;  %v4245_v40 = vand.u32 2147483648, %v4232_v30  ;;  %vm4239_vm3 = vweird.f32 %v4232_v30  ;;  %v4243_v37 = vand.u32 2147483647, %v4232_v30 }
 0xb6d   :  { %v4246_v52 = vor.u32 1.1754944e-38, %v4245_v40  ;;  %vm4244_vm5 = vcmp.eq.f32.partialorder %v4243_v37, 8.507059e+37 }
 0xb71   :  { %v6621_v13 = vpop.eup %6620 }
 0xb72   :  { %v4235_v6 = vmul.f32 %v6621_v13, %v4232_v30  ;;  %vm4240_vm2 = vweird.f32 %v6621_v13 }
 0xb73   :  { %vm4241_vm4 = vmor %vm4239_vm3, %vm4240_vm2 }
 0xb74   :  { %v4236_v36 = vsub.f32 1.0, %v4235_v6 }
 0xb76   :  { %v4237_v27 = vmul.f32 %v6621_v13, %v4236_v36 }
 0xb78   :  { %v4238_v47 = vadd.f32 %v6621_v13, %v4237_v27 }
 0xb7a   :  { %v4242_v9 = vsel %vm4241_vm4, %v6621_v13, %v4238_v47 }
 0xb7b   :  { %v4247_v3 = vsel %vm4244_vm5, %v4246_v52, %v4242_v9 }
 0xb7c   :  { %v4265_v23 = vmul.f32 %v4247_v3, %v8305_v31 }
 0xbda   :  { %v4268_v17 = vpop.permute.xlu0 %4267 }
 0xbdb   :  { %v4270_v22 = vmul.f32 %v4268_v17, %v4247_v3  ;;  %v9525_v3 = vld [vmem:[#allocation32_spill] sm:$0xff] }
 0xbdd   :  { %4272 = vrot.lane.b32.xlu1 %v4270_v22, %s6737_s2  ;;  %v9526_v22 = vld [vmem:[#allocation31_spill] sm:$0xff] }
 0xc4f   :  { %v4273_v4 = vpop.permute.xlu1 %4272 }
 0xc50   :  { %v8425_v21 = vadd.f32 %v4273_v4, %v4265_v23  ;;  %v9527_v23 = vld [vmem:[#allocation39_spill] sm:$0xff] }
 0xc51   :  { %v9531_v4 = vld [vmem:[#allocation11_spill] sm:$0xff] }
 0xc52   :  { %6622 = vtanh.f32 %v8425_v21 }
 0xc53   :  { %6624 = vpow2.f32 %v6520_v62  ;;  %v9534_v62 = vld [vmem:[#allocation49_spill] sm:$0xff] }
 0xc58   :  { %v6623_v35 = vpop.eup %6622 }
 0xc59   :  { %4278 = vrot.lane.b32.xlu2 %v6623_v35, %s6737_s2  ;;  %v6625_v24 = vpop.eup %6624  ;;  %v9533_v35 = vld [vmem:[#allocation14_spill] sm:$0xff] }
 0xc5a   :  { %v4233_v34 = vadd.f32 1.0, %v6625_v24  ;;  %v9535_v24 = vld [vmem:[#allocation19_spill] sm:$0xff] }
 0xc5c   :  { %6626 = vrcp.f32 %v4233_v34  ;;  %v4260_v31 = vand.u32 2147483648, %v4233_v34  ;;  %vm4254_vm7 = vweird.f32 %v4233_v34  ;;  %v4258_v30 = vand.u32 2147483647, %v4233_v34 }
 0xc5e   :  { %v4261_v6 = vor.u32 1.1754944e-38, %v4260_v31  ;;  %vm4259_vm11 = vcmp.eq.f32.partialorder %v4258_v30, 8.507059e+37  ;;  %v9542_v31 = vld [vmem:[#allocation36_spill] sm:$0xff]  ;;  %v9543_v30 = vld [vmem:[#allocation17_spill] sm:$0xff] }
 0xc62   :  { %v6627_v20 = vpop.eup %6626 }
 0xc63   :  { %v4250_v15 = vmul.f32 %v6627_v20, %v4233_v34  ;;  %vm4255_vm6 = vweird.f32 %v6627_v20  ;;  %v9536_v34 = vld [vmem:[#allocation50_spill] sm:$0xff] }
 0xc64   :  { %vm4256_vm8 = vmor %vm4254_vm7, %vm4255_vm6 }
 0xc65   :  { %v4251_v55 = vsub.f32 1.0, %v4250_v15  ;;  %v9538_v15 = vld [vmem:[#allocation53_spill] sm:$0xff] }
 0xc67   :  { %v4252_v58 = vmul.f32 %v6627_v20, %v4251_v55  ;;  %v9539_v55 = vld [vmem:[#allocation29_spill] sm:$0xff] }
 0xc69   :  { %v4253_v18 = vadd.f32 %v6627_v20, %v4252_v58  ;;  %v9540_v58 = vld [vmem:[#allocation56_spill] sm:$0xff] }
 0xc6b   :  { %v4257_v13 = vsel %vm4256_vm8, %v6627_v20, %v4253_v18  ;;  %v9537_v20 = vld [vmem:[#allocation24_spill] sm:$0xff]  ;;  %v9541_v18 = vld [vmem:[#allocation33_spill] sm:$0xff] }
 0xc6c   :  { %v4262_v36 = vsel %vm4259_vm11, %v4261_v6, %v4257_v13  ;;  %v9544_v13 = vld [vmem:[#allocation57_spill] sm:$0xff] }
 0xc6d   :  { %v215_v6 = vadd.f32 %v9544_v13, %v9543_v30 }
 0xcb3   :  { %v4279_v27 = vpop.permute.xlu2 %4278 }
 0xcb4   :  { %v4281_v7 = vmul.f32 %v4279_v27, %v4262_v36 }
 0xcb6   :  { %4282 = vst.msk [vmem:[#allocation2 + $0x28] sm:$0xff] %vm1595_vm9, %v4281_v7  ;;  %v4285_v47 = vsel %vm111_vm0, %v4281_v7, 0 }
 0xcb7   :  { %4283 = vst.msk [vmem:[#allocation2 + $0x10] sm:$0xff] %vm1597_vm10, %v4281_v7  ;;  %v4311_v40 = vand.u32 4294901760, %v4285_v47  ;;  %v9545_v7 = vld [vmem:[#allocation62_spill] sm:$0xff] }
 0xcb9   :  { %v4312_v37 = vsub.f32 %v4285_v47, %v4311_v40  ;;  %4377 = vmatmul.f32.vlgmr.msrb.gmra.mxu1 %v4311_v40  ;;  %v308_v47 = vadd.f32 %v9545_v7, %v215_v6  ;;  %v9555_v6 = vld [vmem:[#allocation119_spill] sm:$0xff] }
 0xcba   :  { %4665 = vmatpush.msrb.mxu1 %v7368_v16 }
 0xcbb   :  { %4415 = vmatmul.f32.vlgmr.msrb.gmra.mxu2 %v4312_v37  ;;  %v4313_v9 = vand.u32 4294901760, %v4312_v37 }
 0xcbc   :  { %4667 = vmatpush.msrb.mxu1 %v7382_v54  ;;  %4698 = vmatpush.msrb.mxu2 %v7403_v61 }
 0xcbd   :  { %4446 = vmatmul.f32.vlgmr.msrb.gmra.mxu3 %v4313_v9  ;;  %v4314_v52 = vsub.f32 %v4312_v37, %v4313_v9 }
 0xcbe   :  { %4669 = vmatpush.msrb.mxu1 %v7405_v1  ;;  %4702 = vmatpush.msrb.mxu2 %v7424_v8 }
 0xcbf   :  { %4741 = vmatpush.msrb.mxu3 %v7368_v16  ;;  %v4315_v17 = vand.u32 4294901760, %v4314_v52 }
 0xcc0   :  { %4671 = vmatpush.msrb.mxu1 %v7426_v32  ;;  %4706 = vmatpush.msrb.mxu2 %v7450_v44 }
 0xcc1   :  { %4743 = vmatpush.msrb.mxu3 %v7382_v54  ;;  %4316 = vmatmul.f32.vlgmr.msrb.gmra.mxu0 %v4315_v17 }
 0xcc2   :  { %4520 = vmatmul.f32.vlgmr.msra.gmra.mxu1 %v4311_v40  ;;  %4628 = vmatpush.msrb.mxu0 %v7385_v29 }
 0xcc3   :  { %4673 = vmatpush.msrb.mxu1 %v7452_v0  ;;  %4710 = vmatpush.msrb.mxu2 %v7468_v42 }
 0xcc4   :  { %4745 = vmatpush.msrb.mxu3 %v7405_v1  ;;  %4553 = vmatmul.f32.vlgmr.msra.gmra.mxu2 %v4315_v17  ;;  %v9546_v17 = vld [vmem:[#allocation63_spill] sm:$0xff] }
 0xcc5   :  { %4631 = vmatpush.msrb.mxu0 %v7408_v28  ;;  %4675 = vmatpush.msrb.mxu1 %v7461_v46 }
 0xcc6   :  { %4714 = vmatpush.msrb.mxu2 %v7489_v2  ;;  %4747 = vmatpush.msrb.mxu3 %v7426_v32 }
 0xcc7   :  { %4614 = vmatmul.f32.vlgmr.msra.gmra.mxu3 %v4311_v40  ;;  %4634 = vmatpush.msrb.mxu0 %v7429_v60 }
 0xcc8   :  { %4677 = vmatpush.msrb.mxu1 %v7477_v57  ;;  %4718 = vmatpush.msrb.mxu2 %v7494_v41 }
 0xcc9   :  { %4749 = vmatpush.msrb.mxu3 %v7452_v0  ;;  %4637 = vmatpush.msrb.mxu0 %v7455_v63 }
 0xcca   :  { %4679 = vmatpush.msrb.mxu1 %v7496_v38  ;;  %4722 = vmatpush.msrb.mxu2 %v7520_v48 }
 0xccb   :  { %4751 = vmatpush.msrb.mxu3 %v7461_v46  ;;  %4491 = vmatmul.f32.vlgmr.msra.gmra.mxu0 %v4311_v40 }
 0xccc   :  { %4683 = vmatmul.f32.vlgmr.msrb.gmra.mxu1 %v4313_v9  ;;  %4640 = vmatpush.msrb.mxu0 %v7471_v12 }
 0xccd   :  { %4726 = vmatpush.msrb.mxu2 %v7536_v11  ;;  %4753 = vmatpush.msrb.mxu3 %v7477_v57 }
 0xcce   :  { %4728 = vmatmul.f32.vlgmr.msrb.gmra.mxu2 %v4311_v40  ;;  %4643 = vmatpush.msrb.mxu0 %v7480_v51 }
 0xccf   :  { %4755 = vmatpush.msrb.mxu3 %v7496_v38  ;;  %4870 = vmatpush.msra.mxu1 %v7268_v33  ;;  %v9517_v33 = vld [vmem:[#allocation22_spill] sm:$0xff] }
 0xcd0   :  { %4757 = vmatmul.f32.vlgmr.msrb.gmra.mxu3 %v4311_v40  ;;  %4646 = vmatpush.msrb.mxu0 %v7499_v49 }
 0xcd1   :  { %4876 = vmatpush.msra.mxu1 %v7288_v10  ;;  %4928 = vmatpush.msra.mxu2 %v7252_v50  ;;  %v9516_v50 = vld [vmem:[#allocation35_spill] sm:$0xff]  ;;  %v9519_v10 = vld [vmem:[#allocation38_spill] sm:$0xff] }
 0xcd2   :  { %4649 = vmatpush.msrb.mxu0 %v7525_v53  ;;  %4965 = vmatpush.msra.mxu3 %v7249_v45 }
 0xcd3   :  { %4652 = vmatmul.f32.vlgmr.msrb.gmra.mxu0 %v4312_v37  ;;  %4882 = vmatpush.msra.mxu1 %v7315_v59  ;;  %v9520_v59 = vld [vmem:[#allocation26_spill] sm:$0xff] }
 0xcd4   :  { %4931 = vmatpush.msra.mxu2 %v7271_v26  ;;  %4967 = vmatpush.msra.mxu3 %v7266_v25  ;;  %v9518_v26 = vld [vmem:[#allocation20_spill] sm:$0xff] }
 0xcd5   :  { %4888 = vmatpush.msra.mxu1 %v9303_v39  ;;  %4833 = vmatpush.msra.mxu0 %v7249_v45  ;;  %v9521_v39 = vld [vmem:[#allocation25_spill] sm:$0xff] }
 0xcd6   :  { %4934 = vmatpush.msra.mxu2 %v9304_v14  ;;  %4969 = vmatpush.msra.mxu3 %v9472_v5  ;;  %v9522_v14 = vld [vmem:[#allocation40_spill] sm:$0xff] }
 0xcd7   :  { %4894 = vmatpush.msra.mxu1 %v9473_v19  ;;  %4835 = vmatpush.msra.mxu0 %v7266_v25  ;;  %v9523_v19 = vld [vmem:[#allocation30_spill] sm:$0xff] }
 0xcd8   :  { %4937 = vmatpush.msra.mxu2 %v9474_v56  ;;  %4971 = vmatpush.msra.mxu3 %v9475_v43  ;;  %v9524_v56 = vld [vmem:[#allocation27_spill] sm:$0xff] }
 0xcd9   :  { %4900 = vmatpush.msra.mxu1 %v9516_v50  ;;  %4837 = vmatpush.msra.mxu0 %v9472_v5  ;;  %v380_v50 = vadd.f32 %v9546_v17, %v308_v47 }
 0xcda   :  { %4940 = vmatpush.msra.mxu2 %v9517_v33  ;;  %4973 = vmatpush.msra.mxu3 %v9518_v26 }
 0xcdb   :  { %4906 = vmatpush.msra.mxu1 %v9519_v10  ;;  %4839 = vmatpush.msra.mxu0 %v9475_v43 }
 0xcdc   :  { %4943 = vmatpush.msra.mxu2 %v9520_v59  ;;  %4975 = vmatpush.msra.mxu3 %v9521_v39  ;;  %v9548_v59 = vld [vmem:[#allocation15_spill] sm:$0xff] }
 0xcdd   :  { %4912 = vmatpush.msra.mxu1 %v9522_v14  ;;  %4841 = vmatpush.msra.mxu0 %v9518_v26 }
 0xcde   :  { %4946 = vmatpush.msra.mxu2 %v9523_v19  ;;  %4977 = vmatpush.msra.mxu3 %v9524_v56 }
 0xcdf   :  { %5041 = vmatpush.msrb.mxu1 %v7249_v45  ;;  %4843 = vmatpush.msra.mxu0 %v9521_v39  ;;  %v9528_v45 = vld [vmem:[#allocation41_spill] sm:$0xff] }
 0xce0   :  { %4949 = vmatpush.msra.mxu2 %v9525_v3  ;;  %4979 = vmatpush.msra.mxu3 %v9526_v22  ;;  %v9550_v3 = vld [vmem:[#allocation85_spill] sm:$0xff] }
 0xce1   :  { %5043 = vmatpush.msrb.mxu1 %v7266_v25  ;;  %4845 = vmatpush.msra.mxu0 %v9524_v56  ;;  %v9529_v25 = vld [vmem:[#allocation10_spill] sm:$0xff] }
 0xce2   :  { %5070 = vmatpush.msrb.mxu2 %v7368_v16  ;;  %5107 = vmatpush.msrb.mxu3 %v9527_v23 }
 0xce3   :  { %5045 = vmatpush.msrb.mxu1 %v9472_v5  ;;  %4847 = vmatpush.msra.mxu0 %v9526_v22  ;;  %v9530_v5 = vld [vmem:[#allocation43_spill] sm:$0xff] }
 0xce4   :  { %5072 = vmatpush.msrb.mxu2 %v7382_v54  ;;  %5113 = vmatpush.msrb.mxu3 %v9528_v45 }
 0xce5   :  { %5047 = vmatpush.msrb.mxu1 %v9475_v43  ;;  %4998 = vmatpush.msrb.mxu0 %v9529_v25  ;;  %v9532_v43 = vld [vmem:[#allocation46_spill] sm:$0xff] }
 0xce6   :  { %5074 = vmatpush.msrb.mxu2 %v7405_v1  ;;  %5119 = vmatpush.msrb.mxu3 %v9530_v5  ;;  %v9551_v25 = vld [vmem:[#allocation90_spill] sm:$0xff] }
 0xce7   :  { %5049 = vmatpush.msrb.mxu1 %v9518_v26  ;;  %5002 = vmatpush.msrb.mxu0 %v9531_v4  ;;  %v9547_v26 = vld [vmem:[#allocation64_spill] sm:$0xff] }
 0xce8   :  { %5076 = vmatpush.msrb.mxu2 %v7426_v32  ;;  %5125 = vmatpush.msrb.mxu3 %v9532_v43  ;;  %v452_v10 = vadd.f32 %v9547_v26, %v380_v50  ;;  %v9552_v4 = vld [vmem:[#allocation92_spill] sm:$0xff] }
 0xce9   :  { %5051 = vmatpush.msrb.mxu1 %v9521_v39  ;;  %5006 = vmatpush.msrb.mxu0 %v9533_v35  ;;  %v9549_v39 = vld [vmem:[#allocation91_spill] sm:$0xff] }
 0xcea   :  { %5078 = vmatpush.msrb.mxu2 %v7452_v0  ;;  %5131 = vmatpush.msrb.mxu3 %v9534_v62  ;;  %v669_v14 = vadd.f32 %v9549_v39, %v9548_v59 }
 0xceb   :  { %5053 = vmatpush.msrb.mxu1 %v9524_v56  ;;  %5010 = vmatpush.msrb.mxu0 %v9535_v24  ;;  %v9553_v24 = vld [vmem:[#allocation113_spill] sm:$0xff] }
 0xcec   :  { %5080 = vmatpush.msrb.mxu2 %v7461_v46  ;;  %5137 = vmatpush.msrb.mxu3 %v9536_v34  ;;  %v762_v43 = vadd.f32 %v9552_v4, %v669_v14 }
 0xced   :  { %5055 = vmatpush.msrb.mxu1 %v9526_v22  ;;  %5014 = vmatpush.msrb.mxu0 %v9537_v20  ;;  %v527_v22 = vadd.f32 %v9550_v3, %v452_v10 }
 0xcee   :  { %5082 = vmatpush.msrb.mxu2 %v7477_v57  ;;  %5143 = vmatpush.msrb.mxu3 %v9538_v15  ;;  %v834_v34 = vadd.f32 %v9553_v24, %v762_v43  ;;  %v9554_v15 = vld [vmem:[#allocation118_spill] sm:$0xff] }
 0xcef   :  { %5018 = vmatpush.msrb.mxu0 %v9539_v55  ;;  %v584_v5 = vadd.f32 %v9551_v25, %v527_v22 }
 0xcf0   :  { %5084 = vmatpush.msrb.mxu2 %v7496_v38  ;;  %5149 = vmatpush.msrb.mxu3 %v9540_v58  ;;  %v906_v55 = vadd.f32 %v9554_v15, %v834_v34 }
 0xcf1   :  { %5022 = vmatpush.msrb.mxu0 %v9541_v18 }
 0xcf3   :  { %5026 = vmatpush.msrb.mxu0 %v9542_v31 }
 0xd36   :  { %v4378_v36 = vpop.f32.mrf.mxu1 }
 0xd3e   :  { %v4317_v27 = vpop.f32.mrf.mxu0  ;;  %v4416_v37 = vpop.f32.mrf.mxu2 }
 0xd3f   :  { %v4379_v40 = vadd.f32 %v4378_v36, %v4317_v27  ;;  %v4521_v19 = vpop.f32.mrf.mxu1  ;;  %v981_v36 = vadd.f32 %v9555_v6, %v906_v55 }
 0xd40   :  { %v4447_v52 = vpop.f32.mrf.mxu3 }
 0xd41   :  { %v4417_v9 = vadd.f32 %v4416_v37, %v4379_v40  ;;  %v9556_v37 = vld [vmem:[#allocation120_spill] sm:$0xff] }
 0xd43   :  { %v4448_v33 = vadd.f32 %v4447_v52, %v4417_v9  ;;  %v1038_v9 = vadd.f32 %v9556_v37, %v981_v36 }
 0xd47   :  { %v4554_v45 = vpop.f32.mrf.mxu2 }
 0xd48   :  { %v4492_v56 = vpop.f32.mrf.mxu0 }
 0xd49   :  { %v4493_v23 = vadd.f32 %v4492_v56, %v4448_v33  ;;  %v4684_v13 = vpop.f32.mrf.mxu1 }
 0xd4a   :  { %v4615_v62 = vpop.f32.mrf.mxu3 }
 0xd4b   :  { %v4522_v35 = vadd.f32 %v4521_v19, %v4493_v23  ;;  %v4616_v58 = vadd.f32 %v4615_v62, %v4554_v45 }
 0xd4d   :  { %v4761_v20 = vadd.f32 %v4522_v35, %v584_v5 }
 0xd4f   :  { %v6521_v33 = vmul.f32 -1.442695, %v4761_v20 }
 0xd50   :  { %v4653_v18 = vpop.f32.mrf.mxu0 }
 0xd51   :  { %v4654_v31 = vadd.f32 %v4653_v18, %v4616_v58  ;;  %v4729_v7 = vpop.f32.mrf.mxu2 }
 0xd53   :  { %v4685_v27 = vadd.f32 %v4684_v13, %v4654_v31  ;;  %v4758_v40 = vpop.f32.mrf.mxu3 }
 0xd55   :  { %v4730_v47 = vadd.f32 %v4729_v7, %v4685_v27 }
 0xd57   :  { %v4759_v52 = vadd.f32 %v4758_v40, %v4730_v47 }
 0xd59   :  { %v4762_v17 = vadd.f32 %v4759_v52, %v1038_v9 }
 0xd5b   :  { %6628 = vtanh.f32 %v4762_v17  ;;  %v6522_v20 = vmul.f32 -1.442695, %v4762_v17 }
 0xd5c   :  { %6630 = vpow2.f32 %v6521_v33 }
 0xd61   :  { %v6629_v50 = vpop.eup %6628 }
 0xd62   :  { %4804 = vrot.lane.b32.xlu0 %v6629_v50, %s6737_s2  ;;  %v6631_v26 = vpop.eup %6630 }
 0xd63   :  { %v4769_v10 = vadd.f32 1.0, %v6631_v26 }
 0xd65   :  { %6632 = vrcp.f32 %v4769_v10  ;;  %v4782_v22 = vand.u32 2147483648, %v4769_v10  ;;  %vm4776_vm13 = vweird.f32 %v4769_v10  ;;  %v4780_v23 = vand.u32 2147483647, %v4769_v10 }
 0xd67   :  { %v4783_v25 = vor.u32 1.1754944e-38, %v4782_v22  ;;  %vm4781_vm15 = vcmp.eq.f32.partialorder %v4780_v23, 8.507059e+37  ;;  %v9566_v23 = vld [vmem:[#allocation121_spill] sm:$0xff] }
 0xd6b   :  { %v6633_v39 = vpop.eup %6632 }
 0xd6c   :  { %v4772_v14 = vmul.f32 %v6633_v39, %v4769_v10  ;;  %vm4777_vm12 = vweird.f32 %v6633_v39  ;;  %v9564_v10 = vld [vmem:[#allocation95_spill] sm:$0xff] }
 0xd6d   :  { %vm4778_vm14 = vmor %vm4776_vm13, %vm4777_vm12 }
 0xd6e   :  { %v4773_v19 = vsub.f32 1.0, %v4772_v14 }
 0xd70   :  { %v4774_v56 = vmul.f32 %v6633_v39, %v4773_v19 }
 0xd72   :  { %v4775_v3 = vadd.f32 %v6633_v39, %v4774_v56  ;;  %v9565_v56 = vld [vmem:[#allocation117_spill] sm:$0xff] }
 0xd74   :  { %v4779_v45 = vsel %vm4778_vm14, %v6633_v39, %v4775_v3 }
 0xd75   :  { %v4784_v4 = vsel %vm4781_vm15, %v4783_v25, %v4779_v45 }
 0xd76   :  { %v4802_v35 = vmul.f32 %v4784_v4, %v8425_v21 }
 0xdd4   :  { %v4805_v5 = vpop.permute.xlu0 %4804 }
 0xdd5   :  { %v4807_v43 = vmul.f32 %v4805_v5, %v4784_v4 }
 0xdd7   :  { %4809 = vrot.lane.b32.xlu1 %v4807_v43, %s6737_s2  ;;  %v9567_v43 = vld [vmem:[#allocation122_spill] sm:$0xff] }
 0xe49   :  { %v4810_v62 = vpop.permute.xlu1 %4809 }
 0xe4a   :  { %v8545_v24 = vadd.f32 %v4810_v62, %v4802_v35 }
 0xe4c   :  { %6634 = vtanh.f32 %v8545_v24 }
 0xe4d   :  { %6636 = vpow2.f32 %v6522_v20 }
 0xe52   :  { %v6635_v34 = vpop.eup %6634 }
 0xe53   :  { %4815 = vrot.lane.b32.xlu2 %v6635_v34, %s6737_s2  ;;  %v6637_v15 = vpop.eup %6636 }
 0xe54   :  { %v4770_v55 = vadd.f32 1.0, %v6637_v15 }
 0xe56   :  { %6638 = vrcp.f32 %v4770_v55  ;;  %v4797_v21 = vand.u32 2147483648, %v4770_v55  ;;  %vm4791_vm2 = vweird.f32 %v4770_v55  ;;  %v4795_v36 = vand.u32 2147483647, %v4770_v55 }
 0xe58   :  { %v4798_v7 = vor.u32 1.1754944e-38, %v4797_v21  ;;  %vm4796_vm4 = vcmp.eq.f32.partialorder %v4795_v36, 8.507059e+37 }
 0xe5c   :  { %v6639_v58 = vpop.eup %6638 }
 0xe5d   :  { %v4787_v18 = vmul.f32 %v6639_v58, %v4770_v55  ;;  %vm4792_vm1 = vweird.f32 %v6639_v58  ;;  %v9568_v55 = vld [vmem:[#allocation123_spill] sm:$0xff] }
 0xe5e   :  { %vm4793_vm3 = vmor %vm4791_vm2, %vm4792_vm1 }
 0xe5f   :  { %v4788_v31 = vsub.f32 1.0, %v4787_v18 }
 0xe61   :  { %v4789_v13 = vmul.f32 %v6639_v58, %v4788_v31 }
 0xe63   :  { %v4790_v6 = vadd.f32 %v6639_v58, %v4789_v13 }
 0xe65   :  { %v4794_v27 = vsel %vm4793_vm3, %v6639_v58, %v4790_v6 }
 0xe66   :  { %v4799_v47 = vsel %vm4796_vm4, %v4798_v7, %v4794_v27 }
 0xead   :  { %v4816_v40 = vpop.permute.xlu2 %4815 }
 0xeae   :  { %v4818_v37 = vmul.f32 %v4816_v40, %v4799_v47 }
 0xeb0   :  { %4819 = vst.msk [vmem:[#allocation2 + $0x30] sm:$0xff] %vm1595_vm9, %v4818_v37  ;;  %v4822_v9 = vsel %vm111_vm0, %v4818_v37, 0 }
 0xeb1   :  { %4820 = vst.msk [vmem:[#allocation2 + $0x8] sm:$0xff] %vm1597_vm10, %v4818_v37  ;;  %v4848_v52 = vand.u32 4294901760, %v4822_v9 }
 0xeb3   :  { %v4849_v17 = vsub.f32 %v4822_v9, %v4848_v52  ;;  %4914 = vmatmul.f32.vlgmr.msra.gmra.mxu1 %v4848_v52 }
 0xeb4   :  { %5202 = vmatpush.msra.mxu1 %v7368_v16 }
 0xeb5   :  { %4952 = vmatmul.f32.vlgmr.msra.gmra.mxu2 %v4849_v17  ;;  %v4850_v50 = vand.u32 4294901760, %v4849_v17 }
 0xeb6   :  { %5204 = vmatpush.msra.mxu1 %v7382_v54  ;;  %5235 = vmatpush.msra.mxu2 %v7403_v61 }
 0xeb7   :  { %4983 = vmatmul.f32.vlgmr.msra.gmra.mxu3 %v4850_v50  ;;  %v4851_v33 = vsub.f32 %v4849_v17, %v4850_v50 }
 0xeb8   :  { %5206 = vmatpush.msra.mxu1 %v7405_v1  ;;  %5239 = vmatpush.msra.mxu2 %v7424_v8 }
 0xeb9   :  { %5278 = vmatpush.msra.mxu3 %v7368_v16  ;;  %v4852_v26 = vand.u32 4294901760, %v4851_v33 }
 0xeba   :  { %5208 = vmatpush.msra.mxu1 %v7426_v32  ;;  %5243 = vmatpush.msra.mxu2 %v7450_v44  ;;  %v9558_v44 = vld [vmem:[#allocation65_spill] sm:$0xff] }
 0xebb   :  { %5280 = vmatpush.msra.mxu3 %v7382_v54  ;;  %4853 = vmatmul.f32.vlgmr.msra.gmra.mxu0 %v4852_v26 }
 0xebc   :  { %5057 = vmatmul.f32.vlgmr.msrb.gmra.mxu1 %v4848_v52  ;;  %5165 = vmatpush.msra.mxu0 %v7385_v29 }
 0xebd   :  { %5210 = vmatpush.msra.mxu1 %v7452_v0  ;;  %5247 = vmatpush.msra.mxu2 %v7468_v42 }
 0xebe   :  { %5282 = vmatpush.msra.mxu3 %v7405_v1  ;;  %5090 = vmatmul.f32.vlgmr.msrb.gmra.mxu2 %v4852_v26 }
 0xebf   :  { %5168 = vmatpush.msra.mxu0 %v7408_v28  ;;  %5212 = vmatpush.msra.mxu1 %v7461_v46 }
 0xec0   :  { %5251 = vmatpush.msra.mxu2 %v7489_v2  ;;  %5284 = vmatpush.msra.mxu3 %v7426_v32  ;;  %v9559_v32 = vld [vmem:[#allocation66_spill] sm:$0xff]  ;;  %v9562_v2 = vld [vmem:[#allocation89_spill] sm:$0xff] }
 0xec1   :  { %5151 = vmatmul.f32.vlgmr.msrb.gmra.mxu3 %v4848_v52  ;;  %5171 = vmatpush.msra.mxu0 %v7429_v60 }
 0xec2   :  { %5214 = vmatpush.msra.mxu1 %v7477_v57  ;;  %5255 = vmatpush.msra.mxu2 %v7494_v41 }
 0xec3   :  { %5286 = vmatpush.msra.mxu3 %v7452_v0  ;;  %5174 = vmatpush.msra.mxu0 %v7455_v63  ;;  %v9560_v63 = vld [vmem:[#allocation67_spill] sm:$0xff] }
 0xec4   :  { %5216 = vmatpush.msra.mxu1 %v7496_v38  ;;  %5259 = vmatpush.msra.mxu2 %v7520_v48 }
 0xec5   :  { %5288 = vmatpush.msra.mxu3 %v7461_v46  ;;  %5028 = vmatmul.f32.vlgmr.msrb.gmra.mxu0 %v4848_v52  ;;  %v9557_v46 = vld [vmem:[#allocation61_spill] sm:$0xff] }
 0xec6   :  { %5220 = vmatmul.f32.vlgmr.msra.gmra.mxu1 %v4850_v50  ;;  %5177 = vmatpush.msra.mxu0 %v7471_v12  ;;  %v223_v16 = vadd.f32 %v9557_v46, %v9543_v30  ;;  %v9561_v12 = vld [vmem:[#allocation94_spill] sm:$0xff] }
 0xec7   :  { %5263 = vmatpush.msra.mxu2 %v7536_v11  ;;  %5290 = vmatpush.msra.mxu3 %v7477_v57 }
 0xec8   :  { %5265 = vmatmul.f32.vlgmr.msra.gmra.mxu2 %v4848_v52  ;;  %5180 = vmatpush.msra.mxu0 %v7480_v51  ;;  %v312_v11 = vadd.f32 %v9558_v44, %v223_v16  ;;  %v5373_v16 = vld [vmem:[%s9063_s4 + $0x38] sm:$0xff] }
 0xec9   :  { %5292 = vmatpush.msra.mxu3 %v7496_v38  ;;  %v677_v38 = vadd.f32 %v9561_v12, %v9548_v59 }
 0xeca   :  { %5294 = vmatmul.f32.vlgmr.msra.gmra.mxu3 %v4848_v52  ;;  %5183 = vmatpush.msra.mxu0 %v7499_v49  ;;  %v385_v60 = vadd.f32 %v9559_v32, %v312_v11 }
 0xecb   :  { %v766_v39 = vadd.f32 %v9564_v10, %v677_v38  ;;  %v5370_v38 = vld [vmem:[%s9063_s4 + $0x20] sm:$0xff] }
 0xecc   :  { %5186 = vmatpush.msra.mxu0 %v7525_v53  ;;  %v458_v42 = vadd.f32 %v9560_v63, %v385_v60  ;;  %v9563_v53 = vld [vmem:[#allocation93_spill] sm:$0xff] }
 0xecd   :  { %5189 = vmatmul.f32.vlgmr.msra.gmra.mxu0 %v4849_v17  ;;  %v839_v3 = vadd.f32 %v9565_v56, %v766_v39 }
 0xece   :  { %v531_v41 = vadd.f32 %v9562_v2, %v458_v42  ;;  %v5371_v42 = vld [vmem:[%s9063_s4 + $0x28] sm:$0xff] }
 0xecf   :  { %v912_v45 = vadd.f32 %v9566_v23, %v839_v3  ;;  %v8622_v12 = vand.u32 4294901760, %v5371_v42 }
 0xed0   :  { %v588_v30 = vadd.f32 %v9563_v53, %v531_v41  ;;  %v8632_v41 = vand.u32 4294901760, %v5370_v38 }
 0xed1   :  { %v985_v35 = vadd.f32 %v9567_v43, %v912_v45  ;;  %v5512_v2 = vsub.f32 %v5371_v42, %v8622_v12  ;;  %v5367_v45 = vld [vmem:[%s9063_s4 + $0x8] sm:$0xff] }
 0xed3   :  { %v1042_v58 = vadd.f32 %v9568_v55, %v985_v35  ;;  %v8640_v53 = vand.u32 4294901760, %v5512_v2  ;;  %v5366_v35 = vld [vmem:[%s9063_s4] sm:$0xff] }
 0xed5   :  { %v5514_v56 = vsub.f32 %v5512_v2, %v8640_v53 }
 0xf30   :  { %v4915_v54 = vpop.f32.mrf.mxu1 }
 0xf38   :  { %v4854_v29 = vpop.f32.mrf.mxu0  ;;  %v4953_v1 = vpop.f32.mrf.mxu2 }
 0xf39   :  { %v4916_v61 = vadd.f32 %v4915_v54, %v4854_v29  ;;  %v5058_v57 = vpop.f32.mrf.mxu1  ;;  %v8603_v54 = vand.u32 4294901760, %v5373_v16 }
 0xf3a   :  { %v4984_v8 = vpop.f32.mrf.mxu3 }
 0xf3b   :  { %v4954_v28 = vadd.f32 %v4953_v1, %v4916_v61  ;;  %v5500_v29 = vsub.f32 %v5373_v16, %v8603_v54  ;;  %5662 = vmatpush.msrb.mxu3 %v8603_v54  ;;  %5411 = vmatpush.msrb.mxu0 %v8603_v54 }
 0xf3d   :  { %v4985_v0 = vadd.f32 %v4984_v8, %v4954_v28  ;;  %v8608_v44 = vand.u32 4294901760, %v5500_v29  ;;  %5590 = vmatpush.msrb.mxu2 %v5500_v29 }
 0xf3f   :  { %v5502_v11 = vsub.f32 %v5500_v29, %v8608_v44 }
 0xf41   :  { %v5091_v48 = vpop.f32.mrf.mxu2  ;;  %v5503_v61 = vand.u32 4294901760, %v5502_v11 }
 0xf42   :  { %v5029_v51 = vpop.f32.mrf.mxu0 }
 0xf43   :  { %v5030_v49 = vadd.f32 %v5029_v51, %v4985_v0  ;;  %v5221_v4 = vpop.f32.mrf.mxu1  ;;  %5504 = vmatpush.msrb.mxu1 %v5503_v61  ;;  %v5372_v0 = vld [vmem:[%s9063_s4 + $0x30] sm:$0xff] }
 0xf44   :  { %v5152_v19 = vpop.f32.mrf.mxu3  ;;  %v8616_v63 = vand.u32 4294901760, %v5372_v0 }
 0xf45   :  { %v5059_v14 = vadd.f32 %v5058_v57, %v5030_v49  ;;  %v5153_v25 = vadd.f32 %v5152_v19, %v5091_v48  ;;  %v5369_v49 = vld [vmem:[%s9063_s4 + $0x18] sm:$0xff] }
 0xf46   :  { %5664 = vmatpush.msrb.mxu3 %v8616_v63  ;;  %5413 = vmatpush.msrb.mxu0 %v8616_v63  ;;  %v8643_v10 = vand.u32 4294901760, %v5369_v49 }
 0xf47   :  { %v5298_v22 = vadd.f32 %v5059_v14, %v588_v30  ;;  %v5518_v30 = vsub.f32 %v5370_v38, %v8632_v41  ;;  %v5368_v14 = vld [vmem:[%s9063_s4 + $0x10] sm:$0xff] }
 0xf48   :  { %5666 = vmatpush.msrb.mxu3 %v8622_v12  ;;  %5415 = vmatpush.msrb.mxu0 %v8622_v12  ;;  %v8655_v23 = vand.u32 4294901760, %v5368_v14 }
 0xf49   :  { %v6523_v6 = vmul.f32 -1.442695, %v5298_v22  ;;  %v5519_v3 = vand.u32 4294901760, %v5518_v30  ;;  %v5524_v22 = vsub.f32 %v5369_v49, %v8643_v10 }
 0xf4a   :  { %v5190_v5 = vpop.f32.mrf.mxu0  ;;  %5668 = vmatpush.msrb.mxu3 %v8632_v41  ;;  %5417 = vmatpush.msrb.mxu0 %v8632_v41  ;;  %v5530_v43 = vsub.f32 %v5368_v14, %v8655_v23 }
 0xf4b   :  { %v5191_v59 = vadd.f32 %v5190_v5, %v5153_v25  ;;  %v5266_v34 = vpop.f32.mrf.mxu2  ;;  %v5515_v25 = vand.u32 4294901760, %v5514_v56  ;;  %v5520_v5 = vsub.f32 %v5518_v30, %v5519_v3 }
 0xf4c   :  { %5670 = vmatpush.msrb.mxu3 %v8643_v10  ;;  %5419 = vmatpush.msrb.mxu0 %v8643_v10  ;;  %v5531_v55 = vand.u32 4294901760, %v5530_v43 }
 0xf4d   :  { %v5222_v62 = vadd.f32 %v5221_v4, %v5191_v59  ;;  %v5295_v15 = vpop.f32.mrf.mxu3  ;;  %v5525_v59 = vand.u32 4294901760, %v5524_v22  ;;  %v8661_v4 = vand.u32 4294901760, %v5367_v45 }
 0xf4e   :  { %5672 = vmatpush.msrb.mxu3 %v8655_v23  ;;  %5421 = vmatpush.msrb.mxu0 %v8655_v23 }
 0xf4f   :  { %v5267_v20 = vadd.f32 %v5266_v34, %v5222_v62  ;;  %v5521_v62 = vand.u32 4294901760, %v5520_v5  ;;  %v5526_v34 = vsub.f32 %v5524_v22, %v5525_v59 }
 0xf50   :  { %5674 = vmatpush.msrb.mxu3 %v8661_v4  ;;  %5423 = vmatpush.msrb.mxu0 %v8661_v4 }
 0xf51   :  { %v5296_v18 = vadd.f32 %v5295_v15, %v5267_v20  ;;  %v5536_v20 = vsub.f32 %v5367_v45, %v8661_v4  ;;  %v8671_v15 = vand.u32 4294901760, %v5366_v35 }
 0xf53   :  { %v5299_v31 = vadd.f32 %v5296_v18, %v1042_v58  ;;  %v5527_v58 = vand.u32 4294901760, %v5526_v34  ;;  %v5537_v18 = vand.u32 4294901760, %v5536_v20  ;;  %5676 = vmatpush.msrb.mxu3 %v8671_v15  ;;  %5425 = vmatpush.msrb.mxu0 %v8671_v15 }
 0xf55   :  { %6640 = vtanh.f32 %v5299_v31  ;;  %v6524_v60 = vmul.f32 -1.442695, %v5299_v31  ;;  %v5542_v31 = vsub.f32 %v5366_v35, %v8671_v15  ;;  %5737 = vmatpush.msra.mxu0 %v8608_v44  ;;  %6533 = vmatpush.msra.mxu3 %v8603_v54  ;;  %v5364_v35 = vld [vmem:[#allocation2 + $0x30] sm:$0xff] }
 0xf56   :  { %6642 = vpow2.f32 %v6523_v6  ;;  %v5538_v6 = vsub.f32 %v5536_v20, %v5537_v18 }
 0xf57   :  { %6534 = vmatpush.msra.mxu3 %v8616_v63 }
 0xf59   :  { %6535 = vmatpush.msra.mxu3 %v8622_v12 }
 0xf5b   :  { %v6641_v13 = vpop.eup %6640  ;;  %6536 = vmatpush.msra.mxu3 %v8632_v41 }
 0xf5c   :  { %5341 = vrot.lane.b32.xlu0 %v6641_v13, %s6737_s2  ;;  %v6643_v21 = vpop.eup %6642  ;;  %v5532_v13 = vsub.f32 %v5530_v43, %v5531_v55 }
 0xf5d   :  { %v5306_v36 = vadd.f32 1.0, %v6643_v21  ;;  %v5543_v21 = vand.u32 4294901760, %v5542_v31  ;;  %6537 = vmatpush.msra.mxu3 %v8643_v10 }
 0xf5f   :  { %6644 = vrcp.f32 %v5306_v36  ;;  %v5319_v9 = vand.u32 2147483648, %v5306_v36  ;;  %vm5313_vm6 = vweird.f32 %v5306_v36  ;;  %v5317_v52 = vand.u32 2147483647, %v5306_v36  ;;  %6538 = vmatpush.msra.mxu3 %v8655_v23 }
 0xf61   :  { %v5320_v50 = vor.u32 1.1754944e-38, %v5319_v9  ;;  %vm5318_vm8 = vcmp.eq.f32.partialorder %v5317_v52, 8.507059e+37  ;;  %6539 = vmatpush.msra.mxu3 %v8661_v4 }
 0xf63   :  { %6540 = vmatpush.msra.mxu3 %v8671_v15 }
 0xf65   :  { %v6645_v27 = vpop.eup %6644 }
 0xf66   :  { %v5309_v7 = vmul.f32 %v6645_v27, %v5306_v36  ;;  %vm5314_vm5 = vweird.f32 %v6645_v27 }
 0xf67   :  { %vm5315_vm7 = vmor %vm5313_vm6, %vm5314_vm5 }
 0xf68   :  { %v5310_v47 = vsub.f32 1.0, %v5309_v7  ;;  %v5539_v7 = vand.u32 4294901760, %v5538_v6 }
 0xf6a   :  { %v5311_v40 = vmul.f32 %v6645_v27, %v5310_v47  ;;  %v5544_v47 = vsub.f32 %v5542_v31, %v5543_v21 }
 0xf6c   :  { %v5312_v37 = vadd.f32 %v6645_v27, %v5311_v40  ;;  %v5545_v40 = vand.u32 4294901760, %v5544_v47 }
 0xf6e   :  { %v5316_v17 = vsel %vm5315_vm7, %v6645_v27, %v5312_v37  ;;  %v5533_v27 = vand.u32 4294901760, %v5532_v13 }
 0xf6f   :  { %v5321_v26 = vsel %vm5318_vm8, %v5320_v50, %v5316_v17 }
 0xf70   :  { %v5339_v1 = vmul.f32 %v5321_v26, %v8545_v24  ;;  %v5506_v24 = vsub.f32 %v5372_v0, %v8616_v63 }
 0xf72   :  { %v8629_v51 = vand.u32 4294901760, %v5506_v24  ;;  %5593 = vmatpush.msrb.mxu2 %v5506_v24 }
 0xf74   :  { %v5508_v48 = vsub.f32 %v5506_v24, %v8629_v51  ;;  %5596 = vmatpush.msrb.mxu2 %v5512_v2  ;;  %5741 = vmatpush.msra.mxu0 %v8629_v51 }
 0xf76   :  { %v5509_v19 = vand.u32 4294901760, %v5508_v48  ;;  %5599 = vmatpush.msrb.mxu2 %v5518_v30  ;;  %5745 = vmatpush.msra.mxu0 %v8640_v53 }
 0xf78   :  { %5510 = vmatpush.msrb.mxu1 %v5509_v19  ;;  %5602 = vmatpush.msrb.mxu2 %v5524_v22 }
 0xf79   :  { %5749 = vmatpush.msra.mxu0 %v5519_v3 }
 0xf7a   :  { %5516 = vmatpush.msrb.mxu1 %v5515_v25  ;;  %5605 = vmatpush.msrb.mxu2 %v5530_v43 }
 0xf7b   :  { %5753 = vmatpush.msra.mxu0 %v5525_v59 }
 0xf7c   :  { %5522 = vmatpush.msrb.mxu1 %v5521_v62  ;;  %5608 = vmatpush.msrb.mxu2 %v5536_v20  ;;  %v5397_v20 = vsel %vm111_vm0, %v5364_v35, 0 }
 0xf7d   :  { %5757 = vmatpush.msra.mxu0 %v5531_v55 }
 0xf7e   :  { %5528 = vmatpush.msrb.mxu1 %v5527_v58  ;;  %5611 = vmatpush.msrb.mxu2 %v5542_v31  ;;  %v5474_v58 = vand.u32 4294901760, %v5397_v20 }
 0xf7f   :  { %5761 = vmatpush.msra.mxu0 %v5537_v18 }
 0xf80   :  { %6525 = vmatpush.msra.mxu2 %v8608_v44  ;;  %5534 = vmatpush.msrb.mxu1 %v5533_v27  ;;  %v5359_v44 = vld [vmem:[#allocation2 + $0x8] sm:$0xff]  ;;  %v5475_v13 = vsub.f32 %v5397_v20, %v5474_v58 }
 0xf81   :  { %5765 = vmatpush.msra.mxu0 %v5543_v21  ;;  %v5382_v11 = vsel %vm111_vm0, %v5359_v44, 0 }
 0xf82   :  { %6526 = vmatpush.msra.mxu2 %v8629_v51  ;;  %5540 = vmatpush.msrb.mxu1 %v5539_v7  ;;  %v5361_v51 = vld [vmem:[#allocation2 + $0x18] sm:$0xff] }
 0xf83   :  { %v5388_v49 = vsel %vm111_vm0, %v5361_v51, 0 }
 0xf84   :  { %6527 = vmatpush.msra.mxu2 %v8640_v53  ;;  %5546 = vmatpush.msrb.mxu1 %v5545_v40  ;;  %v8721_v30 = vand.u32 4294901760, %v5388_v49 }
 0xf86   :  { %5808 = vmatpush.msra.mxu1 %v8603_v54  ;;  %6528 = vmatpush.msra.mxu2 %v5519_v3  ;;  %v5451_v14 = vsub.f32 %v5388_v49, %v8721_v30 }
 0xf88   :  { %5810 = vmatpush.msra.mxu1 %v8616_v63  ;;  %6529 = vmatpush.msra.mxu2 %v5525_v59  ;;  %v5452_v3 = vand.u32 4294901760, %v5451_v14 }
 0xf8a   :  { %5812 = vmatpush.msra.mxu1 %v8622_v12  ;;  %6530 = vmatpush.msra.mxu2 %v5531_v55  ;;  %v5453_v45 = vsub.f32 %v5451_v14, %v5452_v3 }
 0xf8c   :  { %5814 = vmatpush.msra.mxu1 %v8632_v41  ;;  %6531 = vmatpush.msra.mxu2 %v5537_v18  ;;  %v5454_v59 = vand.u32 4294901760, %v5453_v45 }
 0xf8e   :  { %5816 = vmatpush.msra.mxu1 %v8643_v10  ;;  %6532 = vmatpush.msra.mxu2 %v5543_v21  ;;  %v5362_v10 = vld [vmem:[#allocation2 + $0x20] sm:$0xff] }
 0xf8f   :  { %v5391_v19 = vsel %vm111_vm0, %v5362_v10, 0 }
 0xf90   :  { %5818 = vmatpush.msra.mxu1 %v8655_v23  ;;  %v5458_v22 = vand.u32 4294901760, %v5391_v19  ;;  %v5363_v23 = vld [vmem:[#allocation2 + $0x28] sm:$0xff] }
 0xf91   :  { %v5394_v5 = vsel %vm111_vm0, %v5363_v23, 0 }
 0xf92   :  { %5820 = vmatpush.msra.mxu1 %v8661_v4  ;;  %v5459_v25 = vsub.f32 %v5391_v19, %v5458_v22  ;;  %v5466_v43 = vand.u32 4294901760, %v5394_v5 }
 0xf94   :  { %5822 = vmatpush.msra.mxu1 %v8671_v15  ;;  %v5460_v4 = vand.u32 4294901760, %v5459_v25  ;;  %v5467_v34 = vsub.f32 %v5394_v5, %v5466_v43 }
 0xf96   :  { %v5461_v62 = vsub.f32 %v5459_v25, %v5460_v4  ;;  %v5468_v55 = vand.u32 4294901760, %v5467_v34 }
 0xf98   :  { %v5462_v15 = vand.u32 4294901760, %v5461_v62  ;;  %v5469_v31 = vsub.f32 %v5467_v34, %v5468_v55 }
 0xf9a   :  { %v5470_v21 = vand.u32 4294901760, %v5469_v31 }
 0xfce   :  { %v5342_v33 = vpop.permute.xlu0 %5341 }
 0xfcf   :  { %v5344_v46 = vmul.f32 %v5342_v33, %v5321_v26 }
 0xfd1   :  { %5346 = vrot.lane.b32.xlu1 %v5344_v46, %s6737_s2 }
0x1043   :  { %v5347_v28 = vpop.permute.xlu1 %5346 }
0x1044   :  { %v5349_v8 = vadd.f32 %v5347_v28, %v5339_v1 }
0x1046   :  { %6646 = vtanh.f32 %v5349_v8  ;;  %v8710_v8 = vand.u32 4294901760, %v5382_v11 }
0x1047   :  { %6648 = vpow2.f32 %v6524_v60  ;;  %v5360_v60 = vld [vmem:[#allocation2 + $0x10] sm:$0xff] }
0x1048   :  { %v5435_v63 = vsub.f32 %v5382_v11, %v8710_v8  ;;  %v5385_v42 = vsel %vm111_vm0, %v5360_v60, 0 }
0x104a   :  { %v5436_v38 = vand.u32 4294901760, %v5435_v63 }
0x104c   :  { %v6647_v32 = vpop.eup %6646  ;;  %v5437_v2 = vsub.f32 %v5435_v63, %v5436_v38 }
0x104d   :  { %5352 = vrot.lane.b32.xlu2 %v6647_v32, %s6737_s2  ;;  %v6649_v57 = vpop.eup %6648 }
0x104e   :  { %v8646_v39 = vadd.f32 1.0, %v6649_v57  ;;  %v8716_v57 = vand.u32 4294901760, %v5385_v42  ;;  %v5438_v48 = vand.u32 4294901760, %v5437_v2 }
0x1050   :  { %6650 = vrcp.f32 %v8646_v39  ;;  %v5334_v50 = vand.u32 2147483648, %v8646_v39  ;;  %vm5328_vm12 = vweird.f32 %v8646_v39  ;;  %v5332_v33 = vand.u32 2147483647, %v8646_v39 }
0x1051   :  { %v5443_v41 = vsub.f32 %v5385_v42, %v8716_v57 }
0x1052   :  { %v5335_v46 = vor.u32 1.1754944e-38, %v5334_v50  ;;  %vm5333_vm14 = vcmp.eq.f32.partialorder %v5332_v33, 8.507059e+37 }
0x1053   :  { %v5444_v53 = vand.u32 4294901760, %v5443_v41 }
0x1056   :  { %v6651_v36 = vpop.eup %6650 }
0x1057   :  { %v5324_v37 = vmul.f32 %v6651_v36, %v8646_v39  ;;  %vm5329_vm11 = vweird.f32 %v6651_v36  ;;  %v5445_v39 = vsub.f32 %v5443_v41, %v5444_v53 }
0x1058   :  { %vm5330_vm13 = vmor %vm5328_vm12, %vm5329_vm11 }
0x1059   :  { %v5325_v9 = vsub.f32 1.0, %v5324_v37  ;;  %v5446_v56 = vand.u32 4294901760, %v5445_v39 }
0x105b   :  { %v5326_v52 = vmul.f32 %v6651_v36, %v5325_v9 }
0x105d   :  { %v5327_v17 = vadd.f32 %v6651_v36, %v5326_v52 }
0x105f   :  { %v5331_v26 = vsel %vm5330_vm13, %v6651_v36, %v5327_v17  ;;  %v5476_v36 = vand.u32 4294901760, %v5475_v13 }
0x1060   :  { %v5336_v16 = vsel %vm5333_vm14, %v5335_v46, %v5331_v26 }
0x1061   :  { %v5477_v7 = vsub.f32 %v5475_v13, %v5476_v36 }
0x1063   :  { %v5478_v40 = vand.u32 4294901760, %v5477_v7 }
0x10a7   :  { %v5353_v54 = vpop.permute.xlu2 %5352 }
0x10a8   :  { %v5355_v29 = vmul.f32 %v5353_v54, %v5336_v16 }
0x10aa   :  { %5356 = vst.msk [vmem:[#allocation2 + $0x38] sm:$0xff] %vm1595_vm9, %v5355_v29 }
0x10ab   :  { %5357 = vst.msk [vmem:[#allocation2] sm:$0xff] %vm1597_vm10, %v5355_v29 }
0x10b1   :  { %v5365_v18 = vld [vmem:[#allocation2 + $0x38] sm:$0xff] }
0x10b2   :  { %v5358_v61 = vld [vmem:[#allocation2] sm:$0xff]  ;;  %v5400_v6 = vsel %vm111_vm0, %v5365_v18, 0 }
0x10b3   :  { %v5379_v1 = vsel %vm111_vm0, %v5358_v61, 0  ;;  %v5482_v27 = vand.u32 4294901760, %v5400_v6 }
0x10b4   :  { %v8708_v28 = vand.u32 4294901760, %v5379_v1 }
0x10b5   :  { %v5483_v47 = vsub.f32 %v5400_v6, %v5482_v27 }
0x10b6   :  { %5548 = vmatmul.f32.vlgmr.msrb.gmra.mxu1 %v8708_v28  ;;  %v5427_v32 = vsub.f32 %v5379_v1, %v8708_v28 }
0x10b7   :  { %v5484_v37 = vand.u32 4294901760, %v5483_v47 }
0x10b8   :  { %5614 = vmatmul.f32.vlgmr.msrb.gmra.mxu2 %v5427_v32  ;;  %v5428_v0 = vand.u32 4294901760, %v5427_v32 }
0x10b9   :  { %v5485_v9 = vsub.f32 %v5483_v47, %v5484_v37 }
0x10ba   :  { %5680 = vmatmul.f32.vlgmr.msrb.gmra.mxu3 %v5428_v0  ;;  %v5429_v24 = vsub.f32 %v5427_v32, %v5428_v0 }
0x10bb   :  { %v5486_v52 = vand.u32 4294901760, %v5485_v9 }
0x10bc   :  { %v5430_v12 = vand.u32 4294901760, %v5429_v24 }
0x10be   :  { %5431 = vmatmul.f32.vlgmr.msrb.gmra.mxu0 %v5430_v12  ;;  %5552 = vmatmul.f32.gmra.mxu1 %v8710_v8 }
0x10c0   :  { %5619 = vmatmul.f32.gmra.mxu2 %v5435_v63 }
0x10c2   :  { %5686 = vmatmul.f32.gmra.mxu3 %v5436_v38  ;;  %v8749_v38 = vld [vmem:[%s9064_s5] ss:$0 sm:$0xff] }
0x10c6   :  { %5439 = vmatmul.f32.gmra.mxu0 %v5438_v48  ;;  %5556 = vmatmul.f32.gmra.mxu1 %v8716_v57 }
0x10c8   :  { %5624 = vmatmul.f32.gmra.mxu2 %v5443_v41 }
0x10ca   :  { %5692 = vmatmul.f32.gmra.mxu3 %v5444_v53 }
0x10ce   :  { %5447 = vmatmul.f32.gmra.mxu0 %v5446_v56  ;;  %5560 = vmatmul.f32.gmra.mxu1 %v8721_v30 }
0x10d0   :  { %5629 = vmatmul.f32.gmra.mxu2 %v5451_v14 }
0x10d2   :  { %5698 = vmatmul.f32.gmra.mxu3 %v5452_v3 }
0x10d6   :  { %5455 = vmatmul.f32.gmra.mxu0 %v5454_v59  ;;  %5564 = vmatmul.f32.gmra.mxu1 %v5458_v22 }
0x10d8   :  { %5634 = vmatmul.f32.gmra.mxu2 %v5459_v25 }
0x10da   :  { %5704 = vmatmul.f32.gmra.mxu3 %v5460_v4  ;;  %v6670_v4 = vld [vmem:[#allocation4] sm:$0xff] }
0x10de   :  { %5463 = vmatmul.f32.gmra.mxu0 %v5462_v15  ;;  %5568 = vmatmul.f32.gmra.mxu1 %v5466_v43 }
0x10e0   :  { %5639 = vmatmul.f32.gmra.mxu2 %v5467_v34 }
0x10e2   :  { %5710 = vmatmul.f32.gmra.mxu3 %v5468_v55 }
0x10e6   :  { %5471 = vmatmul.f32.gmra.mxu0 %v5470_v21  ;;  %5572 = vmatmul.f32.gmra.mxu1 %v5474_v58 }
0x10e8   :  { %5644 = vmatmul.f32.gmra.mxu2 %v5475_v13 }
0x10ea   :  { %5716 = vmatmul.f32.gmra.mxu3 %v5476_v36 }
0x10ee   :  { %5479 = vmatmul.f32.gmra.mxu0 %v5478_v40  ;;  %5576 = vmatmul.f32.gmra.mxu1 %v5482_v27 }
0x10f0   :  { %5649 = vmatmul.f32.gmra.mxu2 %v5483_v47 }
0x10f2   :  { %5722 = vmatmul.f32.gmra.mxu3 %v5484_v37 }
0x10f6   :  { %5487 = vmatmul.f32.gmra.mxu0 %v5486_v52  ;;  %5824 = vmatmul.f32.vlgmr.msra.gmra.mxu1 %v8708_v28 }
0x10f8   :  { %5795 = vmatmul.f32.vlgmr.msra.gmra.mxu2 %v5482_v27 }
0x10fa   :  { %5852 = vmatmul.f32.vlgmr.msra.gmra.mxu3 %v5482_v27  ;;  %v6671_v27 = vld [vmem:[#allocation4 + $0x8] sm:$0xff] }
0x10fe   :  { %5767 = vmatmul.f32.vlgmr.msra.gmra.mxu0 %v8708_v28  ;;  %5828 = vmatmul.f32.gmra.mxu1 %v8710_v8 }
0x1106   :  { %5771 = vmatmul.f32.gmra.mxu0 %v8710_v8  ;;  %5832 = vmatmul.f32.gmra.mxu1 %v8716_v57 }
0x110e   :  { %5775 = vmatmul.f32.gmra.mxu0 %v8716_v57  ;;  %5836 = vmatmul.f32.gmra.mxu1 %v8721_v30 }
0x1116   :  { %5779 = vmatmul.f32.gmra.mxu0 %v8721_v30  ;;  %5840 = vmatmul.f32.gmra.mxu1 %v5458_v22 }
0x111e   :  { %5783 = vmatmul.f32.gmra.mxu0 %v5458_v22  ;;  %5844 = vmatmul.f32.gmra.mxu1 %v5466_v43 }
0x1126   :  { %5787 = vmatmul.f32.gmra.mxu0 %v5466_v43  ;;  %5848 = vmatmul.f32.gmra.mxu1 %v5474_v58 }
0x112e   :  { %5791 = vmatmul.f32.gmra.mxu0 %v5474_v58 }
0x1133   :  { %v5549_v17 = vpop.f32.mrf.mxu1 }
0x113b   :  { %v5432_v50 = vpop.f32.mrf.mxu0  ;;  %v5553_v33 = vpop.f32.mrf.mxu1 }
0x113c   :  { %v5615_v16 = vpop.f32.mrf.mxu2  ;;  %v5433_v2 = vadd.f32 %v8749_v38, %v5432_v50 }
0x113d   :  { %v5681_v54 = vpop.f32.mrf.mxu3 }
0x113e   :  { %v5550_v49 = vadd.f32 %v5549_v17, %v5433_v2 }
0x1140   :  { %v5616_v10 = vadd.f32 %v5615_v16, %v5550_v49 }
0x1142   :  { %v5682_v19 = vadd.f32 %v5681_v54, %v5616_v10 }
0x1143   :  { %v5440_v26 = vpop.f32.mrf.mxu0  ;;  %v5557_v46 = vpop.f32.mrf.mxu1 }
0x1144   :  { %v5620_v11 = vpop.f32.mrf.mxu2  ;;  %v5441_v39 = vadd.f32 %v8749_v38, %v5440_v26 }
0x1145   :  { %v5687_v28 = vpop.f32.mrf.mxu3 }
0x1146   :  { %v5554_v56 = vadd.f32 %v5553_v33, %v5441_v39 }
0x1148   :  { %v5621_v25 = vadd.f32 %v5620_v11, %v5554_v56 }
0x114a   :  { %v5688_v35 = vadd.f32 %v5687_v28, %v5621_v25 }
0x114b   :  { %v5448_v29 = vpop.f32.mrf.mxu0  ;;  %v5561_v44 = vpop.f32.mrf.mxu1 }
0x114c   :  { %v5625_v8 = vpop.f32.mrf.mxu2  ;;  %v5449_v5 = vadd.f32 %v8749_v38, %v5448_v29 }
0x114d   :  { %v5693_v0 = vpop.f32.mrf.mxu3 }
0x114e   :  { %v5558_v62 = vadd.f32 %v5557_v46, %v5449_v5 }
0x1150   :  { %v5626_v13 = vadd.f32 %v5625_v8, %v5558_v62 }
0x1152   :  { %v5694_v40 = vadd.f32 %v5693_v0, %v5626_v13 }
0x1153   :  { %v5456_v61 = vpop.f32.mrf.mxu0  ;;  %v8738_v1 = vpop.f32.mrf.mxu1 }
0x1154   :  { %v5630_v24 = vpop.f32.mrf.mxu2  ;;  %v5457_v18 = vadd.f32 %v8749_v38, %v5456_v61 }
0x1155   :  { %v5699_v12 = vpop.f32.mrf.mxu3 }
0x1156   :  { %v5562_v47 = vadd.f32 %v5561_v44, %v5457_v18  ;;  %v6672_v44 = vld [vmem:[#allocation4 + $0x10] sm:$0xff] }
0x1158   :  { %v5631_v33 = vadd.f32 %v5630_v24, %v5562_v47 }
0x115a   :  { %v5700_v8 = vadd.f32 %v5699_v12, %v5631_v33  ;;  %v6673_v12 = vld [vmem:[#allocation4 + $0x18] sm:$0xff] }
0x115b   :  { %v5464_v32 = vpop.f32.mrf.mxu0  ;;  %v8740_v60 = vpop.f32.mrf.mxu1 }
0x115c   :  { %v5635_v41 = vpop.f32.mrf.mxu2  ;;  %v5465_v46 = vadd.f32 %v8749_v38, %v5464_v32 }
0x115d   :  { %v8754_v48 = vpop.f32.mrf.mxu3 }
0x115e   :  { %v5566_v0 = vadd.f32 %v8738_v1, %v5465_v46 }
0x1163   :  { %v8742_v63 = vpop.f32.mrf.mxu0  ;;  %v8744_v42 = vpop.f32.mrf.mxu1 }
0x1164   :  { %v8757_v14 = vpop.f32.mrf.mxu2 }
0x1165   :  { %v8759_v45 = vpop.f32.mrf.mxu3 }
0x116b   :  { %v8751_v57 = vpop.f32.mrf.mxu0  ;;  %v5577_v51 = vpop.f32.mrf.mxu1 }
0x116c   :  { %v8764_v20 = vpop.f32.mrf.mxu2 }
0x116d   :  { %v8770_v36 = vpop.f32.mrf.mxu3 }
0x1173   :  { %v5488_v53 = vpop.f32.mrf.mxu0  ;;  %v5825_v30 = vpop.f32.mrf.mxu1 }
0x1174   :  { %v5489_v37 = vadd.f32 %v8749_v38, %v5488_v53  ;;  %v5650_v26 = vpop.f32.mrf.mxu2 }
0x1175   :  { %v5723_v28 = vpop.f32.mrf.mxu3 }
0x1176   :  { %v5578_v16 = vadd.f32 %v5577_v51, %v5489_v37  ;;  %v5473_v51 = vadd.f32 %v8749_v38, %v8742_v63 }
0x1178   :  { %v5651_v2 = vadd.f32 %v5650_v26, %v5578_v16 }
0x117a   :  { %v5724_v10 = vadd.f32 %v5723_v28, %v5651_v2 }
0x117b   :  { %v5768_v3 = vpop.f32.mrf.mxu0  ;;  %v5829_v22 = vpop.f32.mrf.mxu1 }
0x117c   :  { %v5769_v23 = vadd.f32 %v5768_v3, %v5682_v19  ;;  %v5796_v56 = vpop.f32.mrf.mxu2  ;;  %v5570_v3 = vadd.f32 %v8740_v60, %v5473_v51 }
0x117d   :  { %v5797_v25 = vadd.f32 %v5796_v56, %v5724_v10 }
0x117e   :  { %v5826_v59 = vadd.f32 %v5825_v30, %v5769_v23  ;;  %v5636_v30 = vadd.f32 %v5635_v41, %v5566_v0 }
0x1180   :  { %v5856_v43 = vadd.f32 %v6670_v4, %v5826_v59  ;;  %v5706_v23 = vadd.f32 %v8754_v48, %v5636_v30  ;;  %v5853_v59 = vpop.f32.mrf.mxu3  ;;  %v6674_v48 = vld [vmem:[#allocation4 + $0x20] sm:$0xff] }
0x1181   :  { %v5854_v62 = vadd.f32 %v5853_v59, %v5797_v25 }
0x1182   :  { %v8762_v34 = vmul.f32 0.70710677, %v5856_v43  ;;  %v5641_v43 = vadd.f32 %v8757_v14, %v5570_v3 }
0x1183   :  { %v5772_v15 = vpop.f32.mrf.mxu0  ;;  %v5833_v31 = vpop.f32.mrf.mxu1 }
0x1184   :  { %v5773_v55 = vadd.f32 %v5772_v15, %v5688_v35  ;;  %v5872_v58 = vmul.f32 %v8762_v34, %v8762_v34  ;;  %v5481_v35 = vadd.f32 %v8749_v38, %v8751_v57 }
0x1186   :  { %v5830_v6 = vadd.f32 %v5829_v22, %v5773_v55  ;;  %v5880_v21 = vsel %vm1595_vm9, %v5872_v58, 0.0  ;;  %v5712_v58 = vadd.f32 %v8759_v45, %v5641_v43  ;;  %v5574_v18 = vadd.f32 %v8744_v42, %v5481_v35  ;;  %v6676_v45 = vld [vmem:[#allocation4 + $0x28] sm:$0xff] }
0x1187   :  { %5881 = vadd.xlane.f32.xlu0 %v5880_v21 }
0x1188   :  { %v5857_v7 = vadd.f32 %v6671_v27, %v5830_v6  ;;  %v5646_v57 = vadd.f32 %v8764_v20, %v5574_v18 }
0x118a   :  { %v8773_v9 = vmul.f32 0.70710677, %v5857_v7  ;;  %v5718_v37 = vadd.f32 %v8770_v36, %v5646_v57 }
0x118b   :  { %v5776_v52 = vpop.f32.mrf.mxu0  ;;  %v5837_v11 = vpop.f32.mrf.mxu1 }
0x118c   :  { %v5777_v17 = vadd.f32 %v5776_v52, %v5694_v40  ;;  %v5873_v50 = vmul.f32 %v8773_v9, %v8773_v9 }
0x118e   :  { %v5834_v54 = vadd.f32 %v5833_v31, %v5777_v17  ;;  %v5883_v29 = vsel %vm1595_vm9, %v5873_v50, 0.0  ;;  %v6675_v31 = vld [vmem:[#allocation4 + $0x38] sm:$0xff] }
0x118f   :  { %5884 = vadd.xlane.f32.xlu1 %v5883_v29  ;;  %v5863_v13 = vadd.f32 %v6675_v31, %v5854_v62  ;;  %v6677_v29 = vld [vmem:[#allocation4 + $0x30] sm:$0xff] }
0x1190   :  { %v5858_v61 = vadd.f32 %v6672_v44, %v5834_v54 }
0x1191   :  { %v8804_v7 = vmul.f32 0.70710677, %v5863_v13 }
0x1192   :  { %v8780_v49 = vmul.f32 0.70710677, %v5858_v61 }
0x1193   :  { %v5780_v53 = vpop.f32.mrf.mxu0  ;;  %v5841_v22 = vpop.f32.mrf.mxu1  ;;  %v5879_v17 = vmul.f32 %v8804_v7, %v8804_v7 }
0x1194   :  { %v5781_v24 = vadd.f32 %v5780_v53, %v5700_v8  ;;  %v5874_v32 = vmul.f32 %v8780_v49, %v8780_v49 }
0x1195   :  { %v5901_v54 = vsel %vm1595_vm9, %v5879_v17, 0.0 }
0x1196   :  { %v5838_v39 = vadd.f32 %v5837_v11, %v5781_v24  ;;  %v5886_v19 = vsel %vm1595_vm9, %v5874_v32, 0.0 }
0x1197   :  { %5887 = vadd.xlane.f32.xlu2 %v5886_v19 }
0x1198   :  { %v5859_v1 = vadd.f32 %v6673_v12, %v5838_v39 }
0x119a   :  { %v8789_v5 = vmul.f32 0.70710677, %v5859_v1 }
0x119b   :  { %v5784_v4 = vpop.f32.mrf.mxu0  ;;  %v5845_v21 = vpop.f32.mrf.mxu1 }
0x119c   :  { %v5785_v63 = vadd.f32 %v5784_v4, %v5706_v23  ;;  %v5875_v41 = vmul.f32 %v8789_v5, %v8789_v5 }
0x119e   :  { %v5842_v15 = vadd.f32 %v5841_v22, %v5785_v63  ;;  %v5889_v60 = vsel %vm1595_vm9, %v5875_v41, 0.0 }
0x119f   :  { %5890 = vadd.xlane.f32.xlu2 %v5889_v60 }
0x11a0   :  { %v5860_v55 = vadd.f32 %v6674_v48, %v5842_v15 }
0x11a2   :  { %v8799_v6 = vmul.f32 0.70710677, %v5860_v55 }
0x11a3   :  { %v5788_v14 = vpop.f32.mrf.mxu0  ;;  %v5849_v26 = vpop.f32.mrf.mxu1 }
0x11a4   :  { %v5789_v27 = vadd.f32 %v5788_v14, %v5712_v58  ;;  %v5876_v38 = vmul.f32 %v8799_v6, %v8799_v6 }
0x11a6   :  { %v5846_v47 = vadd.f32 %v5845_v21, %v5789_v27  ;;  %v5892_v40 = vsel %vm1595_vm9, %v5876_v38, 0.0 }
0x11a7   :  { %5893 = vadd.xlane.f32.xlu0 %v5892_v40 }
0x11a8   :  { %v5861_v42 = vadd.f32 %v6676_v45, %v5846_v47 }
0x11aa   :  { %v8808_v52 = vmul.f32 0.70710677, %v5861_v42 }
0x11ab   :  { %v5792_v50 = vpop.f32.mrf.mxu0 }
0x11ac   :  { %v5793_v33 = vadd.f32 %v5792_v50, %v5718_v37  ;;  %v5877_v20 = vmul.f32 %v8808_v52, %v8808_v52 }
0x11ae   :  { %v5850_v46 = vadd.f32 %v5849_v26, %v5793_v33  ;;  %v5895_v16 = vsel %vm1595_vm9, %v5877_v20, 0.0 }
0x11af   :  { %5896 = vadd.xlane.f32.xlu1 %v5895_v16  ;;  %5902 = vadd.xlane.f32.xlu0 %v5901_v54 }
0x11b0   :  { %v5862_v36 = vadd.f32 %v6677_v29, %v5850_v46 }
0x11b2   :  { %v8816_v11 = vmul.f32 0.70710677, %v5862_v36 }
0x11b4   :  { %v5878_v44 = vmul.f32 %v8816_v11, %v8816_v11 }
0x11b6   :  { %v5898_v61 = vsel %vm1595_vm9, %v5878_v44, 0.0 }
0x11b7   :  { %5899 = vadd.xlane.f32.xlu2 %v5898_v61 }
0x11fa   :  { %v5882_v8 = vpop.xlane.xlu0 %5881 }
0x11fb   :  { %v5904_v51 = vmax.f32 %v5882_v8, 1e-24 }
0x11fd   :  { %vm5918_vm15 = vweird.f32 %v5904_v51 }
0x1202   :  { %v5885_v2 = vpop.xlane.xlu1 %5884 }
0x1203   :  { %v8823_v24 = vmax.f32 %v5885_v2, 1e-24 }
0x1205   :  { %vm5928_vm1 = vweird.f32 %v8823_v24 }
0x120a   :  { %v5888_v28 = vpop.xlane.xlu2 %5887 }
0x120b   :  { %v8825_v32 = vmax.f32 %v5888_v28, 1e-24 }
0x120d   :  { %vm5938_vm12 = vweird.f32 %v8825_v32 }
0x1212   :  { %v5891_v0 = vpop.xlane.xlu2 %5890 }
0x1213   :  { %v8821_v53 = vmax.f32 %v5891_v0, 1e-24 }
0x1215   :  { %6652 = vrsqrt.f32 %v8821_v53  ;;  %vm5948_vm6 = vweird.f32 %v8821_v53 }
0x1216   :  { %6654 = vrsqrt.f32 %v8823_v24 }
0x1217   :  { %6656 = vrsqrt.f32 %v8825_v32 }
0x1218   :  { %6658 = vrsqrt.f32 %v5904_v51 }
0x121a   :  { %v5894_v30 = vpop.xlane.xlu0 %5893 }
0x121b   :  { %v8829_v10 = vmax.f32 %v5894_v30, 1e-24  ;;  %v8833_v39 = vpop.eup %6652 }
0x121c   :  { %v8835_v19 = vpop.eup %6654  ;;  %v5943_v22 = vmul.f32 %v8833_v39, %v8821_v53  ;;  %vm5949_vm2 = vweird.f32 %v8833_v39 }
0x121d   :  { %6660 = vrsqrt.f32 %v8829_v10  ;;  %v8837_v56 = vpop.eup %6656  ;;  %v5923_v4 = vmul.f32 %v8835_v19, %v8823_v24  ;;  %vm5929_vm3 = vweird.f32 %v8835_v19  ;;  %vm8891_vm7 = vmor %vm5948_vm6, %vm5949_vm2 }
0x121e   :  { %v8839_v3 = vpop.eup %6658  ;;  %v5933_v63 = vmul.f32 %v8837_v56, %v8825_v32  ;;  %v5944_v43 = vmul.f32 %v8833_v39, %v5943_v22  ;;  %vm5939_vm5 = vweird.f32 %v8837_v56  ;;  %vm8899_vm11 = vmor %vm5928_vm1, %vm5929_vm3  ;;  %vm5958_vm1 = vweird.f32 %v8829_v10 }
0x121f   :  { %v5913_v41 = vmul.f32 %v8839_v3, %v5904_v51  ;;  %v5924_v62 = vmul.f32 %v8835_v19, %v5923_v4  ;;  %vm5919_vm10 = vweird.f32 %v8839_v3 }
0x1220   :  { %v5934_v15 = vmul.f32 %v8837_v56, %v5933_v63  ;;  %v5945_v58 = vmul.f32 0.5, %v5944_v43  ;;  %vm8882_vm4 = vmor %vm5918_vm15, %vm5919_vm10 }
0x1221   :  { %v5914_v60 = vmul.f32 %v8839_v3, %v5913_v41  ;;  %v5925_v14 = vmul.f32 0.5, %v5924_v62  ;;  %vm8909_vm10 = vmor %vm5938_vm12, %vm5939_vm5 }
0x1222   :  { %v5897_v12 = vpop.xlane.xlu1 %5896  ;;  %v5903_v1 = vpop.xlane.xlu0 %5902  ;;  %v5935_v27 = vmul.f32 0.5, %v5934_v15  ;;  %v5946_v40 = vsub.f32 1.5, %v5945_v58 }
0x1223   :  { %v8843_v23 = vmax.f32 %v5897_v12, 1e-24  ;;  %v8845_v25 = vmax.f32 %v5903_v1, 1e-24  ;;  %v8847_v59 = vpop.eup %6660  ;;  %v5915_v57 = vmul.f32 0.5, %v5914_v60  ;;  %v5926_v17 = vsub.f32 1.5, %v5925_v14 }
0x1224   :  { %v5953_v35 = vmul.f32 %v8847_v59, %v8829_v10  ;;  %v5936_v50 = vsub.f32 1.5, %v5935_v27  ;;  %v5947_v16 = vmul.f32 %v8833_v39, %v5946_v40  ;;  %vm5959_vm13 = vweird.f32 %v8847_v59  ;;  %v6025_v27 = vld [vmem:[%s9065_s6 + $0x8] sm:$0xff]  ;;  %v6024_v40 = vld [vmem:[%s9065_s6] sm:$0xff] }
0x1225   :  { %6662 = vrsqrt.f32 %v8843_v23  ;;  %v5916_v20 = vsub.f32 1.5, %v5915_v57  ;;  %v5927_v61 = vmul.f32 %v8835_v19, %v5926_v17  ;;  %vm5968_vm14 = vweird.f32 %v8843_v23  ;;  %vm8925_vm3 = vmor %vm5958_vm1, %vm5959_vm13 }
0x1226   :  { %6664 = vrsqrt.f32 %v8845_v25  ;;  %v5954_v13 = vmul.f32 %v8847_v59, %v5953_v35  ;;  %v5937_v28 = vmul.f32 %v8837_v56, %v5936_v50  ;;  %v5951_v53 = vsel %vm8891_vm7, %v8833_v39, %v5947_v16 }
0x1227   :  { %v5917_v8 = vmul.f32 %v8839_v3, %v5916_v20  ;;  %v5931_v32 = vsel %vm8899_vm11, %v8835_v19, %v5927_v61  ;;  %vm5988_vm5 = vweird.f32 %v8845_v25  ;;  %v6053_v17 = vand.u32 4294901760, %v6024_v40 }
0x1228   :  { %v5955_v42 = vmul.f32 0.5, %v5954_v13  ;;  %v5941_v39 = vsel %vm8909_vm10, %v8837_v56, %v5937_v28  ;;  %v5995_v56 = vmul.f32 %v5951_v53, %v8789_v5  ;;  %vm6501_vm10 = vcmask 7168  }
0x1229   :  { %v5921_v19 = vsel %vm8882_vm4, %v8839_v3, %v5917_v8  ;;  %v5994_v35 = vmul.f32 %v5941_v39, %v8780_v49 }
0x122a   :  { %v5900_v48 = vpop.xlane.xlu2 %5899  ;;  %v5956_v54 = vsub.f32 1.5, %v5955_v42  ;;  %v5992_v3 = vmul.f32 %v5921_v19, %v8762_v34  ;;  %v6027_v34 = vld [vmem:[%s9065_s6 + $0x18] sm:$0xff] }
0x122b   :  { %v8862_v55 = vpop.eup %6662  ;;  %v8864_v18 = vmax.f32 %v5900_v48, 1e-24  ;;  %v6001_v48 = vadd.f32 %v5995_v56, %v5994_v35 }
0x122c   :  { %v8866_v31 = vpop.eup %6664  ;;  %v5963_v21 = vmul.f32 %v8862_v55, %v8843_v23  ;;  %vm5969_vm8 = vweird.f32 %v8862_v55  ;;  %v5957_v24 = vmul.f32 %v8847_v59, %v5956_v54 }
0x122d   :  { %v5983_v38 = vmul.f32 %v8866_v31, %v8845_v25  ;;  %6666 = vrsqrt.f32 %v8864_v18  ;;  %vm5989_vm15 = vweird.f32 %v8866_v31  ;;  %vm5970_vm2 = vmor %vm5968_vm14, %vm5969_vm8  ;;  %vm5978_vm8 = vweird.f32 %v8864_v18 }
0x122e   :  { %v5964_v47 = vmul.f32 %v8862_v55, %v5963_v21  ;;  %vm5990_vm7 = vmor %vm5988_vm5, %vm5989_vm15  ;;  %v5961_v10 = vsel %vm8925_vm3, %v8847_v59, %v5957_v24  ;;  %v5993_v25 = vmul.f32 %v5931_v32, %v8773_v9 }
0x122f   :  { %v5984_v45 = vmul.f32 %v8866_v31, %v5983_v38  ;;  %v5996_v15 = vmul.f32 %v5961_v10, %v8799_v6  ;;  %v6047_v6 = vand.u32 4294901760, %v6027_v34 }
0x1230   :  { %v5965_v37 = vmul.f32 0.5, %v5964_v47  ;;  %v6051_v47 = vand.u32 4294901760, %v6025_v27 }
0x1231   :  { %v5985_v33 = vmul.f32 0.5, %v5984_v45  ;;  %6048 = vmatpush.msrb.mxu2 %v6047_v6 }
0x1232   :  { %v5966_v26 = vsub.f32 1.5, %v5965_v37  ;;  %v6089_v37 = vsub.f32 %v6025_v27, %v6051_v47 }
0x1233   :  { %v6667_v46 = vpop.eup %6666  ;;  %v5986_v29 = vsub.f32 1.5, %v5985_v33 }
0x1234   :  { %v5973_v36 = vmul.f32 %v6667_v46, %v8864_v18  ;;  %v5967_v2 = vmul.f32 %v8862_v55, %v5966_v26  ;;  %vm5979_vm6 = vweird.f32 %v6667_v46  ;;  %v6090_v20 = vand.u32 4294901760, %v6089_v37 }
0x1235   :  { %v5987_v1 = vmul.f32 %v8866_v31, %v5986_v29  ;;  %vm5980_vm11 = vmor %vm5978_vm8, %vm5979_vm6  ;;  %v6095_v26 = vsub.f32 %v6024_v40, %v6053_v17 }
0x1236   :  { %v5974_v51 = vmul.f32 %v6667_v46, %v5973_v36  ;;  %v5971_v4 = vsel %vm5970_vm2, %v8862_v55, %v5967_v2  ;;  %v6000_v55 = vadd.f32 %v5993_v25, %v5992_v3  ;;  %v6091_v16 = vsub.f32 %v6089_v37, %v6090_v20  ;;  %v6232_v25 = vld [vmem:[%s9068_s9 + $0x28] sm:$0xff] }
0x1237   :  { %v5991_v41 = vsel %vm5990_vm7, %v8866_v31, %v5987_v1  ;;  %v5997_v62 = vmul.f32 %v5971_v4, %v8808_v52  ;;  %v6096_v54 = vand.u32 4294901760, %v6095_v26 }
0x1238   :  { %v5975_v22 = vmul.f32 0.5, %v5974_v51  ;;  %v5999_v60 = vmul.f32 %v5991_v41, %v8804_v7  ;;  %v6004_v31 = vadd.f32 %v6001_v48, %v6000_v55  ;;  %v6026_v7 = vld [vmem:[%s9065_s6 + $0x10] sm:$0xff]  ;;  %v6092_v29 = vand.u32 4294901760, %v6091_v16  ;;  %v6230_v55 = vld [vmem:[%s9068_s9 + $0x18] sm:$0xff] }
0x1239   :  { %v6002_v58 = vadd.f32 %v5997_v62, %v5996_v15  ;;  %v6049_v14 = vand.u32 4294901760, %v6026_v7  ;;  %v6097_v36 = vsub.f32 %v6095_v26, %v6096_v54  ;;  %v6233_v41 = vld [vmem:[%s9068_s9 + $0x30] sm:$0xff]  ;;  %v8992_v62 = vand.u32 4294901760, %v6232_v25 }
0x123a   :  { %v5976_v63 = vsub.f32 1.5, %v5975_v22 }
0x123b   :  { %v6083_v57 = vsub.f32 %v6026_v7, %v6049_v14  ;;  %6050 = vmatpush.msrb.mxu2 %v6049_v14  ;;  %v6098_v44 = vand.u32 4294901760, %v6097_v36  ;;  %v6228_v7 = vld [vmem:[%s9068_s9 + $0x8] sm:$0xff] }
0x123c   :  { %v5977_v43 = vmul.f32 %v6667_v46, %v5976_v63  ;;  %v6234_v63 = vld [vmem:[%s9068_s9 + $0x38] sm:$0xff] }
0x123d   :  { %v6084_v42 = vand.u32 4294901760, %v6083_v57  ;;  %6052 = vmatpush.msrb.mxu2 %v6051_v47  ;;  %v8972_v19 = vand.u32 4294901760, %v6234_v63 }
0x123e   :  { %v5981_v5 = vsel %vm5980_vm11, %v6667_v46, %v5977_v43  ;;  %v8983_v43 = vand.u32 4294901760, %v6233_v41 }
0x123f   :  { %v5998_v59 = vmul.f32 %v5981_v5, %v8816_v11  ;;  %v8954_v11 = vsub.f32 %v6027_v34, %v6047_v6  ;;  %v6085_v33 = vsub.f32 %v6083_v57, %v6084_v42  ;;  %6054 = vmatpush.msrb.mxu2 %v6053_v17  ;;  %v8975_v56 = vsub.f32 %v6234_v63, %v8972_v19  ;;  %v6231_v5 = vld [vmem:[%s9068_s9 + $0x20] sm:$0xff] }
0x1240   :  { %6459 = vmatpush.msrb.mxu1 %v8972_v19  ;;  %v8989_v35 = vsub.f32 %v6233_v41, %v8983_v43 }
0x1241   :  { %v6003_v18 = vadd.f32 %v5999_v60, %v5998_v59  ;;  %v6078_v38 = vand.u32 4294901760, %v8954_v11  ;;  %6119 = vmatpush.msra.mxu2 %v8954_v11  ;;  %v6086_v46 = vand.u32 4294901760, %v6085_v33  ;;  %v6285_v10 = vand.u32 4294901760, %v8975_v56 }
0x1242   :  { %6461 = vmatpush.msrb.mxu1 %v8983_v43  ;;  %v6291_v15 = vand.u32 4294901760, %v8989_v35  ;;  %v9001_v60 = vsub.f32 %v6232_v25, %v8992_v62  ;;  %v9003_v59 = vand.u32 4294901760, %v6231_v5 }
0x1243   :  { %v6005_v9 = vadd.f32 %v6003_v18, %v6002_v58  ;;  %v6079_v45 = vsub.f32 %v8954_v11, %v6078_v38  ;;  %6122 = vmatpush.msra.mxu2 %v6083_v57  ;;  %6416 = vmatpush.msrb.mxu0 %v6285_v10  ;;  %v6286_v3 = vsub.f32 %v8975_v56, %v6285_v10 }
0x1244   :  { %6463 = vmatpush.msrb.mxu1 %v8992_v62  ;;  %v6292_v58 = vsub.f32 %v8989_v35, %v6291_v15  ;;  %v6297_v18 = vand.u32 4294901760, %v9001_v60 }
0x1245   :  { %v6006_v13 = vadd.f32 %v6005_v9, %v6004_v31  ;;  %v6080_v50 = vand.u32 4294901760, %v6079_v45  ;;  %6125 = vmatpush.msra.mxu2 %v6089_v37  ;;  %v6287_v48 = vand.u32 4294901760, %v6286_v3  ;;  %6420 = vmatpush.msrb.mxu0 %v6291_v15  ;;  %v6302_v31 = vsub.f32 %v6231_v5, %v9003_v59 }
0x1246   :  { %v9013_v9 = vand.u32 4294901760, %v6230_v55  ;;  %6465 = vmatpush.msrb.mxu1 %v9003_v59 }
0x1247   :  { %v6007_v49 = vmul.f32 0.125, %v6006_v13  ;;  %6081 = vmatpush.msrb.mxu3 %v6080_v50  ;;  %6128 = vmatpush.msra.mxu2 %v6095_v26  ;;  %v6229_v13 = vld [vmem:[%s9068_s9 + $0x10] sm:$0xff] }
0x1248   :  { %6424 = vmatpush.msrb.mxu0 %v6297_v18  ;;  %v6308_v34 = vsub.f32 %v6230_v55, %v9013_v9  ;;  %6467 = vmatpush.msrb.mxu1 %v9013_v9 }
0x1249   :  { %v6008_v21 = vmul.f32 %v6007_v49, %v6007_v49  ;;  %6087 = vmatpush.msrb.mxu3 %v6086_v46 }
0x124a   :  { %v6309_v27 = vand.u32 4294901760, %v6308_v34 }
0x124b   :  { %v6009_v52 = vsel %vm1595_vm9, %v6008_v21, 0.0  ;;  %6093 = vmatpush.msrb.mxu3 %v6092_v29  ;;  %v6298_v21 = vsub.f32 %v9001_v60, %v6297_v18 }
0x124c   :  { %6010 = vadd.xlane.f32.xlu1 %v6009_v52  ;;  %v6303_v52 = vand.u32 4294901760, %v6302_v31  ;;  %v6310_v45 = vsub.f32 %v6308_v34, %v6309_v27 }
0x124d   :  { %6099 = vmatpush.msrb.mxu3 %v6098_v44  ;;  %v6299_v11 = vand.u32 4294901760, %v6298_v21 }
0x124e   :  { %6428 = vmatpush.msrb.mxu0 %v6303_v52  ;;  %v6311_v50 = vand.u32 4294901760, %v6310_v45 }
0x124f   :  { %6148 = vmatpush.msra.mxu3 %v6047_v6 }
0x1250   :  { %6432 = vmatpush.msrb.mxu0 %v6309_v27 }
0x1251   :  { %6150 = vmatpush.msra.mxu3 %v6049_v14 }
0x1253   :  { %6152 = vmatpush.msra.mxu3 %v6051_v47 }
0x1255   :  { %6154 = vmatpush.msra.mxu3 %v6053_v17 }
0x12bf   :  { %v6011_v61 = vpop.xlane.xlu1 %6010 }
0x12c0   :  { %v6012_v28 = vmax.f32 %v6011_v61, 1e-24 }
0x12c2   :  { %6668 = vrsqrt.f32 %v6012_v28  ;;  %vm6019_vm12 = vweird.f32 %v6012_v28 }
0x12c8   :  { %v6669_v8 = vpop.eup %6668 }
0x12c9   :  { %v6014_v0 = vmul.f32 %v6669_v8, %v6012_v28  ;;  %vm6020_vm4 = vweird.f32 %v6669_v8 }
0x12ca   :  { %vm6021_vm13 = vmor %vm6019_vm12, %vm6020_vm4 }
0x12cb   :  { %v6015_v2 = vmul.f32 %v6669_v8, %v6014_v0 }
0x12cd   :  { %v6016_v51 = vmul.f32 0.5, %v6015_v2 }
0x12cf   :  { %v6017_v30 = vsub.f32 1.5, %v6016_v51 }
0x12d1   :  { %v6018_v53 = vmul.f32 %v6669_v8, %v6017_v30 }
0x12d3   :  { %v6022_v12 = vsel %vm6021_vm13, %v6669_v8, %v6018_v53  ;;  %v6550_v8 = vld [vmem:[%s9066_s7] ss:$0 sm:$0xff] }
0x12d4   :  { %v8965_v24 = vmul.f32 %v6022_v12, %v6007_v49  ;;  %v6293_v49 = vand.u32 4294901760, %v6292_v58 }
0x12d6   :  { %v6033_v1 = vsel %vm1595_vm9, %v8965_v24, 0 }
0x12d7   :  { %v6055_v22 = vand.u32 4294901760, %v6033_v1 }
0x12d9   :  { %v6056_v32 = vsub.f32 %v6033_v1, %v6055_v22  ;;  %6101 = vmatmul.f32.vlgmr.msrb.gmra.mxu3 %v6055_v22 }
0x12da   :  { %6208 = vmatpush.msrb.mxu3 %v6047_v6  ;;  %v6260_v6 = vand.u32 4294901760, %v6229_v13 }
0x12db   :  { %v6057_v39 = vand.u32 4294901760, %v6056_v32 }
0x12dc   :  { %6210 = vmatpush.msrb.mxu3 %v6049_v14  ;;  %v6304_v14 = vsub.f32 %v6302_v31, %v6303_v52  ;;  %v6314_v57 = vsub.f32 %v6229_v13, %v6260_v6  ;;  %6469 = vmatpush.msrb.mxu1 %v6260_v6 }
0x12dd   :  { %v6058_v23 = vsub.f32 %v6056_v32, %v6057_v39 }
0x12de   :  { %6212 = vmatpush.msrb.mxu3 %v6051_v47  ;;  %v6227_v47 = vld [vmem:[%s9068_s9] sm:$0xff]  ;;  %v6305_v40 = vand.u32 4294901760, %v6304_v14 }
0x12df   :  { %v6059_v4 = vand.u32 4294901760, %v6058_v23  ;;  %v6264_v37 = vand.u32 4294901760, %v6227_v47  ;;  %v6555_v14 = vld [vmem:[#allocation3] ss:$0 sm:$0xff] }
0x12e0   :  { %6214 = vmatpush.msrb.mxu3 %v6053_v17  ;;  %v6315_v17 = vand.u32 4294901760, %v6314_v57 }
0x12e1   :  { %6060 = vmatmul.f32.vlgmr.msrb.gmra.mxu2 %v6059_v4  ;;  %6158 = vmatmul.f32.vlgmr.msra.gmra.mxu3 %v6057_v39 }
0x12e2   :  { %6177 = vmatpush.msrb.mxu2 %v6078_v38  ;;  %6288 = vmatpush.msra.mxu3 %v6287_v48  ;;  %v6262_v38 = vand.u32 4294901760, %v6228_v7  ;;  %v6316_v26 = vsub.f32 %v6314_v57, %v6315_v17 }
0x12e3   :  { %6436 = vmatpush.msrb.mxu0 %v6315_v17 }
0x12e4   :  { %6181 = vmatpush.msrb.mxu2 %v6084_v42  ;;  %6294 = vmatpush.msra.mxu3 %v6293_v49  ;;  %v6320_v42 = vsub.f32 %v6228_v7, %v6262_v38 }
0x12e5   :  { %6471 = vmatpush.msrb.mxu1 %v6262_v38 }
0x12e6   :  { %6185 = vmatpush.msrb.mxu2 %v6090_v20  ;;  %6300 = vmatpush.msra.mxu3 %v6299_v11  ;;  %v6321_v33 = vand.u32 4294901760, %v6320_v42  ;;  %v6326_v20 = vsub.f32 %v6227_v47, %v6264_v37 }
0x12e7   :  { %6473 = vmatpush.msrb.mxu1 %v6264_v37 }
0x12e8   :  { %6189 = vmatpush.msrb.mxu2 %v6096_v54  ;;  %6306 = vmatpush.msra.mxu3 %v6305_v40  ;;  %v6322_v46 = vsub.f32 %v6320_v42, %v6321_v33  ;;  %v6327_v16 = vand.u32 4294901760, %v6326_v20  ;;  %v6317_v54 = vand.u32 4294901760, %v6316_v26 }
0x12e9   :  { %6131 = vmatmul.f32.vlgmr.msra.gmra.mxu2 %v6056_v32  ;;  %6216 = vmatmul.f32.vlgmr.msrb.gmra.mxu3 %v6055_v22  ;;  %v6551_v32 = vld [vmem:[%s9067_s8] ss:$0 sm:$0xff] }
0x12ea   :  { %6251 = vmatpush.msra.mxu2 %v8972_v19  ;;  %6312 = vmatpush.msra.mxu3 %v6311_v50  ;;  %v6323_v29 = vand.u32 4294901760, %v6322_v46  ;;  %v6328_v36 = vsub.f32 %v6326_v20, %v6327_v16 }
0x12eb   :  { %6440 = vmatpush.msrb.mxu0 %v6321_v33 }
0x12ec   :  { %6253 = vmatpush.msra.mxu2 %v8983_v43  ;;  %6318 = vmatpush.msra.mxu3 %v6317_v54  ;;  %v6329_v44 = vand.u32 4294901760, %v6328_v36 }
0x12ed   :  { %6444 = vmatpush.msrb.mxu0 %v6327_v16 }
0x12ee   :  { %6255 = vmatpush.msra.mxu2 %v8992_v62  ;;  %6324 = vmatpush.msra.mxu3 %v6323_v29 }
0x12f0   :  { %6257 = vmatpush.msra.mxu2 %v9003_v59  ;;  %6330 = vmatpush.msra.mxu3 %v6329_v44 }
0x12f1   :  { %6191 = vmatmul.f32.vlgmr.msrb.gmra.mxu2 %v6055_v22 }
0x12f2   :  { %6259 = vmatpush.msra.mxu2 %v9013_v9  ;;  %6383 = vmatpush.msrb.mxu3 %v8972_v19 }
0x12f4   :  { %6261 = vmatpush.msra.mxu2 %v6260_v6  ;;  %6385 = vmatpush.msrb.mxu3 %v8983_v43 }
0x12f6   :  { %6263 = vmatpush.msra.mxu2 %v6262_v38  ;;  %6387 = vmatpush.msrb.mxu3 %v8992_v62 }
0x12f8   :  { %6265 = vmatpush.msra.mxu2 %v6264_v37  ;;  %6389 = vmatpush.msrb.mxu3 %v9003_v59 }
0x12fa   :  { %6346 = vmatpush.msrb.mxu2 %v8975_v56  ;;  %6391 = vmatpush.msrb.mxu3 %v9013_v9 }
0x12fc   :  { %6349 = vmatpush.msrb.mxu2 %v8989_v35  ;;  %6393 = vmatpush.msrb.mxu3 %v6260_v6  ;;  %v6552_v35 = vld [vmem:[%s9069_s10] ss:$0 sm:$0xff] }
0x12fe   :  { %6352 = vmatpush.msrb.mxu2 %v9001_v60  ;;  %6395 = vmatpush.msrb.mxu3 %v6262_v38 }
0x1300   :  { %6355 = vmatpush.msrb.mxu2 %v6302_v31  ;;  %6397 = vmatpush.msrb.mxu3 %v6264_v37  ;;  %v6553_v31 = vld [vmem:[%s9070_s11] ss:$0 sm:$0xff] }
0x1302   :  { %6358 = vmatpush.msrb.mxu2 %v6308_v34  ;;  %v6554_v34 = vld [vmem:[%s9071_s12] ss:$0 sm:$0xff] }
0x1304   :  { %6361 = vmatpush.msrb.mxu2 %v6314_v57 }
0x1306   :  { %6364 = vmatpush.msrb.mxu2 %v6320_v42 }
0x1308   :  { %6367 = vmatpush.msrb.mxu2 %v6326_v20 }
0x135c   :  { %v6102_v61 = vpop.f32.mrf.mxu3 }
0x1364   :  { %v6061_v28 = vpop.f32.mrf.mxu2  ;;  %v6159_v2 = vpop.f32.mrf.mxu3 }
0x1365   :  { %v6062_v0 = vadd.f32 %v6550_v8, %v6061_v28 }
0x1367   :  { %v6103_v30 = vadd.f32 %v6102_v61, %v6062_v0 }
0x136c   :  { %v6132_v51 = vpop.f32.mrf.mxu2  ;;  %v6217_v39 = vpop.f32.mrf.mxu3 }
0x136d   :  { %v6133_v53 = vadd.f32 %v6132_v51, %v6103_v30 }
0x136f   :  { %v6160_v12 = vadd.f32 %v6159_v2, %v6133_v53 }
0x1374   :  { %v6192_v1 = vpop.f32.mrf.mxu2 }
0x1375   :  { %v6193_v22 = vadd.f32 %v6192_v1, %v6160_v12 }
0x1377   :  { %v6218_v23 = vadd.f32 %v6217_v39, %v6193_v22 }
0x1379   :  { %vm6220_vm14 = vcmp.ge.f32.partialorder %v6218_v23, 0.0  ;;  %v6225_v4 = vmul.f32 %v6551_v32, %v6218_v23 }
0x137b   :  { %v6226_v63 = vsel %vm6220_vm14, %v6218_v23, %v6225_v4 }
0x137c   :  { %v6240_v19 = vsel %vm111_vm0, %v6226_v63, 0 }
0x137d   :  { %v6266_v56 = vand.u32 4294901760, %v6240_v19 }
0x137f   :  { %v6267_v10 = vsub.f32 %v6240_v19, %v6266_v56  ;;  %6332 = vmatmul.f32.vlgmr.msra.gmra.mxu3 %v6266_v56  ;;  %6446 = vmatmul.f32.vlgmr.msrb.gmra.mxu0 %v6266_v56 }
0x1380   :  { %6475 = vmatmul.f32.vlgmr.msrb.gmra.mxu1 %v6266_v56 }
0x1381   :  { %v6268_v41 = vand.u32 4294901760, %v6267_v10 }
0x1383   :  { %v6269_v43 = vsub.f32 %v6267_v10, %v6268_v41 }
0x1385   :  { %v6270_v25 = vand.u32 4294901760, %v6269_v43 }
0x1387   :  { %6271 = vmatmul.f32.vlgmr.msra.gmra.mxu2 %v6270_v25  ;;  %6401 = vmatmul.f32.vlgmr.msrb.gmra.mxu3 %v6268_v41 }
0x138f   :  { %6370 = vmatmul.f32.vlgmr.msrb.gmra.mxu2 %v6267_v10 }
0x13fc   :  { %v6447_v58 = vpop.f32.mrf.mxu0 }
0x13fd   :  { %v6476_v9 = vpop.f32.mrf.mxu1 }
0x1402   :  { %v6333_v62 = vpop.f32.mrf.mxu3 }
0x140a   :  { %v6272_v3 = vpop.f32.mrf.mxu2  ;;  %v6402_v48 = vpop.f32.mrf.mxu3 }
0x140b   :  { %v6273_v5 = vadd.f32 %v6552_v35, %v6272_v3 }
0x140d   :  { %v6334_v15 = vadd.f32 %v6333_v62, %v6273_v5 }
0x1412   :  { %v6371_v60 = vpop.f32.mrf.mxu2 }
0x1413   :  { %v6372_v59 = vadd.f32 %v6371_v60, %v6334_v15 }
0x1415   :  { %v6403_v55 = vadd.f32 %v6402_v48, %v6372_v59 }
0x1417   :  { %v6448_v18 = vadd.f32 %v6447_v58, %v6403_v55 }
0x1419   :  { %v6477_v13 = vadd.f32 %v6476_v9, %v6448_v18 }
0x141b   :  { %vm6479_vm0 = vcmp.ge.f32.partialorder %v6477_v13, 0.0  ;;  %v6484_v49 = vmul.f32 %v6553_v31, %v6477_v13 }
0x141d   :  { %v6485_v21 = vsel %vm6479_vm0, %v6477_v13, %v6484_v49 }
0x141e   :  { %v6486_v52 = vadd.f32 %v6485_v21, %v8965_v24 }
0x1420   :  { %v6487_v6 = vmul.f32 0.70710677, %v6486_v52 }
0x1422   :  { %v6492_v7 = vmul.f32 %v6554_v34, %v6487_v6 }
0x1424   :  { %v6493_v11 = vsel %vm1595_vm9, %v6492_v7, 0.0 }
0x1425   :  { %6494 = vadd.xlane.f32.xlu2 %v6493_v11 }
0x1498   :  { %v6495_v27 = vpop.xlane.xlu2 %6494 }
0x1499   :  { %v6500_v38 = vadd.f32 %v6555_v14, %v6495_v27 }
0x149b   :  { %6502 = vst.msk [vmem:[%s9073_s14] sm:$0xff] %vm6501_vm10, %v6500_v38 }
0x149c   :  { %6507 = vsyncpa [#allocation5], 1 }
0x149d   :  { %6508 = vsyncpa [#allocation7], 1 }

</bundles_post_ra>
